<compile_context>
chip_gen: v7x
topology: tpu7x:2x2x1
jax: 0.10.0
libtpu: 0.0.40
codegen_flags: <defaults>
</compile_context>

<pallas_src>
import numpy as np
import jax
import jax.numpy as jnp
from jax.experimental import pallas as pl
from jax.experimental.pallas import tpu as pltpu

F32 = jnp.float32


def _vmem():
    return pl.BlockSpec(memory_space=pltpu.MemorySpace.VMEM)


# ---------------------------------------------------------------------------
# Host-side constant builders (run once inside prepare_params).
# ---------------------------------------------------------------------------

def _group_indicators(num_channels, num_groups):
    cpg = num_channels // num_groups
    a = np.zeros((num_channels, num_groups), np.float32)
    a[np.arange(num_channels), np.arange(num_channels) // cpg] = 1.0
    return a, np.ascontiguousarray(a.T)


def _sample_indicators(n_samples, tokens_per_sample):
    T = n_samples * tokens_per_sample
    b = np.zeros((n_samples, T), np.float32)
    b[np.arange(T) // tokens_per_sample, np.arange(T)] = 1.0
    return b, np.ascontiguousarray(b.T)


def _conv2d_tap_masks(n_imgs, H, W):
    """(9, T, 1) validity mask per 3x3 tap for zero-padded stride-1 conv."""
    T = n_imgs * H * W
    hh = (np.arange(T) // W) % H
    ww = np.arange(T) % W
    m = np.zeros((9, T, 1), np.float32)
    for kh in range(3):
        for kw in range(3):
            ok = ((hh + kh - 1 >= 0) & (hh + kh - 1 < H) &
                  (ww + kw - 1 >= 0) & (ww + kw - 1 < W))
            m[kh * 3 + kw, :, 0] = ok
    return m


def _conv1d_tap_masks(n_seqs, L):
    """(3, T, 1) validity mask per k=3 tap for zero-padded stride-1 conv."""
    T = n_seqs * L
    ll = np.arange(T) % L
    m = np.zeros((3, T, 1), np.float32)
    for k in range(3):
        m[k, :, 0] = (ll + k - 1 >= 0) & (ll + k - 1 < L)
    return m


def _maxpool_compaction(n_imgs, H, W):
    """(T_out, T_in) 0/1 selector picking the top-left token of each 2x2 window."""
    H2, W2 = H // 2, W // 2
    To, Ti = n_imgs * H2 * W2, n_imgs * H * W
    sel = np.zeros((To, Ti), np.float32)
    o = np.arange(To)
    b, ho, wo = o // (H2 * W2), (o // W2) % H2, o % W2
    sel[o, b * H * W + (2 * ho) * W + 2 * wo] = 1.0
    return sel


def _attn_batch_bias(batch, q_len, kv_len):
    """Additive (-1e9 off-batch) attention bias for (b, t) token-major q/kv."""
    bias = np.full((batch * q_len, batch * kv_len), -1e9, np.float32)
    for b in range(batch):
        bias[b * q_len:(b + 1) * q_len, b * kv_len:(b + 1) * kv_len] = 0.0
    return bias


# ---------------------------------------------------------------------------
# Per-forward input prep (tiny XLA ops on the raw inputs only).
# ---------------------------------------------------------------------------

def _im2col_2d(x_nchw):
    """(B, C, H, W) -> (B*H*W, 9*C) patches; feature index = (kh*3 + kw)*C + c."""
    B, C, H, W = x_nchw.shape
    xp = jnp.pad(x_nchw, ((0, 0), (0, 0), (1, 1), (1, 1)))
    cols = []
    for kh in range(3):
        for kw in range(3):
            patch = jnp.transpose(xp[:, :, kh:kh + H, kw:kw + W], (0, 2, 3, 1))
            cols.append(patch.reshape(B * H * W, C))
    return jnp.concatenate(cols, axis=1)


def _im2col_1d(x_nd):
    """(N, D) -> (N*D, 3) patches (single input channel); feature index = k."""
    N, D = x_nd.shape
    xp = jnp.pad(x_nd, ((0, 0), (1, 1)))
    cols = [xp[:, k:k + D].reshape(N * D, 1) for k in range(3)]
    return jnp.concatenate(cols, axis=1)


# ---------------------------------------------------------------------------
# One-time parameter preparation (hoisted out of the forward path).
# ---------------------------------------------------------------------------

def prepare_params(p, *, batch, obs_horizon, image_dim, force_dim, hidden_dim,
                   num_heads=4, num_groups=16):
    C, H, W = image_dim
    D = force_dim
    E = hidden_dim
    n_img = batch * obs_horizon            # image-encoder sample count
    n_f = batch * obs_horizon              # force-encoder sample count
    c1_i, c2_i = p["img_w1"].shape[0], p["img_w2"].shape[0]
    c1_f, c2_f = p["f_w1"].shape[0], p["f_w2"].shape[0]
    H2, W2 = H // 2, W // 2
    assert H % 4 == 0 and W % 4 == 0
    assert H // 4 == 1 and W // 4 == 1, (
        "fused kernel assumes a 1x1 post-pool spatial size (Flatten == channels)")
    assert E == c2_i * (H // 4) * (W // 4)
    assert E % num_heads == 0

    acg_i1, agc_i1 = _group_indicators(c1_i, num_groups)
    acg_i2, agc_i2 = _group_indicators(c2_i, num_groups)
    acg_f1, agc_f1 = _group_indicators(c1_f, num_groups)
    acg_f2, agc_f2 = _group_indicators(c2_f, num_groups)
    bnt_i1, btn_i1 = _sample_indicators(n_img, H * W)
    bnt_i2, btn_i2 = _sample_indicators(n_img, H2 * W2)
    bnt_f, btn_f = _sample_indicators(n_f, D)

    prep = {
        "cfg": dict(batch=batch, obs=obs_horizon, C=C, H=H, W=W, D=D, E=E,
                    nh=num_heads, G=num_groups,
                    c1_i=c1_i, c2_i=c2_i, c1_f=c1_f, c2_f=c2_f),
        # --- image encoder ---
        "img_w1p": jnp.transpose(p["img_w1"], (2, 3, 1, 0)).reshape(9 * C, c1_i),
        "img_b1": p["img_b1"].reshape(1, -1),
        "img_g1w": p["img_g1w"].reshape(1, -1),
        "img_g1b": p["img_g1b"].reshape(1, -1),
        "acg_i1": jnp.asarray(acg_i1), "agc_i1": jnp.asarray(agc_i1),
        "bnt_i1": jnp.asarray(bnt_i1), "btn_i1": jnp.asarray(btn_i1),
        "pool1_sel": jnp.asarray(_maxpool_compaction(n_img, H, W)),
        "img_w2": jnp.transpose(p["img_w2"], (2, 3, 1, 0)).reshape(9, c1_i, c2_i),
        "img_m2": jnp.asarray(_conv2d_tap_masks(n_img, H2, W2)),
        "img_b2": p["img_b2"].reshape(1, -1),
        "img_g2w": p["img_g2w"].reshape(1, -1),
        "img_g2b": p["img_g2b"].reshape(1, -1),
        "acg_i2": jnp.asarray(acg_i2), "agc_i2": jnp.asarray(agc_i2),
        "bnt_i2": jnp.asarray(bnt_i2), "btn_i2": jnp.asarray(btn_i2),
        # --- force encoder ---
        "f_w1p": jnp.transpose(p["f_w1"], (2, 1, 0)).reshape(3, c1_f),
        "f_b1": p["f_b1"].reshape(1, -1),
        "f_g1w": p["f_g1w"].reshape(1, -1),
        "f_g1b": p["f_g1b"].reshape(1, -1),
        "acg_f1": jnp.asarray(acg_f1), "agc_f1": jnp.asarray(agc_f1),
        "f_w2": jnp.transpose(p["f_w2"], (2, 1, 0)),
        "f_m2": jnp.asarray(_conv1d_tap_masks(n_f, D)),
        "f_b2": p["f_b2"].reshape(1, -1),
        "f_g2w": p["f_g2w"].reshape(1, -1),
        "f_g2b": p["f_g2b"].reshape(1, -1),
        "acg_f2": jnp.asarray(acg_f2), "agc_f2": jnp.asarray(agc_f2),
        "bnt_f": jnp.asarray(bnt_f), "btn_f": jnp.asarray(btn_f),
        # PyTorch Flatten of (N, C, L) is channel-major -> per-position slabs.
        "f_pw": jnp.transpose(p["f_pw"].reshape(E, c2_f, D), (2, 1, 0)),
        "f_pb": p["f_pb"].reshape(1, -1),
        # --- attention + fusion MLP ---
        "wq": p["ip_w"][:E, :].T, "bq": p["ip_b"][:E].reshape(1, E),
        "wk": p["ip_w"][E:2 * E, :].T, "bk": p["ip_b"][E:2 * E].reshape(1, E),
        "wv": p["ip_w"][2 * E:, :].T, "bv": p["ip_b"][2 * E:].reshape(1, E),
        "attn_bias": jnp.asarray(_attn_batch_bias(batch, obs_horizon, obs_horizon)),
        "wo": p["op_w"].T, "bo": p["op_b"].reshape(1, E),
        "fu1_w": p["fu1_w"].T, "fu1_b": p["fu1_b"].reshape(1, E),
        "fu2_w": p["fu2_w"].T, "fu2_b": p["fu2_b"].reshape(1, E),
    }
    return prep


# ---------------------------------------------------------------------------
# Fused forward: image CNN + force CNN + cross attention + fusion MLP.
# ---------------------------------------------------------------------------

def cross_attention_fusion_forward(image_input, force_input, prep):
    """image_input: (batch*obs, C, H, W); force_input: (batch, obs, force_dim).
    Returns (batch, obs, hidden)."""
    cfg = prep["cfg"]
    batch, obs = cfg["batch"], cfg["obs"]
    C, H, W, D, E = cfg["C"], cfg["H"], cfg["W"], cfg["D"], cfg["E"]
    nh, G = cfg["nh"], cfg["G"]
    c1_i, c2_i, c1_f, c2_f = cfg["c1_i"], cfg["c2_i"], cfg["c1_f"], cfg["c2_f"]
    H2, W2 = H // 2, W // 2
    n_img = batch * obs
    n_f = batch * obs
    hd = E // nh
    scale = 1.0 / float(hd) ** 0.5
    T1 = n_img * H * W               # image conv1 tokens
    T2 = n_img * H2 * W2             # image conv2 tokens
    Tf = n_f * D                     # force tokens
    assert image_input.shape == (n_img, C, H, W)
    assert force_input.shape == (batch, obs, D)

    deltas_2d = [(kh - 1) * W2 + (kw - 1) for kh in range(3) for kw in range(3)]
    deltas_1d = [-1, 0, 1]

    def kernel(
        # image encoder
        imgp_ref, w1i_ref, b1i_ref, g1wi_ref, g1bi_ref,
        acg1i_ref, agc1i_ref, bnt1i_ref, btn1i_ref, pool1_ref,
        w2i_ref, m2i_ref, b2i_ref, g2wi_ref, g2bi_ref,
        acg2i_ref, agc2i_ref, bnt2i_ref, btn2i_ref,
        # force encoder
        fp_ref, w1f_ref, b1f_ref, g1wf_ref, g1bf_ref, acg1f_ref, agc1f_ref,
        w2f_ref, m2f_ref, b2f_ref, g2wf_ref, g2bf_ref, acg2f_ref, agc2f_ref,
        bntf_ref, btnf_ref, fpw_ref, fpb_ref,
        # attention + fusion
        wq_ref, bq_ref, wk_ref, bk_ref, wv_ref, bv_ref, bias_ref,
        wo_ref, bo_ref, w_fu1_ref, b_fu1_ref, w_fu2_ref, b_fu2_ref,
        # output
        o_ref,
        # scratch
        scr_img, scr_f, attn_scr,
    ):
        def gn_relu(y, acg, agc, bnt, btn, gamma, beta, cnt):
            # PyTorch GroupNorm (+affine) + ReLU, centred variance, stats via
            # matmuls against host-built 0/1 indicator matrices.
            inv_cnt = 1.0 / cnt
            s1 = jnp.dot(y, acg, preferred_element_type=F32)
            mean_ng = jnp.dot(bnt, s1, preferred_element_type=F32) * inv_cnt
            mean_tc = jnp.dot(jnp.dot(btn, mean_ng, preferred_element_type=F32),
                              agc, preferred_element_type=F32)
            d = y - mean_tc
            var_ng = jnp.dot(
                bnt, jnp.dot(d * d, acg, preferred_element_type=F32),
                preferred_element_type=F32) * inv_cnt
            inv_ng = jax.lax.rsqrt(var_ng + 1e-5)
            inv_tc = jnp.dot(jnp.dot(btn, inv_ng, preferred_element_type=F32),
                             agc, preferred_element_type=F32)
            return jnp.maximum(d * inv_tc * gamma + beta, 0.0)

        def conv_taps(x, w_ref, m_ref, bias, deltas, n_tokens):
            # stride-1 / zero-pad conv: sublane roll per tap + border mask.
            acc = jnp.zeros((n_tokens, w_ref.shape[-1]), F32) + bias
            for k, delta in enumerate(deltas):
                xr = x if delta == 0 else pltpu.roll(x, (-delta) % n_tokens, axis=0)
                acc = acc + jnp.dot(xr * m_ref[k], w_ref[k],
                                    preferred_element_type=F32)
            return acc

        # ------------------------- image encoder --------------------------
        y = (jnp.dot(imgp_ref[...], w1i_ref[...], preferred_element_type=F32)
             + b1i_ref[...])                                      # (T1, c1_i)
        y = gn_relu(y, acg1i_ref[...], agc1i_ref[...], bnt1i_ref[...],
                    btn1i_ref[...], g1wi_ref[...], g1bi_ref[...],
                    float(H * W * (c1_i // G)))
        # MaxPool2d(2) #1: 2x2 window max via rolls + one 0/1 compaction matmul.
        m = jnp.maximum(y, pltpu.roll(y, (-1) % T1, axis=0))
        m = jnp.maximum(m, pltpu.roll(m, (-W) % T1, axis=0))
        y = jnp.dot(pool1_ref[...], m, preferred_element_type=F32)  # (T2, c1_i)
        # Conv2d 3x3 #2 (roll-based taps) + GN + ReLU.
        y = conv_taps(y, w2i_ref, m2i_ref, b2i_ref[...], deltas_2d, T2)
        y = gn_relu(y, acg2i_ref[...], agc2i_ref[...], bnt2i_ref[...],
                    btn2i_ref[...], g2wi_ref[...], g2bi_ref[...],
                    float(H2 * W2 * (c2_i // G)))
        # MaxPool2d(2) #2 (output spatial = 1x1): per-sample max over the
        # H2*W2 consecutive token rows via strided scratch reads.
        scr_img[...] = y
        img_feat = scr_img[pl.ds(0, n_img, stride=H2 * W2), :]
        for kk in range(1, H2 * W2):
            img_feat = jnp.maximum(
                img_feat, scr_img[pl.ds(kk, n_img, stride=H2 * W2), :])
        # img_feat: (n_img, c2_i) == Flatten output; rows ordered (batch, obs).

        # ------------------------- force encoder --------------------------
        yf = (jnp.dot(fp_ref[...], w1f_ref[...], preferred_element_type=F32)
              + b1f_ref[...])                                     # (Tf, c1_f)
        yf = gn_relu(yf, acg1f_ref[...], agc1f_ref[...], bntf_ref[...],
                     btnf_ref[...], g1wf_ref[...], g1bf_ref[...],
                     float(D * (c1_f // G)))
        yf = conv_taps(yf, w2f_ref, m2f_ref, b2f_ref[...], deltas_1d, Tf)
        yf = gn_relu(yf, acg2f_ref[...], agc2f_ref[...], bntf_ref[...],
                     btnf_ref[...], g2wf_ref[...], g2bf_ref[...],
                     float(D * (c2_f // G)))
        # Flatten(N, C, L) + Linear: per-position weight slabs, positions read
        # back with strided scratch reads (rows n*D + l).
        scr_f[...] = yf
        f_feat = jnp.zeros((n_f, E), F32) + fpb_ref[...]
        for l in range(D):
            y_l = scr_f[pl.ds(l, n_f, stride=D), :]
            f_feat = f_feat + jnp.dot(y_l, fpw_ref[l],
                                      preferred_element_type=F32)

        # --------- cross attention (q = force, k = v = image) + MLP ---------
        q = (jnp.dot(f_feat, wq_ref[...], preferred_element_type=F32)
             + bq_ref[...]) * scale
        k_proj = (jnp.dot(img_feat, wk_ref[...], preferred_element_type=F32)
                  + bk_ref[...])
        v_proj = (jnp.dot(img_feat, wv_ref[...], preferred_element_type=F32)
                  + bv_ref[...])
        for h in range(nh):
            lo = h * hd
            s = jax.lax.dot_general(q[:, lo:lo + hd], k_proj[:, lo:lo + hd],
                                    (((1,), (1,)), ((), ())),
                                    preferred_element_type=F32)
            s = s + bias_ref[...]                       # off-batch -1e9 bias
            s = s - jnp.max(s, axis=-1, keepdims=True)
            pr = jnp.exp(s)
            pr = pr * pl.reciprocal(jnp.sum(pr, axis=-1, keepdims=True),
                                    approx=True)
            attn_scr[:, lo:lo + hd] = jnp.dot(pr, v_proj[:, lo:lo + hd],
                                              preferred_element_type=F32)
        attn = (jnp.dot(attn_scr[...], wo_ref[...], preferred_element_type=F32)
                + bo_ref[...])
        hid = jnp.maximum(
            jnp.dot(attn, w_fu1_ref[...], preferred_element_type=F32)
            + b_fu1_ref[...], 0.0)
        out = (jnp.dot(hid, w_fu2_ref[...], preferred_element_type=F32)
               + b_fu2_ref[...])
        o_ref[...] = out.astype(o_ref.dtype)

    # Per-forward input prep (tiny; only the raw inputs are touched here).
    img_patches = _im2col_2d(image_input.astype(F32))
    f_patches = _im2col_1d(force_input.astype(F32).reshape(n_f, D))

    args = (
        img_patches, prep["img_w1p"], prep["img_b1"], prep["img_g1w"],
        prep["img_g1b"], prep["acg_i1"], prep["agc_i1"], prep["bnt_i1"],
        prep["btn_i1"], prep["pool1_sel"],
        prep["img_w2"], prep["img_m2"], prep["img_b2"], prep["img_g2w"],
        prep["img_g2b"], prep["acg_i2"], prep["agc_i2"], prep["bnt_i2"],
        prep["btn_i2"],
        f_patches, prep["f_w1p"], prep["f_b1"], prep["f_g1w"], prep["f_g1b"],
        prep["acg_f1"], prep["agc_f1"],
        prep["f_w2"], prep["f_m2"], prep["f_b2"], prep["f_g2w"], prep["f_g2b"],
        prep["acg_f2"], prep["agc_f2"], prep["bnt_f"], prep["btn_f"],
        prep["f_pw"], prep["f_pb"],
        prep["wq"], prep["bq"], prep["wk"], prep["bk"], prep["wv"], prep["bv"],
        prep["attn_bias"], prep["wo"], prep["bo"],
        prep["fu1_w"], prep["fu1_b"], prep["fu2_w"], prep["fu2_b"],
    )

    out = pl.pallas_call(
        kernel,
        out_shape=jax.ShapeDtypeStruct((n_f, E), F32),
        in_specs=[_vmem()] * len(args),
        out_specs=_vmem(),
        scratch_shapes=[
            pltpu.VMEM((T2, c2_i), F32),   # image activations before MaxPool #2
            pltpu.VMEM((Tf, c2_f), F32),   # force activations before Flatten
            pltpu.VMEM((n_f, E), F32),     # per-head attention outputs
        ],
    )(*args)
    return out.reshape(batch, obs, E)


# ---------------------------------------------------------------------------
# Pure-JAX reference (PyTorch semantics) for the correctness check.
# ---------------------------------------------------------------------------

def _reference_forward(image_input, force_input, p, obs_horizon, num_heads):
    hi = jax.lax.Precision.HIGHEST

    def conv2d(x, w, b):
        y = jax.lax.conv_general_dilated(
            x, w, (1, 1), ((1, 1), (1, 1)),
            dimension_numbers=("NCHW", "OIHW", "NCHW"), precision=hi)
        return y + b[None, :, None, None]

    def conv1d(x, w, b):
        y = jax.lax.conv_general_dilated(
            x, w, (1,), ((1, 1),),
            dimension_numbers=("NCH", "OIH", "NCH"), precision=hi)
        return y + b[None, :, None]

    def group_norm(x, groups, w, b, eps=1e-5):
        n, c = x.shape[0], x.shape[1]
        xr = x.reshape(n, groups, -1)
        m = xr.mean(axis=-1, keepdims=True)
        v = ((xr - m) ** 2).mean(axis=-1, keepdims=True)
        xn = ((xr - m) / jnp.sqrt(v + eps)).reshape(x.shape)
        shp = (1, c) + (1,) * (x.ndim - 2)
        return xn * w.reshape(shp) + b.reshape(shp)

    def maxpool2(x):
        n, c, h, w = x.shape
        return x.reshape(n, c, h // 2, 2, w // 2, 2).max(axis=(3, 5))

    x = conv2d(image_input, p["img_w1"], p["img_b1"])
    x = jax.nn.relu(group_norm(x, 16, p["img_g1w"], p["img_g1b"]))
    x = maxpool2(x)
    x = conv2d(x, p["img_w2"], p["img_b2"])
    x = jax.nn.relu(group_norm(x, 16, p["img_g2w"], p["img_g2b"]))
    x = maxpool2(x)
    img = x.reshape(x.shape[0], -1)
    b = img.shape[0] // obs_horizon
    image_features = jnp.transpose(img.reshape(b, obs_horizon, -1), (1, 0, 2))

    bf, t, d = force_input.shape
    f = force_input.reshape(bf * t, d)[:, None, :]
    f = conv1d(f, p["f_w1"], p["f_b1"])
    f = jax.nn.relu(group_norm(f, 16, p["f_g1w"], p["f_g1b"]))
    f = conv1d(f, p["f_w2"], p["f_b2"])
    f = jax.nn.relu(group_norm(f, 16, p["f_g2w"], p["f_g2b"]))
    f = f.reshape(bf * t, -1)
    f = jnp.matmul(f, p["f_pw"].T, precision=hi) + p["f_pb"]
    force_features = jnp.transpose(f.reshape(bf, t, -1), (1, 0, 2))

    q, k, v = force_features, image_features, image_features
    L, N, E = q.shape
    S = k.shape[0]
    hd = E // num_heads
    ip_w, ip_b = p["ip_w"], p["ip_b"]
    qp = jnp.matmul(q, ip_w[:E].T, precision=hi) + ip_b[:E]
    kp = jnp.matmul(k, ip_w[E:2 * E].T, precision=hi) + ip_b[E:2 * E]
    vp = jnp.matmul(v, ip_w[2 * E:].T, precision=hi) + ip_b[2 * E:]
    qh = jnp.transpose(qp.reshape(L, N * num_heads, hd), (1, 0, 2))
    kh = jnp.transpose(kp.reshape(S, N * num_heads, hd), (1, 0, 2))
    vh = jnp.transpose(vp.reshape(S, N * num_heads, hd), (1, 0, 2))
    s = jnp.einsum("bld,bsd->bls", qh, kh, precision=hi) / (hd ** 0.5)
    pr = jax.nn.softmax(s, axis=-1)
    o = jnp.einsum("bls,bsd->bld", pr, vh, precision=hi)
    o = jnp.transpose(o, (1, 0, 2)).reshape(L, N, E)
    attn = jnp.matmul(o, p["op_w"].T, precision=hi) + p["op_b"]
    attn = jnp.transpose(attn, (1, 0, 2))
    h1 = jax.nn.relu(jnp.matmul(attn, p["fu1_w"].T, precision=hi) + p["fu1_b"])
    return jnp.matmul(h1, p["fu2_w"].T, precision=hi) + p["fu2_b"]


if __name__ == "__main__":
    key = jax.random.PRNGKey(0)
    keys = jax.random.split(key, 32)

    B, OBS, C, H, W = 2, 2, 3, 4, 4
    FORCE_DIM = 4
    HIDDEN = 128                  # == 128 * (H//4) * (W//4); attention embed dim
    NUM_HEADS = 4

    def uni(k, shape, fan_in):
        bnd = 1.0 / (fan_in ** 0.5)
        return jax.random.uniform(k, shape, F32, -bnd, bnd)

    p = {
        "img_w1": uni(keys[0], (64, C, 3, 3), C * 9),
        "img_b1": uni(keys[1], (64,), C * 9),
        "img_g1w": 1.0 + 0.1 * jax.random.normal(keys[2], (64,), F32),
        "img_g1b": 0.1 * jax.random.normal(keys[3], (64,), F32),
        "img_w2": uni(keys[4], (128, 64, 3, 3), 64 * 9),
        "img_b2": uni(keys[5], (128,), 64 * 9),
        "img_g2w": 1.0 + 0.1 * jax.random.normal(keys[6], (128,), F32),
        "img_g2b": 0.1 * jax.random.normal(keys[7], (128,), F32),
        "f_w1": uni(keys[8], (32, 1, 3), 3),
        "f_b1": uni(keys[9], (32,), 3),
        "f_g1w": 1.0 + 0.1 * jax.random.normal(keys[10], (32,), F32),
        "f_g1b": 0.1 * jax.random.normal(keys[11], (32,), F32),
        "f_w2": uni(keys[12], (64, 32, 3), 32 * 3),
        "f_b2": uni(keys[13], (64,), 32 * 3),
        "f_g2w": 1.0 + 0.1 * jax.random.normal(keys[14], (64,), F32),
        "f_g2b": 0.1 * jax.random.normal(keys[15], (64,), F32),
        "f_pw": uni(keys[16], (HIDDEN, 64 * FORCE_DIM), 64 * FORCE_DIM),
        "f_pb": uni(keys[17], (HIDDEN,), 64 * FORCE_DIM),
        "ip_w": uni(keys[18], (3 * HIDDEN, HIDDEN), HIDDEN),
        "ip_b": uni(keys[19], (3 * HIDDEN,), HIDDEN),
        "op_w": uni(keys[20], (HIDDEN, HIDDEN), HIDDEN),
        "op_b": uni(keys[21], (HIDDEN,), HIDDEN),
        "fu1_w": uni(keys[22], (HIDDEN, HIDDEN), HIDDEN),
        "fu1_b": uni(keys[23], (HIDDEN,), HIDDEN),
        "fu2_w": uni(keys[24], (HIDDEN, HIDDEN), HIDDEN),
        "fu2_b": uni(keys[25], (HIDDEN,), HIDDEN),
    }

    image_input = jax.random.normal(keys[26], (B * OBS, C, H, W), F32)
    force_input = jax.random.normal(keys[27], (B, OBS, FORCE_DIM), F32)

    prep = prepare_params(p, batch=B, obs_horizon=OBS, image_dim=(C, H, W),
                          force_dim=FORCE_DIM, hidden_dim=HIDDEN,
                          num_heads=NUM_HEADS, num_groups=16)

    out = cross_attention_fusion_forward(image_input, force_input, prep)
    out = jax.block_until_ready(out)

    ref = _reference_forward(image_input, force_input, p, OBS, NUM_HEADS)
    assert out.shape == (B, OBS, HIDDEN), out.shape
    err = float(jnp.max(jnp.abs(out - ref)))
    assert jnp.allclose(out, ref, atol=1e-2, rtol=1e-2), err

    print("KERNEL_OK")
</pallas_src>

<mosaic_0001>
module attributes {stable_mosaic.version = 11 : i64} {
  func.func @kernel(%arg0: memref<64x27xf32, #tpu.memory_space<vmem>>, %arg1: memref<27x64xf32, #tpu.memory_space<vmem>>, %arg2: memref<1x64xf32, #tpu.memory_space<vmem>>, %arg3: memref<1x64xf32, #tpu.memory_space<vmem>>, %arg4: memref<1x64xf32, #tpu.memory_space<vmem>>, %arg5: memref<64x16xf32, #tpu.memory_space<vmem>>, %arg6: memref<16x64xf32, #tpu.memory_space<vmem>>, %arg7: memref<4x64xf32, #tpu.memory_space<vmem>>, %arg8: memref<64x4xf32, #tpu.memory_space<vmem>>, %arg9: memref<16x64xf32, #tpu.memory_space<vmem>>, %arg10: memref<9x64x128xf32, #tpu.memory_space<vmem>>, %arg11: memref<9x16x1xf32, #tpu.memory_space<vmem>>, %arg12: memref<1x128xf32, #tpu.memory_space<vmem>>, %arg13: memref<1x128xf32, #tpu.memory_space<vmem>>, %arg14: memref<1x128xf32, #tpu.memory_space<vmem>>, %arg15: memref<128x16xf32, #tpu.memory_space<vmem>>, %arg16: memref<16x128xf32, #tpu.memory_space<vmem>>, %arg17: memref<4x16xf32, #tpu.memory_space<vmem>>, %arg18: memref<16x4xf32, #tpu.memory_space<vmem>>, %arg19: memref<16x3xf32, #tpu.memory_space<vmem>>, %arg20: memref<3x32xf32, #tpu.memory_space<vmem>>, %arg21: memref<1x32xf32, #tpu.memory_space<vmem>>, %arg22: memref<1x32xf32, #tpu.memory_space<vmem>>, %arg23: memref<1x32xf32, #tpu.memory_space<vmem>>, %arg24: memref<32x16xf32, #tpu.memory_space<vmem>>, %arg25: memref<16x32xf32, #tpu.memory_space<vmem>>, %arg26: memref<3x32x64xf32, #tpu.memory_space<vmem>>, %arg27: memref<3x16x1xf32, #tpu.memory_space<vmem>>, %arg28: memref<1x64xf32, #tpu.memory_space<vmem>>, %arg29: memref<1x64xf32, #tpu.memory_space<vmem>>, %arg30: memref<1x64xf32, #tpu.memory_space<vmem>>, %arg31: memref<64x16xf32, #tpu.memory_space<vmem>>, %arg32: memref<16x64xf32, #tpu.memory_space<vmem>>, %arg33: memref<4x16xf32, #tpu.memory_space<vmem>>, %arg34: memref<16x4xf32, #tpu.memory_space<vmem>>, %arg35: memref<4x64x128xf32, #tpu.memory_space<vmem>>, %arg36: memref<1x128xf32, #tpu.memory_space<vmem>>, %arg37: memref<128x128xf32, #tpu.memory_space<vmem>>, %arg38: memref<1x128xf32, #tpu.memory_space<vmem>>, %arg39: memref<128x128xf32, #tpu.memory_space<vmem>>, %arg40: memref<1x128xf32, #tpu.memory_space<vmem>>, %arg41: memref<128x128xf32, #tpu.memory_space<vmem>>, %arg42: memref<1x128xf32, #tpu.memory_space<vmem>>, %arg43: memref<4x4xf32, #tpu.memory_space<vmem>>, %arg44: memref<128x128xf32, #tpu.memory_space<vmem>>, %arg45: memref<1x128xf32, #tpu.memory_space<vmem>>, %arg46: memref<128x128xf32, #tpu.memory_space<vmem>>, %arg47: memref<1x128xf32, #tpu.memory_space<vmem>>, %arg48: memref<128x128xf32, #tpu.memory_space<vmem>>, %arg49: memref<1x128xf32, #tpu.memory_space<vmem>>, %arg50: memref<4x128xf32, #tpu.memory_space<vmem>>, %arg51: memref<16x128xf32, #tpu.memory_space<vmem>>, %arg52: memref<16x64xf32, #tpu.memory_space<vmem>>, %arg53: memref<4x128xf32, #tpu.memory_space<vmem>>) attributes {dimension_semantics = [], scalar_prefetch = 0 : i64, scratch_operands = 3 : i64, tpu.core_type = #tpu.core_type<tc>} {
    %c0 = arith.constant 0 : index
    %c0_0 = arith.constant 0 : index
    %0 = vector.load %arg0[%c0, %c0_0] : memref<64x27xf32, #tpu.memory_space<vmem>>, vector<64x27xf32>
    %c0_1 = arith.constant 0 : index
    %c0_2 = arith.constant 0 : index
    %1 = vector.load %arg1[%c0_1, %c0_2] : memref<27x64xf32, #tpu.memory_space<vmem>>, vector<27x64xf32>
    %cst = arith.constant dense<0.000000e+00> : vector<64x64xf32>
    %2 = tpu.matmul %0, %1, %cst {dimension_numbers = #tpu.dot_dimension_numbers<[1], [0], [0], [1], [0, 0, 1, 1], [], []>} : vector<64x27xf32>, vector<27x64xf32>, vector<64x64xf32> -> vector<64x64xf32>
    %c0_3 = arith.constant 0 : index
    %c0_4 = arith.constant 0 : index
    %3 = vector.load %arg2[%c0_3, %c0_4] : memref<1x64xf32, #tpu.memory_space<vmem>>, vector<1x64xf32>
    %4 = vector.broadcast %3 : vector<1x64xf32> to vector<64x64xf32>
    %5 = arith.addf %2, %4 : vector<64x64xf32>
    %c0_5 = arith.constant 0 : index
    %c0_6 = arith.constant 0 : index
    %6 = vector.load %arg5[%c0_5, %c0_6] : memref<64x16xf32, #tpu.memory_space<vmem>>, vector<64x16xf32>
    %c0_7 = arith.constant 0 : index
    %c0_8 = arith.constant 0 : index
    %7 = vector.load %arg6[%c0_7, %c0_8] : memref<16x64xf32, #tpu.memory_space<vmem>>, vector<16x64xf32>
    %c0_9 = arith.constant 0 : index
    %c0_10 = arith.constant 0 : index
    %8 = vector.load %arg7[%c0_9, %c0_10] : memref<4x64xf32, #tpu.memory_space<vmem>>, vector<4x64xf32>
    %c0_11 = arith.constant 0 : index
    %c0_12 = arith.constant 0 : index
    %9 = vector.load %arg8[%c0_11, %c0_12] : memref<64x4xf32, #tpu.memory_space<vmem>>, vector<64x4xf32>
    %c0_13 = arith.constant 0 : index
    %c0_14 = arith.constant 0 : index
    %10 = vector.load %arg3[%c0_13, %c0_14] : memref<1x64xf32, #tpu.memory_space<vmem>>, vector<1x64xf32>
    %c0_15 = arith.constant 0 : index
    %c0_16 = arith.constant 0 : index
    %11 = vector.load %arg4[%c0_15, %c0_16] : memref<1x64xf32, #tpu.memory_space<vmem>>, vector<1x64xf32>
    %cst_17 = arith.constant dense<0.000000e+00> : vector<64x16xf32>
    %12 = tpu.matmul %5, %6, %cst_17 {dimension_numbers = #tpu.dot_dimension_numbers<[1], [0], [0], [1], [0, 0, 1, 1], [], []>} : vector<64x64xf32>, vector<64x16xf32>, vector<64x16xf32> -> vector<64x16xf32>
    %cst_18 = arith.constant dense<0.000000e+00> : vector<4x16xf32>
    %13 = tpu.matmul %8, %12, %cst_18 {dimension_numbers = #tpu.dot_dimension_numbers<[1], [0], [0], [1], [0, 0, 1, 1], [], []>} : vector<4x64xf32>, vector<64x16xf32>, vector<4x16xf32> -> vector<4x16xf32>
    %cst_19 = arith.constant 1.562500e-02 : f32
    %14 = vector.broadcast %cst_19 : f32 to vector<4x16xf32>
    %15 = arith.mulf %13, %14 : vector<4x16xf32>
    %cst_20 = arith.constant dense<0.000000e+00> : vector<64x16xf32>
    %16 = tpu.matmul %9, %15, %cst_20 {dimension_numbers = #tpu.dot_dimension_numbers<[1], [0], [0], [1], [0, 0, 1, 1], [], []>} : vector<64x4xf32>, vector<4x16xf32>, vector<64x16xf32> -> vector<64x16xf32>
    %cst_21 = arith.constant dense<0.000000e+00> : vector<64x64xf32>
    %17 = tpu.matmul %16, %7, %cst_21 {dimension_numbers = #tpu.dot_dimension_numbers<[1], [0], [0], [1], [0, 0, 1, 1], [], []>} : vector<64x16xf32>, vector<16x64xf32>, vector<64x64xf32> -> vector<64x64xf32>
    %18 = arith.subf %5, %17 : vector<64x64xf32>
    %19 = arith.mulf %18, %18 : vector<64x64xf32>
    %cst_22 = arith.constant dense<0.000000e+00> : vector<64x16xf32>
    %20 = tpu.matmul %19, %6, %cst_22 {dimension_numbers = #tpu.dot_dimension_numbers<[1], [0], [0], [1], [0, 0, 1, 1], [], []>} : vector<64x64xf32>, vector<64x16xf32>, vector<64x16xf32> -> vector<64x16xf32>
    %cst_23 = arith.constant dense<0.000000e+00> : vector<4x16xf32>
    %21 = tpu.matmul %8, %20, %cst_23 {dimension_numbers = #tpu.dot_dimension_numbers<[1], [0], [0], [1], [0, 0, 1, 1], [], []>} : vector<4x64xf32>, vector<64x16xf32>, vector<4x16xf32> -> vector<4x16xf32>
    %cst_24 = arith.constant 1.562500e-02 : f32
    %22 = vector.broadcast %cst_24 : f32 to vector<4x16xf32>
    %23 = arith.mulf %21, %22 : vector<4x16xf32>
    %cst_25 = arith.constant 9.99999974E-6 : f32
    %24 = vector.broadcast %cst_25 : f32 to vector<4x16xf32>
    %25 = arith.addf %23, %24 : vector<4x16xf32>
    %26 = math.rsqrt %25 : vector<4x16xf32>
    %cst_26 = arith.constant dense<0.000000e+00> : vector<64x16xf32>
    %27 = tpu.matmul %9, %26, %cst_26 {dimension_numbers = #tpu.dot_dimension_numbers<[1], [0], [0], [1], [0, 0, 1, 1], [], []>} : vector<64x4xf32>, vector<4x16xf32>, vector<64x16xf32> -> vector<64x16xf32>
    %cst_27 = arith.constant dense<0.000000e+00> : vector<64x64xf32>
    %28 = tpu.matmul %27, %7, %cst_27 {dimension_numbers = #tpu.dot_dimension_numbers<[1], [0], [0], [1], [0, 0, 1, 1], [], []>} : vector<64x16xf32>, vector<16x64xf32>, vector<64x64xf32> -> vector<64x64xf32>
    %29 = arith.mulf %18, %28 : vector<64x64xf32>
    %30 = vector.broadcast %10 : vector<1x64xf32> to vector<64x64xf32>
    %31 = arith.mulf %29, %30 : vector<64x64xf32>
    %32 = vector.broadcast %11 : vector<1x64xf32> to vector<64x64xf32>
    %33 = arith.addf %31, %32 : vector<64x64xf32>
    %cst_28 = arith.constant 0.000000e+00 : f32
    %34 = vector.broadcast %cst_28 : f32 to vector<64x64xf32>
    %35 = arith.maximumf %33, %34 : vector<64x64xf32>
    %c63_i32 = arith.constant 63 : i32
    %36 = tpu.dynamic_rotate %35 by %c63_i32 dim 0 : vector<64x64xf32>, i32 -> vector<64x64xf32>
    %37 = arith.maximumf %35, %36 : vector<64x64xf32>
    %c60_i32 = arith.constant 60 : i32
    %38 = tpu.dynamic_rotate %37 by %c60_i32 dim 0 : vector<64x64xf32>, i32 -> vector<64x64xf32>
    %39 = arith.maximumf %37, %38 : vector<64x64xf32>
    %c0_29 = arith.constant 0 : index
    %c0_30 = arith.constant 0 : index
    %40 = vector.load %arg9[%c0_29, %c0_30] : memref<16x64xf32, #tpu.memory_space<vmem>>, vector<16x64xf32>
    %cst_31 = arith.constant dense<0.000000e+00> : vector<16x64xf32>
    %41 = tpu.matmul %40, %39, %cst_31 {dimension_numbers = #tpu.dot_dimension_numbers<[1], [0], [0], [1], [0, 0, 1, 1], [], []>} : vector<16x64xf32>, vector<64x64xf32>, vector<16x64xf32> -> vector<16x64xf32>
    %c0_32 = arith.constant 0 : index
    %c0_33 = arith.constant 0 : index
    %42 = vector.load %arg12[%c0_32, %c0_33] : memref<1x128xf32, #tpu.memory_space<vmem>>, vector<1x128xf32>
    %cst_34 = arith.constant 0.000000e+00 : f32
    %43 = vector.broadcast %cst_34 : f32 to vector<16x128xf32>
    %44 = vector.broadcast %42 : vector<1x128xf32> to vector<16x128xf32>
    %45 = arith.addf %43, %44 : vector<16x128xf32>
    %c3_i32 = arith.constant 3 : i32
    %46 = tpu.dynamic_rotate %41 by %c3_i32 dim 0 : vector<16x64xf32>, i32 -> vector<16x64xf32>
    %c0_35 = arith.constant 0 : index
    %c0_36 = arith.constant 0 : index
    %c0_37 = arith.constant 0 : index
    %47 = vector.load %arg11[%c0_35, %c0_36, %c0_37] : memref<9x16x1xf32, #tpu.memory_space<vmem>>, vector<1x16x1xf32>
    %48 = vector.shape_cast %47 : vector<1x16x1xf32> to vector<16x1xf32>
    %49 = vector.broadcast %48 : vector<16x1xf32> to vector<16x64xf32>
    %50 = arith.mulf %46, %49 : vector<16x64xf32>
    %c0_38 = arith.constant 0 : index
    %c0_39 = arith.constant 0 : index
    %c0_40 = arith.constant 0 : index
    %51 = vector.load %arg10[%c0_38, %c0_39, %c0_40] : memref<9x64x128xf32, #tpu.memory_space<vmem>>, vector<1x64x128xf32>
    %52 = vector.shape_cast %51 : vector<1x64x128xf32> to vector<64x128xf32>
    %cst_41 = arith.constant dense<0.000000e+00> : vector<16x128xf32>
    %53 = tpu.matmul %50, %52, %cst_41 {dimension_numbers = #tpu.dot_dimension_numbers<[1], [0], [0], [1], [0, 0, 1, 1], [], []>} : vector<16x64xf32>, vector<64x128xf32>, vector<16x128xf32> -> vector<16x128xf32>
    %54 = arith.addf %45, %53 : vector<16x128xf32>
    %c2_i32 = arith.constant 2 : i32
    %55 = tpu.dynamic_rotate %41 by %c2_i32 dim 0 : vector<16x64xf32>, i32 -> vector<16x64xf32>
    %c1 = arith.constant 1 : index
    %c0_42 = arith.constant 0 : index
    %c0_43 = arith.constant 0 : index
    %56 = vector.load %arg11[%c1, %c0_42, %c0_43] : memref<9x16x1xf32, #tpu.memory_space<vmem>>, vector<1x16x1xf32>
    %57 = vector.shape_cast %56 : vector<1x16x1xf32> to vector<16x1xf32>
    %58 = vector.broadcast %57 : vector<16x1xf32> to vector<16x64xf32>
    %59 = arith.mulf %55, %58 : vector<16x64xf32>
    %c1_44 = arith.constant 1 : index
    %c0_45 = arith.constant 0 : index
    %c0_46 = arith.constant 0 : index
    %60 = vector.load %arg10[%c1_44, %c0_45, %c0_46] : memref<9x64x128xf32, #tpu.memory_space<vmem>>, vector<1x64x128xf32>
    %61 = vector.shape_cast %60 : vector<1x64x128xf32> to vector<64x128xf32>
    %cst_47 = arith.constant dense<0.000000e+00> : vector<16x128xf32>
    %62 = tpu.matmul %59, %61, %cst_47 {dimension_numbers = #tpu.dot_dimension_numbers<[1], [0], [0], [1], [0, 0, 1, 1], [], []>} : vector<16x64xf32>, vector<64x128xf32>, vector<16x128xf32> -> vector<16x128xf32>
    %63 = arith.addf %54, %62 : vector<16x128xf32>
    %c1_i32 = arith.constant 1 : i32
    %64 = tpu.dynamic_rotate %41 by %c1_i32 dim 0 : vector<16x64xf32>, i32 -> vector<16x64xf32>
    %c2 = arith.constant 2 : index
    %c0_48 = arith.constant 0 : index
    %c0_49 = arith.constant 0 : index
    %65 = vector.load %arg11[%c2, %c0_48, %c0_49] : memref<9x16x1xf32, #tpu.memory_space<vmem>>, vector<1x16x1xf32>
    %66 = vector.shape_cast %65 : vector<1x16x1xf32> to vector<16x1xf32>
    %67 = vector.broadcast %66 : vector<16x1xf32> to vector<16x64xf32>
    %68 = arith.mulf %64, %67 : vector<16x64xf32>
    %c2_50 = arith.constant 2 : index
    %c0_51 = arith.constant 0 : index
    %c0_52 = arith.constant 0 : index
    %69 = vector.load %arg10[%c2_50, %c0_51, %c0_52] : memref<9x64x128xf32, #tpu.memory_space<vmem>>, vector<1x64x128xf32>
    %70 = vector.shape_cast %69 : vector<1x64x128xf32> to vector<64x128xf32>
    %cst_53 = arith.constant dense<0.000000e+00> : vector<16x128xf32>
    %71 = tpu.matmul %68, %70, %cst_53 {dimension_numbers = #tpu.dot_dimension_numbers<[1], [0], [0], [1], [0, 0, 1, 1], [], []>} : vector<16x64xf32>, vector<64x128xf32>, vector<16x128xf32> -> vector<16x128xf32>
    %72 = arith.addf %63, %71 : vector<16x128xf32>
    %c1_i32_54 = arith.constant 1 : i32
    %73 = tpu.dynamic_rotate %41 by %c1_i32_54 dim 0 : vector<16x64xf32>, i32 -> vector<16x64xf32>
    %c3 = arith.constant 3 : index
    %c0_55 = arith.constant 0 : index
    %c0_56 = arith.constant 0 : index
    %74 = vector.load %arg11[%c3, %c0_55, %c0_56] : memref<9x16x1xf32, #tpu.memory_space<vmem>>, vector<1x16x1xf32>
    %75 = vector.shape_cast %74 : vector<1x16x1xf32> to vector<16x1xf32>
    %76 = vector.broadcast %75 : vector<16x1xf32> to vector<16x64xf32>
    %77 = arith.mulf %73, %76 : vector<16x64xf32>
    %c3_57 = arith.constant 3 : index
    %c0_58 = arith.constant 0 : index
    %c0_59 = arith.constant 0 : index
    %78 = vector.load %arg10[%c3_57, %c0_58, %c0_59] : memref<9x64x128xf32, #tpu.memory_space<vmem>>, vector<1x64x128xf32>
    %79 = vector.shape_cast %78 : vector<1x64x128xf32> to vector<64x128xf32>
    %cst_60 = arith.constant dense<0.000000e+00> : vector<16x128xf32>
    %80 = tpu.matmul %77, %79, %cst_60 {dimension_numbers = #tpu.dot_dimension_numbers<[1], [0], [0], [1], [0, 0, 1, 1], [], []>} : vector<16x64xf32>, vector<64x128xf32>, vector<16x128xf32> -> vector<16x128xf32>
    %81 = arith.addf %72, %80 : vector<16x128xf32>
    %c4 = arith.constant 4 : index
    %c0_61 = arith.constant 0 : index
    %c0_62 = arith.constant 0 : index
    %82 = vector.load %arg11[%c4, %c0_61, %c0_62] : memref<9x16x1xf32, #tpu.memory_space<vmem>>, vector<1x16x1xf32>
    %83 = vector.shape_cast %82 : vector<1x16x1xf32> to vector<16x1xf32>
    %84 = vector.broadcast %83 : vector<16x1xf32> to vector<16x64xf32>
    %85 = arith.mulf %41, %84 : vector<16x64xf32>
    %c4_63 = arith.constant 4 : index
    %c0_64 = arith.constant 0 : index
    %c0_65 = arith.constant 0 : index
    %86 = vector.load %arg10[%c4_63, %c0_64, %c0_65] : memref<9x64x128xf32, #tpu.memory_space<vmem>>, vector<1x64x128xf32>
    %87 = vector.shape_cast %86 : vector<1x64x128xf32> to vector<64x128xf32>
    %cst_66 = arith.constant dense<0.000000e+00> : vector<16x128xf32>
    %88 = tpu.matmul %85, %87, %cst_66 {dimension_numbers = #tpu.dot_dimension_numbers<[1], [0], [0], [1], [0, 0, 1, 1], [], []>} : vector<16x64xf32>, vector<64x128xf32>, vector<16x128xf32> -> vector<16x128xf32>
    %89 = arith.addf %81, %88 : vector<16x128xf32>
    %c15_i32 = arith.constant 15 : i32
    %90 = tpu.dynamic_rotate %41 by %c15_i32 dim 0 : vector<16x64xf32>, i32 -> vector<16x64xf32>
    %c5 = arith.constant 5 : index
    %c0_67 = arith.constant 0 : index
    %c0_68 = arith.constant 0 : index
    %91 = vector.load %arg11[%c5, %c0_67, %c0_68] : memref<9x16x1xf32, #tpu.memory_space<vmem>>, vector<1x16x1xf32>
    %92 = vector.shape_cast %91 : vector<1x16x1xf32> to vector<16x1xf32>
    %93 = vector.broadcast %92 : vector<16x1xf32> to vector<16x64xf32>
    %94 = arith.mulf %90, %93 : vector<16x64xf32>
    %c5_69 = arith.constant 5 : index
    %c0_70 = arith.constant 0 : index
    %c0_71 = arith.constant 0 : index
    %95 = vector.load %arg10[%c5_69, %c0_70, %c0_71] : memref<9x64x128xf32, #tpu.memory_space<vmem>>, vector<1x64x128xf32>
    %96 = vector.shape_cast %95 : vector<1x64x128xf32> to vector<64x128xf32>
    %cst_72 = arith.constant dense<0.000000e+00> : vector<16x128xf32>
    %97 = tpu.matmul %94, %96, %cst_72 {dimension_numbers = #tpu.dot_dimension_numbers<[1], [0], [0], [1], [0, 0, 1, 1], [], []>} : vector<16x64xf32>, vector<64x128xf32>, vector<16x128xf32> -> vector<16x128xf32>
    %98 = arith.addf %89, %97 : vector<16x128xf32>
    %c15_i32_73 = arith.constant 15 : i32
    %99 = tpu.dynamic_rotate %41 by %c15_i32_73 dim 0 : vector<16x64xf32>, i32 -> vector<16x64xf32>
    %c6 = arith.constant 6 : index
    %c0_74 = arith.constant 0 : index
    %c0_75 = arith.constant 0 : index
    %100 = vector.load %arg11[%c6, %c0_74, %c0_75] : memref<9x16x1xf32, #tpu.memory_space<vmem>>, vector<1x16x1xf32>
    %101 = vector.shape_cast %100 : vector<1x16x1xf32> to vector<16x1xf32>
    %102 = vector.broadcast %101 : vector<16x1xf32> to vector<16x64xf32>
    %103 = arith.mulf %99, %102 : vector<16x64xf32>
    %c6_76 = arith.constant 6 : index
    %c0_77 = arith.constant 0 : index
    %c0_78 = arith.constant 0 : index
    %104 = vector.load %arg10[%c6_76, %c0_77, %c0_78] : memref<9x64x128xf32, #tpu.memory_space<vmem>>, vector<1x64x128xf32>
    %105 = vector.shape_cast %104 : vector<1x64x128xf32> to vector<64x128xf32>
    %cst_79 = arith.constant dense<0.000000e+00> : vector<16x128xf32>
    %106 = tpu.matmul %103, %105, %cst_79 {dimension_numbers = #tpu.dot_dimension_numbers<[1], [0], [0], [1], [0, 0, 1, 1], [], []>} : vector<16x64xf32>, vector<64x128xf32>, vector<16x128xf32> -> vector<16x128xf32>
    %107 = arith.addf %98, %106 : vector<16x128xf32>
    %c14_i32 = arith.constant 14 : i32
    %108 = tpu.dynamic_rotate %41 by %c14_i32 dim 0 : vector<16x64xf32>, i32 -> vector<16x64xf32>
    %c7 = arith.constant 7 : index
    %c0_80 = arith.constant 0 : index
    %c0_81 = arith.constant 0 : index
    %109 = vector.load %arg11[%c7, %c0_80, %c0_81] : memref<9x16x1xf32, #tpu.memory_space<vmem>>, vector<1x16x1xf32>
    %110 = vector.shape_cast %109 : vector<1x16x1xf32> to vector<16x1xf32>
    %111 = vector.broadcast %110 : vector<16x1xf32> to vector<16x64xf32>
    %112 = arith.mulf %108, %111 : vector<16x64xf32>
    %c7_82 = arith.constant 7 : index
    %c0_83 = arith.constant 0 : index
    %c0_84 = arith.constant 0 : index
    %113 = vector.load %arg10[%c7_82, %c0_83, %c0_84] : memref<9x64x128xf32, #tpu.memory_space<vmem>>, vector<1x64x128xf32>
    %114 = vector.shape_cast %113 : vector<1x64x128xf32> to vector<64x128xf32>
    %cst_85 = arith.constant dense<0.000000e+00> : vector<16x128xf32>
    %115 = tpu.matmul %112, %114, %cst_85 {dimension_numbers = #tpu.dot_dimension_numbers<[1], [0], [0], [1], [0, 0, 1, 1], [], []>} : vector<16x64xf32>, vector<64x128xf32>, vector<16x128xf32> -> vector<16x128xf32>
    %116 = arith.addf %107, %115 : vector<16x128xf32>
    %c13_i32 = arith.constant 13 : i32
    %117 = tpu.dynamic_rotate %41 by %c13_i32 dim 0 : vector<16x64xf32>, i32 -> vector<16x64xf32>
    %c8 = arith.constant 8 : index
    %c0_86 = arith.constant 0 : index
    %c0_87 = arith.constant 0 : index
    %118 = vector.load %arg11[%c8, %c0_86, %c0_87] : memref<9x16x1xf32, #tpu.memory_space<vmem>>, vector<1x16x1xf32>
    %119 = vector.shape_cast %118 : vector<1x16x1xf32> to vector<16x1xf32>
    %120 = vector.broadcast %119 : vector<16x1xf32> to vector<16x64xf32>
    %121 = arith.mulf %117, %120 : vector<16x64xf32>
    %c8_88 = arith.constant 8 : index
    %c0_89 = arith.constant 0 : index
    %c0_90 = arith.constant 0 : index
    %122 = vector.load %arg10[%c8_88, %c0_89, %c0_90] : memref<9x64x128xf32, #tpu.memory_space<vmem>>, vector<1x64x128xf32>
    %123 = vector.shape_cast %122 : vector<1x64x128xf32> to vector<64x128xf32>
    %cst_91 = arith.constant dense<0.000000e+00> : vector<16x128xf32>
    %124 = tpu.matmul %121, %123, %cst_91 {dimension_numbers = #tpu.dot_dimension_numbers<[1], [0], [0], [1], [0, 0, 1, 1], [], []>} : vector<16x64xf32>, vector<64x128xf32>, vector<16x128xf32> -> vector<16x128xf32>
    %125 = arith.addf %116, %124 : vector<16x128xf32>
    %c0_92 = arith.constant 0 : index
    %c0_93 = arith.constant 0 : index
    %126 = vector.load %arg15[%c0_92, %c0_93] : memref<128x16xf32, #tpu.memory_space<vmem>>, vector<128x16xf32>
    %c0_94 = arith.constant 0 : index
    %c0_95 = arith.constant 0 : index
    %127 = vector.load %arg16[%c0_94, %c0_95] : memref<16x128xf32, #tpu.memory_space<vmem>>, vector<16x128xf32>
    %c0_96 = arith.constant 0 : index
    %c0_97 = arith.constant 0 : index
    %128 = vector.load %arg17[%c0_96, %c0_97] : memref<4x16xf32, #tpu.memory_space<vmem>>, vector<4x16xf32>
    %c0_98 = arith.constant 0 : index
    %c0_99 = arith.constant 0 : index
    %129 = vector.load %arg18[%c0_98, %c0_99] : memref<16x4xf32, #tpu.memory_space<vmem>>, vector<16x4xf32>
    %c0_100 = arith.constant 0 : index
    %c0_101 = arith.constant 0 : index
    %130 = vector.load %arg13[%c0_100, %c0_101] : memref<1x128xf32, #tpu.memory_space<vmem>>, vector<1x128xf32>
    %c0_102 = arith.constant 0 : index
    %c0_103 = arith.constant 0 : index
    %131 = vector.load %arg14[%c0_102, %c0_103] : memref<1x128xf32, #tpu.memory_space<vmem>>, vector<1x128xf32>
    %cst_104 = arith.constant dense<0.000000e+00> : vector<16x16xf32>
    %132 = tpu.matmul %125, %126, %cst_104 {dimension_numbers = #tpu.dot_dimension_numbers<[1], [0], [0], [1], [0, 0, 1, 1], [], []>} : vector<16x128xf32>, vector<128x16xf32>, vector<16x16xf32> -> vector<16x16xf32>
    %cst_105 = arith.constant dense<0.000000e+00> : vector<4x16xf32>
    %133 = tpu.matmul %128, %132, %cst_105 {dimension_numbers = #tpu.dot_dimension_numbers<[1], [0], [0], [1], [0, 0, 1, 1], [], []>} : vector<4x16xf32>, vector<16x16xf32>, vector<4x16xf32> -> vector<4x16xf32>
    %cst_106 = arith.constant 3.125000e-02 : f32
    %134 = vector.broadcast %cst_106 : f32 to vector<4x16xf32>
    %135 = arith.mulf %133, %134 : vector<4x16xf32>
    %cst_107 = arith.constant dense<0.000000e+00> : vector<16x16xf32>
    %136 = tpu.matmul %129, %135, %cst_107 {dimension_numbers = #tpu.dot_dimension_numbers<[1], [0], [0], [1], [0, 0, 1, 1], [], []>} : vector<16x4xf32>, vector<4x16xf32>, vector<16x16xf32> -> vector<16x16xf32>
    %cst_108 = arith.constant dense<0.000000e+00> : vector<16x128xf32>
    %137 = tpu.matmul %136, %127, %cst_108 {dimension_numbers = #tpu.dot_dimension_numbers<[1], [0], [0], [1], [0, 0, 1, 1], [], []>} : vector<16x16xf32>, vector<16x128xf32>, vector<16x128xf32> -> vector<16x128xf32>
    %138 = arith.subf %125, %137 : vector<16x128xf32>
    %139 = arith.mulf %138, %138 : vector<16x128xf32>
    %cst_109 = arith.constant dense<0.000000e+00> : vector<16x16xf32>
    %140 = tpu.matmul %139, %126, %cst_109 {dimension_numbers = #tpu.dot_dimension_numbers<[1], [0], [0], [1], [0, 0, 1, 1], [], []>} : vector<16x128xf32>, vector<128x16xf32>, vector<16x16xf32> -> vector<16x16xf32>
    %cst_110 = arith.constant dense<0.000000e+00> : vector<4x16xf32>
    %141 = tpu.matmul %128, %140, %cst_110 {dimension_numbers = #tpu.dot_dimension_numbers<[1], [0], [0], [1], [0, 0, 1, 1], [], []>} : vector<4x16xf32>, vector<16x16xf32>, vector<4x16xf32> -> vector<4x16xf32>
    %cst_111 = arith.constant 3.125000e-02 : f32
    %142 = vector.broadcast %cst_111 : f32 to vector<4x16xf32>
    %143 = arith.mulf %141, %142 : vector<4x16xf32>
    %cst_112 = arith.constant 9.99999974E-6 : f32
    %144 = vector.broadcast %cst_112 : f32 to vector<4x16xf32>
    %145 = arith.addf %143, %144 : vector<4x16xf32>
    %146 = math.rsqrt %145 : vector<4x16xf32>
    %cst_113 = arith.constant dense<0.000000e+00> : vector<16x16xf32>
    %147 = tpu.matmul %129, %146, %cst_113 {dimension_numbers = #tpu.dot_dimension_numbers<[1], [0], [0], [1], [0, 0, 1, 1], [], []>} : vector<16x4xf32>, vector<4x16xf32>, vector<16x16xf32> -> vector<16x16xf32>
    %cst_114 = arith.constant dense<0.000000e+00> : vector<16x128xf32>
    %148 = tpu.matmul %147, %127, %cst_114 {dimension_numbers = #tpu.dot_dimension_numbers<[1], [0], [0], [1], [0, 0, 1, 1], [], []>} : vector<16x16xf32>, vector<16x128xf32>, vector<16x128xf32> -> vector<16x128xf32>
    %149 = arith.mulf %138, %148 : vector<16x128xf32>
    %150 = vector.broadcast %130 : vector<1x128xf32> to vector<16x128xf32>
    %151 = arith.mulf %149, %150 : vector<16x128xf32>
    %152 = vector.broadcast %131 : vector<1x128xf32> to vector<16x128xf32>
    %153 = arith.addf %151, %152 : vector<16x128xf32>
    %cst_115 = arith.constant 0.000000e+00 : f32
    %154 = vector.broadcast %cst_115 : f32 to vector<16x128xf32>
    %155 = arith.maximumf %153, %154 : vector<16x128xf32>
    %c0_116 = arith.constant 0 : index
    %c0_117 = arith.constant 0 : index
    %156 = vector.load %arg51[%c0_116, %c0_117] : memref<16x128xf32, #tpu.memory_space<vmem>>, vector<16x128xf32>
    tpu.vector_store %arg51[%c0_116, %c0_117], %155 {strides = array<i32>} : memref<16x128xf32, #tpu.memory_space<vmem>>, vector<16x128xf32>,
    %c0_118 = arith.constant 0 : index
    %c0_119 = arith.constant 0 : index
    %157 = tpu.strided_load %arg51[%c0_118, %c0_119] {strides = array<i32: 4, 1>} : memref<16x128xf32, #tpu.memory_space<vmem>>, vector<4x128xf32>
    %c1_120 = arith.constant 1 : index
    %c0_121 = arith.constant 0 : index
    %158 = tpu.strided_load %arg51[%c1_120, %c0_121] {strides = array<i32: 4, 1>} : memref<16x128xf32, #tpu.memory_space<vmem>>, vector<4x128xf32>
    %159 = arith.maximumf %157, %158 : vector<4x128xf32>
    %c2_122 = arith.constant 2 : index
    %c0_123 = arith.constant 0 : index
    %160 = tpu.strided_load %arg51[%c2_122, %c0_123] {strides = array<i32: 4, 1>} : memref<16x128xf32, #tpu.memory_space<vmem>>, vector<4x128xf32>
    %161 = arith.maximumf %159, %160 : vector<4x128xf32>
    %c3_124 = arith.constant 3 : index
    %c0_125 = arith.constant 0 : index
    %162 = tpu.strided_load %arg51[%c3_124, %c0_125] {strides = array<i32: 4, 1>} : memref<16x128xf32, #tpu.memory_space<vmem>>, vector<4x128xf32>
    %163 = arith.maximumf %161, %162 : vector<4x128xf32>
    %c0_126 = arith.constant 0 : index
    %c0_127 = arith.constant 0 : index
    %164 = vector.load %arg19[%c0_126, %c0_127] : memref<16x3xf32, #tpu.memory_space<vmem>>, vector<16x3xf32>
    %c0_128 = arith.constant 0 : index
    %c0_129 = arith.constant 0 : index
    %165 = vector.load %arg20[%c0_128, %c0_129] : memref<3x32xf32, #tpu.memory_space<vmem>>, vector<3x32xf32>
    %cst_130 = arith.constant dense<0.000000e+00> : vector<16x32xf32>
    %166 = tpu.matmul %164, %165, %cst_130 {dimension_numbers = #tpu.dot_dimension_numbers<[1], [0], [0], [1], [0, 0, 1, 1], [], []>} : vector<16x3xf32>, vector<3x32xf32>, vector<16x32xf32> -> vector<16x32xf32>
    %c0_131 = arith.constant 0 : index
    %c0_132 = arith.constant 0 : index
    %167 = vector.load %arg21[%c0_131, %c0_132] : memref<1x32xf32, #tpu.memory_space<vmem>>, vector<1x32xf32>
    %168 = vector.broadcast %167 : vector<1x32xf32> to vector<16x32xf32>
    %169 = arith.addf %166, %168 : vector<16x32xf32>
    %c0_133 = arith.constant 0 : index
    %c0_134 = arith.constant 0 : index
    %170 = vector.load %arg24[%c0_133, %c0_134] : memref<32x16xf32, #tpu.memory_space<vmem>>, vector<32x16xf32>
    %c0_135 = arith.constant 0 : index
    %c0_136 = arith.constant 0 : index
    %171 = vector.load %arg25[%c0_135, %c0_136] : memref<16x32xf32, #tpu.memory_space<vmem>>, vector<16x32xf32>
    %c0_137 = arith.constant 0 : index
    %c0_138 = arith.constant 0 : index
    %172 = vector.load %arg33[%c0_137, %c0_138] : memref<4x16xf32, #tpu.memory_space<vmem>>, vector<4x16xf32>
    %c0_139 = arith.constant 0 : index
    %c0_140 = arith.constant 0 : index
    %173 = vector.load %arg34[%c0_139, %c0_140] : memref<16x4xf32, #tpu.memory_space<vmem>>, vector<16x4xf32>
    %c0_141 = arith.constant 0 : index
    %c0_142 = arith.constant 0 : index
    %174 = vector.load %arg22[%c0_141, %c0_142] : memref<1x32xf32, #tpu.memory_space<vmem>>, vector<1x32xf32>
    %c0_143 = arith.constant 0 : index
    %c0_144 = arith.constant 0 : index
    %175 = vector.load %arg23[%c0_143, %c0_144] : memref<1x32xf32, #tpu.memory_space<vmem>>, vector<1x32xf32>
    %cst_145 = arith.constant dense<0.000000e+00> : vector<16x16xf32>
    %176 = tpu.matmul %169, %170, %cst_145 {dimension_numbers = #tpu.dot_dimension_numbers<[1], [0], [0], [1], [0, 0, 1, 1], [], []>} : vector<16x32xf32>, vector<32x16xf32>, vector<16x16xf32> -> vector<16x16xf32>
    %cst_146 = arith.constant dense<0.000000e+00> : vector<4x16xf32>
    %177 = tpu.matmul %172, %176, %cst_146 {dimension_numbers = #tpu.dot_dimension_numbers<[1], [0], [0], [1], [0, 0, 1, 1], [], []>} : vector<4x16xf32>, vector<16x16xf32>, vector<4x16xf32> -> vector<4x16xf32>
    %cst_147 = arith.constant 1.250000e-01 : f32
    %178 = vector.broadcast %cst_147 : f32 to vector<4x16xf32>
    %179 = arith.mulf %177, %178 : vector<4x16xf32>
    %cst_148 = arith.constant dense<0.000000e+00> : vector<16x16xf32>
    %180 = tpu.matmul %173, %179, %cst_148 {dimension_numbers = #tpu.dot_dimension_numbers<[1], [0], [0], [1], [0, 0, 1, 1], [], []>} : vector<16x4xf32>, vector<4x16xf32>, vector<16x16xf32> -> vector<16x16xf32>
    %cst_149 = arith.constant dense<0.000000e+00> : vector<16x32xf32>
    %181 = tpu.matmul %180, %171, %cst_149 {dimension_numbers = #tpu.dot_dimension_numbers<[1], [0], [0], [1], [0, 0, 1, 1], [], []>} : vector<16x16xf32>, vector<16x32xf32>, vector<16x32xf32> -> vector<16x32xf32>
    %182 = arith.subf %169, %181 : vector<16x32xf32>
    %183 = arith.mulf %182, %182 : vector<16x32xf32>
    %cst_150 = arith.constant dense<0.000000e+00> : vector<16x16xf32>
    %184 = tpu.matmul %183, %170, %cst_150 {dimension_numbers = #tpu.dot_dimension_numbers<[1], [0], [0], [1], [0, 0, 1, 1], [], []>} : vector<16x32xf32>, vector<32x16xf32>, vector<16x16xf32> -> vector<16x16xf32>
    %cst_151 = arith.constant dense<0.000000e+00> : vector<4x16xf32>
    %185 = tpu.matmul %172, %184, %cst_151 {dimension_numbers = #tpu.dot_dimension_numbers<[1], [0], [0], [1], [0, 0, 1, 1], [], []>} : vector<4x16xf32>, vector<16x16xf32>, vector<4x16xf32> -> vector<4x16xf32>
    %cst_152 = arith.constant 1.250000e-01 : f32
    %186 = vector.broadcast %cst_152 : f32 to vector<4x16xf32>
    %187 = arith.mulf %185, %186 : vector<4x16xf32>
    %cst_153 = arith.constant 9.99999974E-6 : f32
    %188 = vector.broadcast %cst_153 : f32 to vector<4x16xf32>
    %189 = arith.addf %187, %188 : vector<4x16xf32>
    %190 = math.rsqrt %189 : vector<4x16xf32>
    %cst_154 = arith.constant dense<0.000000e+00> : vector<16x16xf32>
    %191 = tpu.matmul %173, %190, %cst_154 {dimension_numbers = #tpu.dot_dimension_numbers<[1], [0], [0], [1], [0, 0, 1, 1], [], []>} : vector<16x4xf32>, vector<4x16xf32>, vector<16x16xf32> -> vector<16x16xf32>
    %cst_155 = arith.constant dense<0.000000e+00> : vector<16x32xf32>
    %192 = tpu.matmul %191, %171, %cst_155 {dimension_numbers = #tpu.dot_dimension_numbers<[1], [0], [0], [1], [0, 0, 1, 1], [], []>} : vector<16x16xf32>, vector<16x32xf32>, vector<16x32xf32> -> vector<16x32xf32>
    %193 = arith.mulf %182, %192 : vector<16x32xf32>
    %194 = vector.broadcast %174 : vector<1x32xf32> to vector<16x32xf32>
    %195 = arith.mulf %193, %194 : vector<16x32xf32>
    %196 = vector.broadcast %175 : vector<1x32xf32> to vector<16x32xf32>
    %197 = arith.addf %195, %196 : vector<16x32xf32>
    %cst_156 = arith.constant 0.000000e+00 : f32
    %198 = vector.broadcast %cst_156 : f32 to vector<16x32xf32>
    %199 = arith.maximumf %197, %198 : vector<16x32xf32>
    %c0_157 = arith.constant 0 : index
    %c0_158 = arith.constant 0 : index
    %200 = vector.load %arg28[%c0_157, %c0_158] : memref<1x64xf32, #tpu.memory_space<vmem>>, vector<1x64xf32>
    %cst_159 = arith.constant 0.000000e+00 : f32
    %201 = vector.broadcast %cst_159 : f32 to vector<16x64xf32>
    %202 = vector.broadcast %200 : vector<1x64xf32> to vector<16x64xf32>
    %203 = arith.addf %201, %202 : vector<16x64xf32>
    %c1_i32_160 = arith.constant 1 : i32
    %204 = tpu.dynamic_rotate %199 by %c1_i32_160 dim 0 : vector<16x32xf32>, i32 -> vector<16x32xf32>
    %c0_161 = arith.constant 0 : index
    %c0_162 = arith.constant 0 : index
    %c0_163 = arith.constant 0 : index
    %205 = vector.load %arg27[%c0_161, %c0_162, %c0_163] : memref<3x16x1xf32, #tpu.memory_space<vmem>>, vector<1x16x1xf32>
    %206 = vector.shape_cast %205 : vector<1x16x1xf32> to vector<16x1xf32>
    %207 = vector.broadcast %206 : vector<16x1xf32> to vector<16x32xf32>
    %208 = arith.mulf %204, %207 : vector<16x32xf32>
    %c0_164 = arith.constant 0 : index
    %c0_165 = arith.constant 0 : index
    %c0_166 = arith.constant 0 : index
    %209 = vector.load %arg26[%c0_164, %c0_165, %c0_166] : memref<3x32x64xf32, #tpu.memory_space<vmem>>, vector<1x32x64xf32>
    %210 = vector.shape_cast %209 : vector<1x32x64xf32> to vector<32x64xf32>
    %cst_167 = arith.constant dense<0.000000e+00> : vector<16x64xf32>
    %211 = tpu.matmul %208, %210, %cst_167 {dimension_numbers = #tpu.dot_dimension_numbers<[1], [0], [0], [1], [0, 0, 1, 1], [], []>} : vector<16x32xf32>, vector<32x64xf32>, vector<16x64xf32> -> vector<16x64xf32>
    %212 = arith.addf %203, %211 : vector<16x64xf32>
    %c1_168 = arith.constant 1 : index
    %c0_169 = arith.constant 0 : index
    %c0_170 = arith.constant 0 : index
    %213 = vector.load %arg27[%c1_168, %c0_169, %c0_170] : memref<3x16x1xf32, #tpu.memory_space<vmem>>, vector<1x16x1xf32>
    %214 = vector.shape_cast %213 : vector<1x16x1xf32> to vector<16x1xf32>
    %215 = vector.broadcast %214 : vector<16x1xf32> to vector<16x32xf32>
    %216 = arith.mulf %199, %215 : vector<16x32xf32>
    %c1_171 = arith.constant 1 : index
    %c0_172 = arith.constant 0 : index
    %c0_173 = arith.constant 0 : index
    %217 = vector.load %arg26[%c1_171, %c0_172, %c0_173] : memref<3x32x64xf32, #tpu.memory_space<vmem>>, vector<1x32x64xf32>
    %218 = vector.shape_cast %217 : vector<1x32x64xf32> to vector<32x64xf32>
    %cst_174 = arith.constant dense<0.000000e+00> : vector<16x64xf32>
    %219 = tpu.matmul %216, %218, %cst_174 {dimension_numbers = #tpu.dot_dimension_numbers<[1], [0], [0], [1], [0, 0, 1, 1], [], []>} : vector<16x32xf32>, vector<32x64xf32>, vector<16x64xf32> -> vector<16x64xf32>
    %220 = arith.addf %212, %219 : vector<16x64xf32>
    %c15_i32_175 = arith.constant 15 : i32
    %221 = tpu.dynamic_rotate %199 by %c15_i32_175 dim 0 : vector<16x32xf32>, i32 -> vector<16x32xf32>
    %c2_176 = arith.constant 2 : index
    %c0_177 = arith.constant 0 : index
    %c0_178 = arith.constant 0 : index
    %222 = vector.load %arg27[%c2_176, %c0_177, %c0_178] : memref<3x16x1xf32, #tpu.memory_space<vmem>>, vector<1x16x1xf32>
    %223 = vector.shape_cast %222 : vector<1x16x1xf32> to vector<16x1xf32>
    %224 = vector.broadcast %223 : vector<16x1xf32> to vector<16x32xf32>
    %225 = arith.mulf %221, %224 : vector<16x32xf32>
    %c2_179 = arith.constant 2 : index
    %c0_180 = arith.constant 0 : index
    %c0_181 = arith.constant 0 : index
    %226 = vector.load %arg26[%c2_179, %c0_180, %c0_181] : memref<3x32x64xf32, #tpu.memory_space<vmem>>, vector<1x32x64xf32>
    %227 = vector.shape_cast %226 : vector<1x32x64xf32> to vector<32x64xf32>
    %cst_182 = arith.constant dense<0.000000e+00> : vector<16x64xf32>
    %228 = tpu.matmul %225, %227, %cst_182 {dimension_numbers = #tpu.dot_dimension_numbers<[1], [0], [0], [1], [0, 0, 1, 1], [], []>} : vector<16x32xf32>, vector<32x64xf32>, vector<16x64xf32> -> vector<16x64xf32>
    %229 = arith.addf %220, %228 : vector<16x64xf32>
    %c0_183 = arith.constant 0 : index
    %c0_184 = arith.constant 0 : index
    %230 = vector.load %arg31[%c0_183, %c0_184] : memref<64x16xf32, #tpu.memory_space<vmem>>, vector<64x16xf32>
    %c0_185 = arith.constant 0 : index
    %c0_186 = arith.constant 0 : index
    %231 = vector.load %arg32[%c0_185, %c0_186] : memref<16x64xf32, #tpu.memory_space<vmem>>, vector<16x64xf32>
    %c0_187 = arith.constant 0 : index
    %c0_188 = arith.constant 0 : index
    %232 = vector.load %arg33[%c0_187, %c0_188] : memref<4x16xf32, #tpu.memory_space<vmem>>, vector<4x16xf32>
    %c0_189 = arith.constant 0 : index
    %c0_190 = arith.constant 0 : index
    %233 = vector.load %arg34[%c0_189, %c0_190] : memref<16x4xf32, #tpu.memory_space<vmem>>, vector<16x4xf32>
    %c0_191 = arith.constant 0 : index
    %c0_192 = arith.constant 0 : index
    %234 = vector.load %arg29[%c0_191, %c0_192] : memref<1x64xf32, #tpu.memory_space<vmem>>, vector<1x64xf32>
    %c0_193 = arith.constant 0 : index
    %c0_194 = arith.constant 0 : index
    %235 = vector.load %arg30[%c0_193, %c0_194] : memref<1x64xf32, #tpu.memory_space<vmem>>, vector<1x64xf32>
    %cst_195 = arith.constant dense<0.000000e+00> : vector<16x16xf32>
    %236 = tpu.matmul %229, %230, %cst_195 {dimension_numbers = #tpu.dot_dimension_numbers<[1], [0], [0], [1], [0, 0, 1, 1], [], []>} : vector<16x64xf32>, vector<64x16xf32>, vector<16x16xf32> -> vector<16x16xf32>
    %cst_196 = arith.constant dense<0.000000e+00> : vector<4x16xf32>
    %237 = tpu.matmul %232, %236, %cst_196 {dimension_numbers = #tpu.dot_dimension_numbers<[1], [0], [0], [1], [0, 0, 1, 1], [], []>} : vector<4x16xf32>, vector<16x16xf32>, vector<4x16xf32> -> vector<4x16xf32>
    %cst_197 = arith.constant 6.250000e-02 : f32
    %238 = vector.broadcast %cst_197 : f32 to vector<4x16xf32>
    %239 = arith.mulf %237, %238 : vector<4x16xf32>
    %cst_198 = arith.constant dense<0.000000e+00> : vector<16x16xf32>
    %240 = tpu.matmul %233, %239, %cst_198 {dimension_numbers = #tpu.dot_dimension_numbers<[1], [0], [0], [1], [0, 0, 1, 1], [], []>} : vector<16x4xf32>, vector<4x16xf32>, vector<16x16xf32> -> vector<16x16xf32>
    %cst_199 = arith.constant dense<0.000000e+00> : vector<16x64xf32>
    %241 = tpu.matmul %240, %231, %cst_199 {dimension_numbers = #tpu.dot_dimension_numbers<[1], [0], [0], [1], [0, 0, 1, 1], [], []>} : vector<16x16xf32>, vector<16x64xf32>, vector<16x64xf32> -> vector<16x64xf32>
    %242 = arith.subf %229, %241 : vector<16x64xf32>
    %243 = arith.mulf %242, %242 : vector<16x64xf32>
    %cst_200 = arith.constant dense<0.000000e+00> : vector<16x16xf32>
    %244 = tpu.matmul %243, %230, %cst_200 {dimension_numbers = #tpu.dot_dimension_numbers<[1], [0], [0], [1], [0, 0, 1, 1], [], []>} : vector<16x64xf32>, vector<64x16xf32>, vector<16x16xf32> -> vector<16x16xf32>
    %cst_201 = arith.constant dense<0.000000e+00> : vector<4x16xf32>
    %245 = tpu.matmul %232, %244, %cst_201 {dimension_numbers = #tpu.dot_dimension_numbers<[1], [0], [0], [1], [0, 0, 1, 1], [], []>} : vector<4x16xf32>, vector<16x16xf32>, vector<4x16xf32> -> vector<4x16xf32>
    %cst_202 = arith.constant 6.250000e-02 : f32
    %246 = vector.broadcast %cst_202 : f32 to vector<4x16xf32>
    %247 = arith.mulf %245, %246 : vector<4x16xf32>
    %cst_203 = arith.constant 9.99999974E-6 : f32
    %248 = vector.broadcast %cst_203 : f32 to vector<4x16xf32>
    %249 = arith.addf %247, %248 : vector<4x16xf32>
    %250 = math.rsqrt %249 : vector<4x16xf32>
    %cst_204 = arith.constant dense<0.000000e+00> : vector<16x16xf32>
    %251 = tpu.matmul %233, %250, %cst_204 {dimension_numbers = #tpu.dot_dimension_numbers<[1], [0], [0], [1], [0, 0, 1, 1], [], []>} : vector<16x4xf32>, vector<4x16xf32>, vector<16x16xf32> -> vector<16x16xf32>
    %cst_205 = arith.constant dense<0.000000e+00> : vector<16x64xf32>
    %252 = tpu.matmul %251, %231, %cst_205 {dimension_numbers = #tpu.dot_dimension_numbers<[1], [0], [0], [1], [0, 0, 1, 1], [], []>} : vector<16x16xf32>, vector<16x64xf32>, vector<16x64xf32> -> vector<16x64xf32>
    %253 = arith.mulf %242, %252 : vector<16x64xf32>
    %254 = vector.broadcast %234 : vector<1x64xf32> to vector<16x64xf32>
    %255 = arith.mulf %253, %254 : vector<16x64xf32>
    %256 = vector.broadcast %235 : vector<1x64xf32> to vector<16x64xf32>
    %257 = arith.addf %255, %256 : vector<16x64xf32>
    %cst_206 = arith.constant 0.000000e+00 : f32
    %258 = vector.broadcast %cst_206 : f32 to vector<16x64xf32>
    %259 = arith.maximumf %257, %258 : vector<16x64xf32>
    %c0_207 = arith.constant 0 : index
    %c0_208 = arith.constant 0 : index
    %260 = vector.load %arg52[%c0_207, %c0_208] : memref<16x64xf32, #tpu.memory_space<vmem>>, vector<16x64xf32>
    tpu.vector_store %arg52[%c0_207, %c0_208], %259 {strides = array<i32>} : memref<16x64xf32, #tpu.memory_space<vmem>>, vector<16x64xf32>,
    %cst_209 = arith.constant 0.000000e+00 : f32
    %261 = vector.broadcast %cst_209 : f32 to vector<4x128xf32>
    %c0_210 = arith.constant 0 : index
    %c0_211 = arith.constant 0 : index
    %262 = vector.load %arg36[%c0_210, %c0_211] : memref<1x128xf32, #tpu.memory_space<vmem>>, vector<1x128xf32>
    %263 = vector.broadcast %262 : vector<1x128xf32> to vector<4x128xf32>
    %264 = arith.addf %261, %263 : vector<4x128xf32>
    %c0_212 = arith.constant 0 : index
    %c0_213 = arith.constant 0 : index
    %265 = tpu.strided_load %arg52[%c0_212, %c0_213] {strides = array<i32: 4, 1>} : memref<16x64xf32, #tpu.memory_space<vmem>>, vector<4x64xf32>
    %c0_214 = arith.constant 0 : index
    %c0_215 = arith.constant 0 : index
    %c0_216 = arith.constant 0 : index
    %266 = vector.load %arg35[%c0_214, %c0_215, %c0_216] : memref<4x64x128xf32, #tpu.memory_space<vmem>>, vector<1x64x128xf32>
    %267 = vector.shape_cast %266 : vector<1x64x128xf32> to vector<64x128xf32>
    %cst_217 = arith.constant dense<0.000000e+00> : vector<4x128xf32>
    %268 = tpu.matmul %265, %267, %cst_217 {dimension_numbers = #tpu.dot_dimension_numbers<[1], [0], [0], [1], [0, 0, 1, 1], [], []>} : vector<4x64xf32>, vector<64x128xf32>, vector<4x128xf32> -> vector<4x128xf32>
    %269 = arith.addf %264, %268 : vector<4x128xf32>
    %c1_218 = arith.constant 1 : index
    %c0_219 = arith.constant 0 : index
    %270 = tpu.strided_load %arg52[%c1_218, %c0_219] {strides = array<i32: 4, 1>} : memref<16x64xf32, #tpu.memory_space<vmem>>, vector<4x64xf32>
    %c1_220 = arith.constant 1 : index
    %c0_221 = arith.constant 0 : index
    %c0_222 = arith.constant 0 : index
    %271 = vector.load %arg35[%c1_220, %c0_221, %c0_222] : memref<4x64x128xf32, #tpu.memory_space<vmem>>, vector<1x64x128xf32>
    %272 = vector.shape_cast %271 : vector<1x64x128xf32> to vector<64x128xf32>
    %cst_223 = arith.constant dense<0.000000e+00> : vector<4x128xf32>
    %273 = tpu.matmul %270, %272, %cst_223 {dimension_numbers = #tpu.dot_dimension_numbers<[1], [0], [0], [1], [0, 0, 1, 1], [], []>} : vector<4x64xf32>, vector<64x128xf32>, vector<4x128xf32> -> vector<4x128xf32>
    %274 = arith.addf %269, %273 : vector<4x128xf32>
    %c2_224 = arith.constant 2 : index
    %c0_225 = arith.constant 0 : index
    %275 = tpu.strided_load %arg52[%c2_224, %c0_225] {strides = array<i32: 4, 1>} : memref<16x64xf32, #tpu.memory_space<vmem>>, vector<4x64xf32>
    %c2_226 = arith.constant 2 : index
    %c0_227 = arith.constant 0 : index
    %c0_228 = arith.constant 0 : index
    %276 = vector.load %arg35[%c2_226, %c0_227, %c0_228] : memref<4x64x128xf32, #tpu.memory_space<vmem>>, vector<1x64x128xf32>
    %277 = vector.shape_cast %276 : vector<1x64x128xf32> to vector<64x128xf32>
    %cst_229 = arith.constant dense<0.000000e+00> : vector<4x128xf32>
    %278 = tpu.matmul %275, %277, %cst_229 {dimension_numbers = #tpu.dot_dimension_numbers<[1], [0], [0], [1], [0, 0, 1, 1], [], []>} : vector<4x64xf32>, vector<64x128xf32>, vector<4x128xf32> -> vector<4x128xf32>
    %279 = arith.addf %274, %278 : vector<4x128xf32>
    %c3_230 = arith.constant 3 : index
    %c0_231 = arith.constant 0 : index
    %280 = tpu.strided_load %arg52[%c3_230, %c0_231] {strides = array<i32: 4, 1>} : memref<16x64xf32, #tpu.memory_space<vmem>>, vector<4x64xf32>
    %c3_232 = arith.constant 3 : index
    %c0_233 = arith.constant 0 : index
    %c0_234 = arith.constant 0 : index
    %281 = vector.load %arg35[%c3_232, %c0_233, %c0_234] : memref<4x64x128xf32, #tpu.memory_space<vmem>>, vector<1x64x128xf32>
    %282 = vector.shape_cast %281 : vector<1x64x128xf32> to vector<64x128xf32>
    %cst_235 = arith.constant dense<0.000000e+00> : vector<4x128xf32>
    %283 = tpu.matmul %280, %282, %cst_235 {dimension_numbers = #tpu.dot_dimension_numbers<[1], [0], [0], [1], [0, 0, 1, 1], [], []>} : vector<4x64xf32>, vector<64x128xf32>, vector<4x128xf32> -> vector<4x128xf32>
    %284 = arith.addf %279, %283 : vector<4x128xf32>
    %c0_236 = arith.constant 0 : index
    %c0_237 = arith.constant 0 : index
    %285 = vector.load %arg37[%c0_236, %c0_237] : memref<128x128xf32, #tpu.memory_space<vmem>>, vector<128x128xf32>
    %cst_238 = arith.constant dense<0.000000e+00> : vector<4x128xf32>
    %286 = tpu.matmul %284, %285, %cst_238 {dimension_numbers = #tpu.dot_dimension_numbers<[1], [0], [0], [1], [0, 0, 1, 1], [], []>} : vector<4x128xf32>, vector<128x128xf32>, vector<4x128xf32> -> vector<4x128xf32>
    %c0_239 = arith.constant 0 : index
    %c0_240 = arith.constant 0 : index
    %287 = vector.load %arg38[%c0_239, %c0_240] : memref<1x128xf32, #tpu.memory_space<vmem>>, vector<1x128xf32>
    %288 = vector.broadcast %287 : vector<1x128xf32> to vector<4x128xf32>
    %289 = arith.addf %286, %288 : vector<4x128xf32>
    %cst_241 = arith.constant 0.176776692 : f32
    %290 = vector.broadcast %cst_241 : f32 to vector<4x128xf32>
    %291 = arith.mulf %289, %290 : vector<4x128xf32>
    %c0_242 = arith.constant 0 : index
    %c0_243 = arith.constant 0 : index
    %292 = vector.load %arg39[%c0_242, %c0_243] : memref<128x128xf32, #tpu.memory_space<vmem>>, vector<128x128xf32>
    %cst_244 = arith.constant dense<0.000000e+00> : vector<4x128xf32>
    %293 = tpu.matmul %163, %292, %cst_244 {dimension_numbers = #tpu.dot_dimension_numbers<[1], [0], [0], [1], [0, 0, 1, 1], [], []>} : vector<4x128xf32>, vector<128x128xf32>, vector<4x128xf32> -> vector<4x128xf32>
    %c0_245 = arith.constant 0 : index
    %c0_246 = arith.constant 0 : index
    %294 = vector.load %arg40[%c0_245, %c0_246] : memref<1x128xf32, #tpu.memory_space<vmem>>, vector<1x128xf32>
    %295 = vector.broadcast %294 : vector<1x128xf32> to vector<4x128xf32>
    %296 = arith.addf %293, %295 : vector<4x128xf32>
    %c0_247 = arith.constant 0 : index
    %c0_248 = arith.constant 0 : index
    %297 = vector.load %arg41[%c0_247, %c0_248] : memref<128x128xf32, #tpu.memory_space<vmem>>, vector<128x128xf32>
    %cst_249 = arith.constant dense<0.000000e+00> : vector<4x128xf32>
    %298 = tpu.matmul %163, %297, %cst_249 {dimension_numbers = #tpu.dot_dimension_numbers<[1], [0], [0], [1], [0, 0, 1, 1], [], []>} : vector<4x128xf32>, vector<128x128xf32>, vector<4x128xf32> -> vector<4x128xf32>
    %c0_250 = arith.constant 0 : index
    %c0_251 = arith.constant 0 : index
    %299 = vector.load %arg42[%c0_250, %c0_251] : memref<1x128xf32, #tpu.memory_space<vmem>>, vector<1x128xf32>
    %300 = vector.broadcast %299 : vector<1x128xf32> to vector<4x128xf32>
    %301 = arith.addf %298, %300 : vector<4x128xf32>
    %302 = vector.extract_strided_slice %291 {offsets = [0, 0], sizes = [4, 32], strides = [1, 1]} : vector<4x128xf32> to vector<4x32xf32>
    %303 = vector.extract_strided_slice %296 {offsets = [0, 0], sizes = [4, 32], strides = [1, 1]} : vector<4x128xf32> to vector<4x32xf32>
    %cst_252 = arith.constant dense<0.000000e+00> : vector<4x4xf32>
    %304 = tpu.matmul %302, %303, %cst_252 {dimension_numbers = #tpu.dot_dimension_numbers<[1], [1], [0], [0], [0, 0, 1, 0], [], []>} : vector<4x32xf32>, vector<4x32xf32>, vector<4x4xf32> -> vector<4x4xf32>
    %c0_253 = arith.constant 0 : index
    %c0_254 = arith.constant 0 : index
    %305 = vector.load %arg43[%c0_253, %c0_254] : memref<4x4xf32, #tpu.memory_space<vmem>>, vector<4x4xf32>
    %306 = arith.addf %304, %305 : vector<4x4xf32>
    %cst_255 = arith.constant dense<0xFF800000> : vector<4xf32>
    %307 = vector.multi_reduction <maximumf>, %306, %cst_255 [1] : vector<4x4xf32> to vector<4xf32>
    %308 = vector.shape_cast %307 : vector<4xf32> to vector<4x1xf32>
    %309 = vector.broadcast %308 : vector<4x1xf32> to vector<4x4xf32>
    %310 = arith.subf %306, %309 : vector<4x4xf32>
    %311 = math.exp %310 : vector<4x4xf32>
    %cst_256 = arith.constant dense<0.000000e+00> : vector<4xf32>
    %312 = vector.multi_reduction <add>, %311, %cst_256 [1] : vector<4x4xf32> to vector<4xf32>
    %313 = vector.shape_cast %312 : vector<4xf32> to vector<4x1xf32>
    %314 = tpu.reciprocal %313 {approx = true} : vector<4x1xf32> -> vector<4x1xf32>
    %315 = vector.broadcast %314 : vector<4x1xf32> to vector<4x4xf32>
    %316 = arith.mulf %311, %315 : vector<4x4xf32>
    %317 = vector.extract_strided_slice %301 {offsets = [0, 0], sizes = [4, 32], strides = [1, 1]} : vector<4x128xf32> to vector<4x32xf32>
    %cst_257 = arith.constant dense<0.000000e+00> : vector<4x32xf32>
    %318 = tpu.matmul %316, %317, %cst_257 {dimension_numbers = #tpu.dot_dimension_numbers<[1], [0], [0], [1], [0, 0, 1, 1], [], []>} : vector<4x4xf32>, vector<4x32xf32>, vector<4x32xf32> -> vector<4x32xf32>
    %c0_258 = arith.constant 0 : index
    %c0_259 = arith.constant 0 : index
    %319 = vector.load %arg53[%c0_258, %c0_259] : memref<4x128xf32, #tpu.memory_space<vmem>>, vector<4x32xf32>
    tpu.vector_store %arg53[%c0_258, %c0_259], %318 {strides = array<i32>} : memref<4x128xf32, #tpu.memory_space<vmem>>, vector<4x32xf32>,
    %320 = vector.extract_strided_slice %291 {offsets = [0, 32], sizes = [4, 32], strides = [1, 1]} : vector<4x128xf32> to vector<4x32xf32>
    %321 = vector.extract_strided_slice %296 {offsets = [0, 32], sizes = [4, 32], strides = [1, 1]} : vector<4x128xf32> to vector<4x32xf32>
    %cst_260 = arith.constant dense<0.000000e+00> : vector<4x4xf32>
    %322 = tpu.matmul %320, %321, %cst_260 {dimension_numbers = #tpu.dot_dimension_numbers<[1], [1], [0], [0], [0, 0, 1, 0], [], []>} : vector<4x32xf32>, vector<4x32xf32>, vector<4x4xf32> -> vector<4x4xf32>
    %c0_261 = arith.constant 0 : index
    %c0_262 = arith.constant 0 : index
    %323 = vector.load %arg43[%c0_261, %c0_262] : memref<4x4xf32, #tpu.memory_space<vmem>>, vector<4x4xf32>
    %324 = arith.addf %322, %323 : vector<4x4xf32>
    %cst_263 = arith.constant dense<0xFF800000> : vector<4xf32>
    %325 = vector.multi_reduction <maximumf>, %324, %cst_263 [1] : vector<4x4xf32> to vector<4xf32>
    %326 = vector.shape_cast %325 : vector<4xf32> to vector<4x1xf32>
    %327 = vector.broadcast %326 : vector<4x1xf32> to vector<4x4xf32>
    %328 = arith.subf %324, %327 : vector<4x4xf32>
    %329 = math.exp %328 : vector<4x4xf32>
    %cst_264 = arith.constant dense<0.000000e+00> : vector<4xf32>
    %330 = vector.multi_reduction <add>, %329, %cst_264 [1] : vector<4x4xf32> to vector<4xf32>
    %331 = vector.shape_cast %330 : vector<4xf32> to vector<4x1xf32>
    %332 = tpu.reciprocal %331 {approx = true} : vector<4x1xf32> -> vector<4x1xf32>
    %333 = vector.broadcast %332 : vector<4x1xf32> to vector<4x4xf32>
    %334 = arith.mulf %329, %333 : vector<4x4xf32>
    %335 = vector.extract_strided_slice %301 {offsets = [0, 32], sizes = [4, 32], strides = [1, 1]} : vector<4x128xf32> to vector<4x32xf32>
    %cst_265 = arith.constant dense<0.000000e+00> : vector<4x32xf32>
    %336 = tpu.matmul %334, %335, %cst_265 {dimension_numbers = #tpu.dot_dimension_numbers<[1], [0], [0], [1], [0, 0, 1, 1], [], []>} : vector<4x4xf32>, vector<4x32xf32>, vector<4x32xf32> -> vector<4x32xf32>
    %c0_266 = arith.constant 0 : index
    %c32 = arith.constant 32 : index
    %337 = vector.load %arg53[%c0_266, %c32] : memref<4x128xf32, #tpu.memory_space<vmem>>, vector<4x32xf32>
    tpu.vector_store %arg53[%c0_266, %c32], %336 {strides = array<i32>} : memref<4x128xf32, #tpu.memory_space<vmem>>, vector<4x32xf32>,
    %338 = vector.extract_strided_slice %291 {offsets = [0, 64], sizes = [4, 32], strides = [1, 1]} : vector<4x128xf32> to vector<4x32xf32>
    %339 = vector.extract_strided_slice %296 {offsets = [0, 64], sizes = [4, 32], strides = [1, 1]} : vector<4x128xf32> to vector<4x32xf32>
    %cst_267 = arith.constant dense<0.000000e+00> : vector<4x4xf32>
    %340 = tpu.matmul %338, %339, %cst_267 {dimension_numbers = #tpu.dot_dimension_numbers<[1], [1], [0], [0], [0, 0, 1, 0], [], []>} : vector<4x32xf32>, vector<4x32xf32>, vector<4x4xf32> -> vector<4x4xf32>
    %c0_268 = arith.constant 0 : index
    %c0_269 = arith.constant 0 : index
    %341 = vector.load %arg43[%c0_268, %c0_269] : memref<4x4xf32, #tpu.memory_space<vmem>>, vector<4x4xf32>
    %342 = arith.addf %340, %341 : vector<4x4xf32>
    %cst_270 = arith.constant dense<0xFF800000> : vector<4xf32>
    %343 = vector.multi_reduction <maximumf>, %342, %cst_270 [1] : vector<4x4xf32> to vector<4xf32>
    %344 = vector.shape_cast %343 : vector<4xf32> to vector<4x1xf32>
    %345 = vector.broadcast %344 : vector<4x1xf32> to vector<4x4xf32>
    %346 = arith.subf %342, %345 : vector<4x4xf32>
    %347 = math.exp %346 : vector<4x4xf32>
    %cst_271 = arith.constant dense<0.000000e+00> : vector<4xf32>
    %348 = vector.multi_reduction <add>, %347, %cst_271 [1] : vector<4x4xf32> to vector<4xf32>
    %349 = vector.shape_cast %348 : vector<4xf32> to vector<4x1xf32>
    %350 = tpu.reciprocal %349 {approx = true} : vector<4x1xf32> -> vector<4x1xf32>
    %351 = vector.broadcast %350 : vector<4x1xf32> to vector<4x4xf32>
    %352 = arith.mulf %347, %351 : vector<4x4xf32>
    %353 = vector.extract_strided_slice %301 {offsets = [0, 64], sizes = [4, 32], strides = [1, 1]} : vector<4x128xf32> to vector<4x32xf32>
    %cst_272 = arith.constant dense<0.000000e+00> : vector<4x32xf32>
    %354 = tpu.matmul %352, %353, %cst_272 {dimension_numbers = #tpu.dot_dimension_numbers<[1], [0], [0], [1], [0, 0, 1, 1], [], []>} : vector<4x4xf32>, vector<4x32xf32>, vector<4x32xf32> -> vector<4x32xf32>
    %c0_273 = arith.constant 0 : index
    %c64 = arith.constant 64 : index
    %355 = vector.load %arg53[%c0_273, %c64] : memref<4x128xf32, #tpu.memory_space<vmem>>, vector<4x32xf32>
    tpu.vector_store %arg53[%c0_273, %c64], %354 {strides = array<i32>} : memref<4x128xf32, #tpu.memory_space<vmem>>, vector<4x32xf32>,
    %356 = vector.extract_strided_slice %291 {offsets = [0, 96], sizes = [4, 32], strides = [1, 1]} : vector<4x128xf32> to vector<4x32xf32>
    %357 = vector.extract_strided_slice %296 {offsets = [0, 96], sizes = [4, 32], strides = [1, 1]} : vector<4x128xf32> to vector<4x32xf32>
    %cst_274 = arith.constant dense<0.000000e+00> : vector<4x4xf32>
    %358 = tpu.matmul %356, %357, %cst_274 {dimension_numbers = #tpu.dot_dimension_numbers<[1], [1], [0], [0], [0, 0, 1, 0], [], []>} : vector<4x32xf32>, vector<4x32xf32>, vector<4x4xf32> -> vector<4x4xf32>
    %c0_275 = arith.constant 0 : index
    %c0_276 = arith.constant 0 : index
    %359 = vector.load %arg43[%c0_275, %c0_276] : memref<4x4xf32, #tpu.memory_space<vmem>>, vector<4x4xf32>
    %360 = arith.addf %358, %359 : vector<4x4xf32>
    %cst_277 = arith.constant dense<0xFF800000> : vector<4xf32>
    %361 = vector.multi_reduction <maximumf>, %360, %cst_277 [1] : vector<4x4xf32> to vector<4xf32>
    %362 = vector.shape_cast %361 : vector<4xf32> to vector<4x1xf32>
    %363 = vector.broadcast %362 : vector<4x1xf32> to vector<4x4xf32>
    %364 = arith.subf %360, %363 : vector<4x4xf32>
    %365 = math.exp %364 : vector<4x4xf32>
    %cst_278 = arith.constant dense<0.000000e+00> : vector<4xf32>
    %366 = vector.multi_reduction <add>, %365, %cst_278 [1] : vector<4x4xf32> to vector<4xf32>
    %367 = vector.shape_cast %366 : vector<4xf32> to vector<4x1xf32>
    %368 = tpu.reciprocal %367 {approx = true} : vector<4x1xf32> -> vector<4x1xf32>
    %369 = vector.broadcast %368 : vector<4x1xf32> to vector<4x4xf32>
    %370 = arith.mulf %365, %369 : vector<4x4xf32>
    %371 = vector.extract_strided_slice %301 {offsets = [0, 96], sizes = [4, 32], strides = [1, 1]} : vector<4x128xf32> to vector<4x32xf32>
    %cst_279 = arith.constant dense<0.000000e+00> : vector<4x32xf32>
    %372 = tpu.matmul %370, %371, %cst_279 {dimension_numbers = #tpu.dot_dimension_numbers<[1], [0], [0], [1], [0, 0, 1, 1], [], []>} : vector<4x4xf32>, vector<4x32xf32>, vector<4x32xf32> -> vector<4x32xf32>
    %c0_280 = arith.constant 0 : index
    %c96 = arith.constant 96 : index
    %373 = vector.load %arg53[%c0_280, %c96] : memref<4x128xf32, #tpu.memory_space<vmem>>, vector<4x32xf32>
    tpu.vector_store %arg53[%c0_280, %c96], %372 {strides = array<i32>} : memref<4x128xf32, #tpu.memory_space<vmem>>, vector<4x32xf32>,
    %c0_281 = arith.constant 0 : index
    %c0_282 = arith.constant 0 : index
    %374 = vector.load %arg53[%c0_281, %c0_282] : memref<4x128xf32, #tpu.memory_space<vmem>>, vector<4x128xf32>
    %c0_283 = arith.constant 0 : index
    %c0_284 = arith.constant 0 : index
    %375 = vector.load %arg44[%c0_283, %c0_284] : memref<128x128xf32, #tpu.memory_space<vmem>>, vector<128x128xf32>
    %cst_285 = arith.constant dense<0.000000e+00> : vector<4x128xf32>
    %376 = tpu.matmul %374, %375, %cst_285 {dimension_numbers = #tpu.dot_dimension_numbers<[1], [0], [0], [1], [0, 0, 1, 1], [], []>} : vector<4x128xf32>, vector<128x128xf32>, vector<4x128xf32> -> vector<4x128xf32>
    %c0_286 = arith.constant 0 : index
    %c0_287 = arith.constant 0 : index
    %377 = vector.load %arg45[%c0_286, %c0_287] : memref<1x128xf32, #tpu.memory_space<vmem>>, vector<1x128xf32>
    %378 = vector.broadcast %377 : vector<1x128xf32> to vector<4x128xf32>
    %379 = arith.addf %376, %378 : vector<4x128xf32>
    %c0_288 = arith.constant 0 : index
    %c0_289 = arith.constant 0 : index
    %380 = vector.load %arg46[%c0_288, %c0_289] : memref<128x128xf32, #tpu.memory_space<vmem>>, vector<128x128xf32>
    %cst_290 = arith.constant dense<0.000000e+00> : vector<4x128xf32>
    %381 = tpu.matmul %379, %380, %cst_290 {dimension_numbers = #tpu.dot_dimension_numbers<[1], [0], [0], [1], [0, 0, 1, 1], [], []>} : vector<4x128xf32>, vector<128x128xf32>, vector<4x128xf32> -> vector<4x128xf32>
    %c0_291 = arith.constant 0 : index
    %c0_292 = arith.constant 0 : index
    %382 = vector.load %arg47[%c0_291, %c0_292] : memref<1x128xf32, #tpu.memory_space<vmem>>, vector<1x128xf32>
    %383 = vector.broadcast %382 : vector<1x128xf32> to vector<4x128xf32>
    %384 = arith.addf %381, %383 : vector<4x128xf32>
    %cst_293 = arith.constant 0.000000e+00 : f32
    %385 = vector.broadcast %cst_293 : f32 to vector<4x128xf32>
    %386 = arith.maximumf %384, %385 : vector<4x128xf32>
    %c0_294 = arith.constant 0 : index
    %c0_295 = arith.constant 0 : index
    %387 = vector.load %arg48[%c0_294, %c0_295] : memref<128x128xf32, #tpu.memory_space<vmem>>, vector<128x128xf32>
    %cst_296 = arith.constant dense<0.000000e+00> : vector<4x128xf32>
    %388 = tpu.matmul %386, %387, %cst_296 {dimension_numbers = #tpu.dot_dimension_numbers<[1], [0], [0], [1], [0, 0, 1, 1], [], []>} : vector<4x128xf32>, vector<128x128xf32>, vector<4x128xf32> -> vector<4x128xf32>
    %c0_297 = arith.constant 0 : index
    %c0_298 = arith.constant 0 : index
    %389 = vector.load %arg49[%c0_297, %c0_298] : memref<1x128xf32, #tpu.memory_space<vmem>>, vector<1x128xf32>
    %390 = vector.broadcast %389 : vector<1x128xf32> to vector<4x128xf32>
    %391 = arith.addf %388, %390 : vector<4x128xf32>
    %c0_299 = arith.constant 0 : index
    %c0_300 = arith.constant 0 : index
    %392 = vector.load %arg50[%c0_299, %c0_300] : memref<4x128xf32, #tpu.memory_space<vmem>>, vector<4x128xf32>
    tpu.vector_store %arg50[%c0_299, %c0_300], %391 {strides = array<i32>} : memref<4x128xf32, #tpu.memory_space<vmem>>, vector<4x128xf32>,
    return
  }
}

</mosaic_0001>

<bundles_post_ra>
// kernel: tpu_custom_call.1
= control target key start
LH: loop header
LB: loop body
LE: loop exit
PB: predicated region body
PF: predicated region fallthrough
CT: control target
= control target key end

     0   :  { %s10356_s6 = smov 1   ;;  %s10357_s10 = smov 2   ;;  %s11771_s0 = inlined_call_operand.smem [shape: u32[51], index: -1, kind: input, shape index: {}] }
   0x1   :  { %s10460_s5 = sld [smem:[%s11771_s0]]   ;;  %s10358_s14 = smov 3  }
   0x2   :  { %s10465_s9 = sld [smem:[%s11771_s0 + %s10356_s6]]   ;;  %s10359_s18 = smov 4  }
   0x3   :  { %s10470_s13 = sld [smem:[%s11771_s0 + %s10357_s10]]   ;;  %s10360_s22 = smov 5  }
   0x4   :  { %s10475_s17 = sld [smem:[%s11771_s0 + %s10358_s14]]   ;;  %s10361_s26 = smov 6  }
   0x5   :  { %s10480_s21 = sld [smem:[%s11771_s0 + %s10359_s18]]   ;;  %s10362_s30 = smov 7  }
   0x6   :  { %s10485_s25 = sld [smem:[%s11771_s0 + %s10360_s22]]   ;;  %s10363_s4 = smov 8  }
   0x7   :  { %11804 = sst [smem:[#allocation79_spill]] %s10460_s5  ;;  %s10364_s10 = smov 9  }
   0x8   :  { %11805 = sst [smem:[#allocation80_spill]] %s10465_s9  ;;  %s10365_s15 = smov 10  }
   0x9   :  { %11806 = sst [smem:[#allocation81_spill]] %s10470_s13  ;;  %s10366_s20 = smov 11  }
   0xa   :  { %s10490_s29 = sld [smem:[%s11771_s0 + %s10361_s26]]   ;;  %s10367_s26 = smov 12  }
   0xb   :  { %11807 = sst [smem:[#allocation82_spill]] %s10480_s21  ;;  %s10368_s1 = smov 13  }
   0xc   :  { %11808 = sst [smem:[#allocation83_spill]] %s10485_s25  ;;  %s10369_s7 = smov 14  }
   0xd   :  { %s10495_s3 = sld [smem:[%s11771_s0 + %s10362_s30]]   ;;  %s10371_s22 = smov 16  }
   0xe   :  { %s10500_s8 = sld [smem:[%s11771_s0 + %s10363_s4]]   ;;  %s10372_s28 = smov 17  }
   0xf   :  { %s10505_s14 = sld [smem:[%s11771_s0 + %s10364_s10]]  }
  0x10   :  { %s10510_s19 = sld [smem:[%s11771_s0 + %s10365_s15]]   ;;  %s10370_s15 = smov 15  }
  0x11   :  { %s10515_s24 = sld [smem:[%s11771_s0 + %s10366_s20]]  }
  0x12   :  { %s10520_s30 = sld [smem:[%s11771_s0 + %s10367_s26]]  }
  0x13   :  { %11809 = sst [smem:[#allocation84_spill]] %s10495_s3 }
  0x14   :  { %11810 = sst [smem:[#allocation85_spill]] %s10500_s8 }
  0x15   :  { %s10525_s6 = sld [smem:[%s11771_s0 + %s10368_s1]]  }
  0x16   :  { %11811 = sst [smem:[#allocation86_spill]] %s10510_s19 }
  0x17   :  { %11812 = sst [smem:[#allocation87_spill]] %s10515_s24 }
  0x18   :  { %11813 = sst [smem:[#allocation88_spill]] %s10520_s30 }
  0x19   :  { %s10530_s12 = sld [smem:[%s11771_s0 + %s10369_s7]]   ;;  %s10373_s7 = smov 18  }
  0x1a   :  { %s10535_s20 = sld [smem:[%s11771_s0 + %s10370_s15]]   ;;  %s10374_s15 = smov 19  }
  0x1b   :  { %s10540_s27 = sld [smem:[%s11771_s0 + %s10371_s22]]   ;;  %s10375_s22 = smov 20  }
  0x1c   :  { %s10545_s4 = sld [smem:[%s11771_s0 + %s10372_s28]]   ;;  %s10376_s28 = smov 21  }
  0x1d   :  { %s10550_s19 = sld [smem:[%s11771_s0 + %s10373_s7]]   ;;  %s10377_s7 = smov 22  }
  0x1e   :  { %s10560_s24 = sld [smem:[%s11771_s0 + %s10375_s22]]   ;;  %s10379_s22 = smov 24  }
  0x1f   :  { %11814 = sst [smem:[#allocation89_spill]] %s10530_s12 }
  0x20   :  { %11815 = sst [smem:[#allocation90_spill]] %s10535_s20 }
  0x21   :  { %s10555_s20 = sld [smem:[%s11771_s0 + %s10374_s15]]   ;;  %s10378_s15 = smov 23  }
  0x22   :  { %11816 = sst [smem:[#allocation91_spill]] %s10545_s4 }
  0x23   :  { %11817 = sst [smem:[#allocation92_spill]] %s10550_s19 }
  0x24   :  { %s10565_s8 = sld [smem:[%s11771_s0 + %s10376_s28]]   ;;  %s10380_s28 = smov 25  }
  0x25   :  { %s10570_s19 = sld [smem:[%s11771_s0 + %s10377_s7]]   ;;  %s10381_s7 = smov 26  }
  0x26   :  { %s10580_s13 = sld [smem:[%s11771_s0 + %s10379_s22]]   ;;  %s10383_s22 = smov 28  }
  0x27   :  { %11818 = sst [smem:[#allocation93_spill]] %s10555_s20 }
  0x28   :  { %s10575_s20 = sld [smem:[%s11771_s0 + %s10378_s15]]   ;;  %s10382_s15 = smov 27  }
  0x29   :  { %s10585_s25 = sld [smem:[%s11771_s0 + %s10380_s28]]   ;;  %s10384_s28 = smov 29  }
  0x2a   :  { %11819 = sst [smem:[#allocation94_spill]] %s10565_s8 }
  0x2b   :  { %s10590_s5 = sld [smem:[%s11771_s0 + %s10381_s7]]   ;;  %s10385_s7 = smov 30  }
  0x2c   :  { %11821 = sst [smem:[#allocation96_spill]] %s10580_s13 }
  0x2d   :  { %s10600_s13 = sld [smem:[%s11771_s0 + %s10383_s22]]   ;;  %s10387_s22 = smov 32  }
  0x2e   :  { %11820 = sst [smem:[#allocation95_spill]] %s10575_s20 }
  0x2f   :  { %s10595_s20 = sld [smem:[%s11771_s0 + %s10382_s15]]   ;;  %s10386_s15 = smov 31  }
  0x30   :  { %s10605_s8 = sld [smem:[%s11771_s0 + %s10384_s28]]   ;;  %s10388_s28 = smov 33  }
  0x31   :  { %11822 = sst [smem:[#allocation97_spill]] %s10590_s5 }
  0x32   :  { %s10610_s5 = sld [smem:[%s11771_s0 + %s10385_s7]]   ;;  %s10389_s7 = smov 34  }
  0x33   :  { %s10620_s4 = sld [smem:[%s11771_s0 + %s10387_s22]]   ;;  %s10391_s22 = smov 36  }
  0x34   :  { %s10630_s12 = sld [smem:[%s11771_s0 + %s10389_s7]]   ;;  %s10393_s7 = smov 38  }
  0x35   :  { %11823 = sst [smem:[#allocation98_spill]] %s10595_s20 }
  0x36   :  { %11824 = sst [smem:[#allocation99_spill]] %s10605_s8 }
  0x37   :  { %s10615_s20 = sld [smem:[%s11771_s0 + %s10386_s15]]   ;;  %s10390_s15 = smov 35  }
  0x38   :  { %s10625_s8 = sld [smem:[%s11771_s0 + %s10388_s28]]   ;;  %s10392_s28 = smov 37  }
  0x39   :  { %11826 = sst [smem:[#allocation101_spill]] %s10620_s4 }
  0x3a   :  { %11827 = sst [smem:[#allocation102_spill]] %s10630_s12 }
  0x3b   :  { %s10640_s4 = sld [smem:[%s11771_s0 + %s10391_s22]]   ;;  %s10395_s22 = smov 40  }
  0x3c   :  { %s10645_s30 = sld [smem:[%s11771_s0 + %s10392_s28]]   ;;  %s10396_s28 = smov 41  }
  0x3d   :  { %11825 = sst [smem:[#allocation100_spill]] %s10615_s20 }
  0x3e   :  { %s10635_s20 = sld [smem:[%s11771_s0 + %s10390_s15]]   ;;  %s10394_s15 = smov 39  }
  0x3f   :  { %s10650_s12 = sld [smem:[%s11771_s0 + %s10393_s7]]   ;;  %s10397_s7 = smov 42  }
  0x40   :  { %s10665_s3 = sld [smem:[%s11771_s0 + %s10396_s28]]   ;;  %s10400_s28 = smov 45  }
  0x41   :  { %11829 = sst [smem:[#allocation104_spill]] %s10640_s4 }
  0x42   :  { %s10660_s4 = sld [smem:[%s11771_s0 + %s10395_s22]]   ;;  %s10399_s22 = smov 44  }
  0x43   :  { %s10685_s9 = sld [smem:[%s11771_s0 + %s10400_s28]]   ;;  %s10404_s28 = smov 49  }
  0x44   :  { %11828 = sst [smem:[#allocation103_spill]] %s10635_s20 }
  0x45   :  { %11830 = sst [smem:[#allocation105_spill]] %s10650_s12 }
  0x46   :  { %s10655_s20 = sld [smem:[%s11771_s0 + %s10394_s15]]   ;;  %s10398_s15 = smov 43  }
  0x47   :  { %s10670_s12 = sld [smem:[%s11771_s0 + %s10397_s7]]   ;;  %s10401_s7 = smov 46  }
  0x48   :  { %11831 = sst [smem:[#allocation106_spill]] %s10660_s4 }
  0x49   :  { %s10675_s21 = sld [smem:[%s11771_s0 + %s10398_s15]]   ;;  %s10402_s15 = smov 47  }
  0x4a   :  { %s10680_s4 = sld [smem:[%s11771_s0 + %s10399_s22]]   ;;  %s10403_s22 = smov 48  }
  0x4b   :  { %11835 = sst [smem:[#allocation110_spill]] %s10685_s9 }
  0x4c   :  { %s10705_s9 = sld [smem:[%s11771_s0 + %s10404_s28]]  }
  0x4d   :  { %11832 = sst [smem:[#allocation107_spill]] %s10670_s12 }
  0x4e   :  { %s10690_s12 = sld [smem:[%s11771_s0 + %s10401_s7]]   ;;  %s10405_s7 = smov 50  }
  0x4f   :  { %11833 = sst [smem:[#allocation108_spill]] %s10675_s21 }
  0x50   :  { %11834 = sst [smem:[#allocation109_spill]] %s10680_s4 }
  0x51   :  { %s10695_s21 = sld [smem:[%s11771_s0 + %s10402_s15]]  }
  0x52   :  { %s10700_s4 = sld [smem:[%s11771_s0 + %s10403_s22]]  }
  0x54   :  { %11836 = sst [smem:[#allocation111_spill]] %s10690_s12 }
  0x55   :  { %s10710_s12 = sld [smem:[%s11771_s0 + %s10405_s7]]  }
  0x56   :  { %106 = vsyncpa [#allocation6], 0 }
  0x57   :  { %107 = vsyncpa [#allocation9], 0 }
  0x58   :  { %108 = vsyncpa [#allocation12], 0 }
  0x59   :  { %109 = vsyncpa [#allocation15], 0 }
  0x5a   :  { %110 = vsyncpa [#allocation18], 0 }
  0x5b   :  { %111 = vsyncpa [#allocation21], 0 }
  0x5c   :  { %112 = vsyncpa [#allocation24], 0 }
  0x5d   :  { %113 = vsyncpa [#allocation27], 0 }
  0x5e   :  { %114 = vsyncpa [#allocation30], 0 }
  0x5f   :  { %115 = vsyncpa [#allocation33], 0 }
  0x60   :  { %116 = vsyncpa [#allocation36], 0 }
  0x61   :  { %117 = vsyncpa [#allocation39], 0 }
  0x62   :  { %118 = vsyncpa [#allocation42], 0 }
  0x63   :  { %119 = vsyncpa [#allocation45], 0 }
  0x64   :  { %120 = vsyncpa [#allocation48], 0 }
  0x65   :  { %121 = vsyncpa [#allocation51], 0 }
  0x66   :  { %122 = vsyncpa [#allocation54], 0 }
  0x67   :  { %123 = vsyncpa [#allocation57], 0 }
  0x68   :  { %124 = vsyncpa [#allocation7], 0  ;;  %s10406_s0 = smov [#allocation8]   ;;  %s9526_s16 = scalar_lea.hbm %s10475_s17, 16 }
  0x69   :  { %s147_s15 = sshll.u32 %s10406_s0, 4  ;;  %p9527_p0 = scmp.ne.s32.totalorder %s10475_s17, %s9526_s16  ;;  %s148_s15 = int_to_ptr.vmem [resolvable:$true] %s147_s15 }
  0x6a   :  { %p9530_p1 = scmp.lt.u32.totalorder %s9526_s16, %s10475_s17 }
  0x6c   :  { %p9532_p2 = pnand %p9530_p1, %p9527_p0 }
  0x6e   :  { %9535 = shalt.err (!%p9532_p2)
}
  0x6f   :  { %s9536_s18 = scalar_lea.vmem %s148_s15, 16  ;;  %s9540_s22 = scalar_lea.vmem %s148_s15, 32 }
  0x70   :  { %p9537_p3 = scmp.ne.s32.totalorder %s148_s15, %s9536_s18  ;;  %p9541_p4 = scmp.lt.s32.totalorder %s148_s15, %s148_s15 }
  0x71   :  { %p9542_p5 = scmp.lt.s32.totalorder %s9540_s22, %s9536_s18 }
  0x73   :  { %p9543_p6 = por %p9542_p5, %p9541_p4 }
  0x75   :  { %p9544_p7 = pnand %p9543_p6, %p9537_p3 }
  0x77   :  { %9547 = shalt.err (!%p9544_p7)
}
  0x78   :  { %150 = dma.hbm_to_vmem [thread:$0]  %s10475_s17, 16, %s148_s15, [#allocation9]  }
  0x79   :  { %s10407_s23 = smov [#allocation11]   ;;  %s10408_s28 = smov [#allocation14]  }
  0x7a   :  { %s168_s26 = sshll.u32 %s10407_s23, 4  ;;  %s192_s1 = sshll.u32 %s10408_s28, 4  ;;  %s169_s26 = int_to_ptr.vmem [resolvable:$true] %s168_s26  ;;  %s193_s1 = int_to_ptr.vmem [resolvable:$true] %s192_s1 }
  0x7b   :  { %s9548_s2 = scalar_lea.hbm %s10490_s29, 256 }
  0x7c   :  { %p9549_p8 = scmp.ne.s32.totalorder %s10490_s29, %s9548_s2  ;;  %p9552_p9 = scmp.lt.u32.totalorder %s9548_s2, %s10490_s29 }
  0x7e   :  { %p9554_p10 = pnand %p9552_p9, %p9549_p8 }
  0x80   :  { %9557 = shalt.err (!%p9554_p10)
}
  0x81   :  { %s9558_s7 = scalar_lea.vmem %s169_s26, 256  ;;  %p9563_p12 = scmp.lt.s32.totalorder %s169_s26, %s169_s26 }
  0x82   :  { %p9559_p11 = scmp.ne.s32.totalorder %s169_s26, %s9558_s7  ;;  %p9564_p13 = scmp.lt.s32.totalorder %s9558_s7, %s9558_s7 }
  0x84   :  { %p9565_p0 = por %p9564_p13, %p9563_p12 }
  0x86   :  { %p9566_p1 = pnand %p9565_p0, %p9559_p11 }
  0x88   :  { %9569 = shalt.err (!%p9566_p1)
}
  0x89   :  { %s10409_s10 = smov 128   ;;  %s10410_s17 = smov 8  }
  0x8a   :  { %174 = dma.hbm_to_vmem [thread:$0]  %s10490_s29, 256, %s169_s26, [#allocation12], %s10409_s10, %s10409_s10, %s10410_s17  }
  0x8b   :  { %s9570_s11 = scalar_lea.hbm %s10505_s14, 256 }
  0x8c   :  { %p9571_p2 = scmp.ne.s32.totalorder %s10505_s14, %s9570_s11  ;;  %p9574_p3 = scmp.lt.u32.totalorder %s9570_s11, %s10505_s14 }
  0x8e   :  { %p9576_p4 = pnand %p9574_p3, %p9571_p2 }
  0x90   :  { %9579 = shalt.err (!%p9576_p4)
}
  0x91   :  { %s9580_s0 = scalar_lea.vmem %s193_s1, 256  ;;  %p9585_p6 = scmp.lt.s32.totalorder %s193_s1, %s193_s1 }
  0x92   :  { %p9581_p5 = scmp.ne.s32.totalorder %s193_s1, %s9580_s0  ;;  %p9586_p7 = scmp.lt.s32.totalorder %s9580_s0, %s9580_s0 }
  0x94   :  { %p9587_p8 = por %p9586_p7, %p9585_p6 }
  0x96   :  { %p9588_p9 = pnand %p9587_p8, %p9581_p5 }
  0x98   :  { %9591 = shalt.err (!%p9588_p9)
}
  0x99   :  { %198 = dma.hbm_to_vmem [thread:$0]  %s10505_s14, 256, %s193_s1, [#allocation15], %s10409_s10, %s10409_s10, %s10410_s17  }
  0x9a   :  { %s10411_s29 = smov [#allocation17]   ;;  %s10412_s16 = smov [#allocation20]  }
  0x9b   :  { %s219_s15 = sshll.u32 %s10411_s29, 4  ;;  %s240_s18 = sshll.u32 %s10412_s16, 4  ;;  %s220_s15 = int_to_ptr.vmem [resolvable:$true] %s219_s15  ;;  %s241_s18 = int_to_ptr.vmem [resolvable:$true] %s240_s18 }
  0x9c   :  { %s9592_s22 = scalar_lea.hbm %s10525_s6, 16 }
  0x9d   :  { %p9593_p10 = scmp.ne.s32.totalorder %s10525_s6, %s9592_s22  ;;  %p9596_p11 = scmp.lt.u32.totalorder %s9592_s22, %s10525_s6 }
  0x9f   :  { %p9598_p12 = pnand %p9596_p11, %p9593_p10 }
  0xa1   :  { %9601 = shalt.err (!%p9598_p12)
}
  0xa2   :  { %s9602_s23 = scalar_lea.vmem %s220_s15, 16  ;;  %s9606_s26 = scalar_lea.vmem %s220_s15, 32 }
  0xa3   :  { %p9603_p13 = scmp.ne.s32.totalorder %s220_s15, %s9602_s23  ;;  %p9607_p0 = scmp.lt.s32.totalorder %s220_s15, %s220_s15 }
  0xa4   :  { %p9608_p1 = scmp.lt.s32.totalorder %s9606_s26, %s9602_s23 }
  0xa6   :  { %p9609_p2 = por %p9608_p1, %p9607_p0 }
  0xa8   :  { %p9610_p3 = pnand %p9609_p2, %p9603_p13 }
  0xaa   :  { %9613 = shalt.err (!%p9610_p3)
}
  0xab   :  { %222 = dma.hbm_to_vmem [thread:$0]  %s10525_s6, 16, %s220_s15, [#allocation18]  }
  0xac   :  { %s9614_s14 = scalar_lea.hbm %s10540_s27, 256 }
  0xad   :  { %p9615_p4 = scmp.ne.s32.totalorder %s10540_s27, %s9614_s14  ;;  %p9618_p5 = scmp.lt.u32.totalorder %s9614_s14, %s10540_s27 }
  0xaf   :  { %p9620_p6 = pnand %p9618_p5, %p9615_p4 }
  0xb1   :  { %9623 = shalt.err (!%p9620_p6)
}
  0xb2   :  { %s9624_s28 = scalar_lea.vmem %s241_s18, 256  ;;  %p9629_p8 = scmp.lt.s32.totalorder %s241_s18, %s241_s18 }
  0xb3   :  { %p9625_p7 = scmp.ne.s32.totalorder %s241_s18, %s9624_s28  ;;  %p9630_p9 = scmp.lt.s32.totalorder %s9624_s28, %s9624_s28 }
  0xb5   :  { %p9631_p10 = por %p9630_p9, %p9629_p8 }
  0xb7   :  { %p9632_p11 = pnand %p9631_p10, %p9625_p7 }
  0xb9   :  { %9635 = shalt.err (!%p9632_p11)
}
  0xba   :  { %246 = dma.hbm_to_vmem [thread:$0]  %s10540_s27, 256, %s241_s18, [#allocation21], %s10409_s10, %s10409_s10, %s10410_s17  }
  0xbb   :  { %s10413_s6 = smov [#allocation23]   ;;  %s10414_s2 = smov [#allocation26]  }
  0xbc   :  { %s267_s1 = sshll.u32 %s10413_s6, 4  ;;  %s287_s7 = sshll.u32 %s10414_s2, 4  ;;  %s268_s1 = int_to_ptr.vmem [resolvable:$true] %s267_s1  ;;  %s288_s7 = int_to_ptr.vmem [resolvable:$true] %s287_s7 }
  0xbd   :  { %s9636_s11 = scalar_lea.hbm %s10560_s24, 64 }
  0xbe   :  { %p9637_p12 = scmp.ne.s32.totalorder %s10560_s24, %s9636_s11  ;;  %p9640_p13 = scmp.lt.u32.totalorder %s9636_s11, %s10560_s24 }
  0xc0   :  { %p9642_p0 = pnand %p9640_p13, %p9637_p12 }
  0xc2   :  { %9645 = shalt.err (!%p9642_p0)
}
  0xc3   :  { %s9646_s0 = scalar_lea.vmem %s268_s1, 64  ;;  %p9651_p2 = scmp.lt.s32.totalorder %s268_s1, %s268_s1 }
  0xc4   :  { %p9647_p1 = scmp.ne.s32.totalorder %s268_s1, %s9646_s0  ;;  %p9652_p3 = scmp.lt.s32.totalorder %s9646_s0, %s9646_s0 }
  0xc6   :  { %p9653_p4 = por %p9652_p3, %p9651_p2 }
  0xc8   :  { %p9654_p5 = pnand %p9653_p4, %p9647_p1 }
  0xca   :  { %9657 = shalt.err (!%p9654_p5)
}
  0xcb   :  { %270 = dma.hbm_to_vmem [thread:$0]  %s10560_s24, 64, %s268_s1, [#allocation24]  }
  0xcc   :  { %s9658_s27 = scalar_lea.hbm %s10570_s19, 16 }
  0xcd   :  { %p9659_p6 = scmp.ne.s32.totalorder %s10570_s19, %s9658_s27  ;;  %p9662_p7 = scmp.lt.u32.totalorder %s9658_s27, %s10570_s19 }
  0xcf   :  { %p9664_p8 = pnand %p9662_p7, %p9659_p6 }
  0xd1   :  { %9667 = shalt.err (!%p9664_p8)
}
  0xd2   :  { %s9668_s29 = scalar_lea.vmem %s288_s7, 16  ;;  %s9672_s15 = scalar_lea.vmem %s288_s7, 32 }
  0xd3   :  { %p9669_p9 = scmp.ne.s32.totalorder %s288_s7, %s9668_s29  ;;  %p9673_p10 = scmp.lt.s32.totalorder %s288_s7, %s288_s7 }
  0xd4   :  { %p9674_p11 = scmp.lt.s32.totalorder %s9672_s15, %s9668_s29 }
  0xd6   :  { %p9675_p12 = por %p9674_p11, %p9673_p10 }
  0xd8   :  { %p9676_p13 = pnand %p9675_p12, %p9669_p9 }
  0xda   :  { %9679 = shalt.err (!%p9676_p13)
}
  0xdb   :  { %290 = dma.hbm_to_vmem [thread:$0]  %s10570_s19, 16, %s288_s7, [#allocation27]  }
  0xdc   :  { %s10415_s24 = smov [#allocation29]   ;;  %s10416_s18 = smov [#allocation32]  }
  0xdd   :  { %s308_s16 = sshll.u32 %s10415_s24, 4  ;;  %s335_s22 = sshll.u32 %s10416_s18, 4  ;;  %s309_s16 = int_to_ptr.vmem [resolvable:$true] %s308_s16  ;;  %s336_s22 = int_to_ptr.vmem [resolvable:$true] %s335_s22 }
  0xde   :  { %s9680_s23 = scalar_lea.hbm %s10585_s25, 256 }
  0xdf   :  { %p9681_p0 = scmp.ne.s32.totalorder %s10585_s25, %s9680_s23  ;;  %p9684_p1 = scmp.lt.u32.totalorder %s9680_s23, %s10585_s25 }
  0xe1   :  { %p9686_p2 = pnand %p9684_p1, %p9681_p0 }
  0xe3   :  { %9689 = shalt.err (!%p9686_p2)
}
  0xe4   :  { %s9690_s26 = scalar_lea.vmem %s309_s16, 256  ;;  %p9695_p4 = scmp.lt.s32.totalorder %s309_s16, %s309_s16 }
  0xe5   :  { %p9691_p3 = scmp.ne.s32.totalorder %s309_s16, %s9690_s26  ;;  %p9696_p5 = scmp.lt.s32.totalorder %s9690_s26, %s9690_s26 }
  0xe7   :  { %p9697_p6 = por %p9696_p5, %p9695_p4 }
  0xe9   :  { %p9698_p7 = pnand %p9697_p6, %p9691_p3 }
  0xeb   :  { %9701 = shalt.err (!%p9698_p7)
}
  0xec   :  { %314 = dma.hbm_to_vmem [thread:$0]  %s10585_s25, 256, %s309_s16, [#allocation30], %s10409_s10, %s10409_s10, %s10410_s17  }
  0xed   :  { %s9702_s19 = scalar_lea.hbm %s10600_s13, 16 }
  0xee   :  { %p9703_p8 = scmp.ne.s32.totalorder %s10600_s13, %s9702_s19  ;;  %p9706_p9 = scmp.lt.u32.totalorder %s9702_s19, %s10600_s13 }
  0xf0   :  { %p9708_p10 = pnand %p9706_p9, %p9703_p8 }
  0xf2   :  { %9711 = shalt.err (!%p9708_p10)
}
  0xf3   :  { %s9712_s14 = scalar_lea.vmem %s336_s22, 16  ;;  %s9716_s28 = scalar_lea.vmem %s336_s22, 32 }
  0xf4   :  { %p9713_p11 = scmp.ne.s32.totalorder %s336_s22, %s9712_s14  ;;  %p9717_p12 = scmp.lt.s32.totalorder %s336_s22, %s336_s22 }
  0xf5   :  { %p9718_p13 = scmp.lt.s32.totalorder %s9716_s28, %s9712_s14 }
  0xf7   :  { %p9719_p0 = por %p9718_p13, %p9717_p12 }
  0xf9   :  { %p9720_p1 = pnand %p9719_p0, %p9713_p11 }
  0xfb   :  { %9723 = shalt.err (!%p9720_p1)
}
  0xfc   :  { %338 = dma.hbm_to_vmem [thread:$0]  %s10600_s13, 16, %s336_s22, [#allocation33]  }
  0xfd   :  { %s10417_s25 = smov [#allocation35]   ;;  %s10418_s1 = smov [#allocation38]  }
  0xfe   :  { %s355_s6 = sshll.u32 %s10417_s25, 4  ;;  %s379_s2 = sshll.u32 %s10418_s1, 4  ;;  %s356_s6 = int_to_ptr.vmem [resolvable:$true] %s355_s6  ;;  %s380_s2 = int_to_ptr.vmem [resolvable:$true] %s379_s2 }
  0xff   :  { %s9724_s7 = scalar_lea.hbm %s10610_s5, 16 }
 0x100   :  { %p9725_p2 = scmp.ne.s32.totalorder %s10610_s5, %s9724_s7  ;;  %p9728_p3 = scmp.lt.u32.totalorder %s9724_s7, %s10610_s5 }
 0x102   :  { %p9730_p4 = pnand %p9728_p3, %p9725_p2 }
 0x104   :  { %9733 = shalt.err (!%p9730_p4)
}
 0x105   :  { %s9734_s11 = scalar_lea.vmem %s356_s6, 16  ;;  %s9738_s0 = scalar_lea.vmem %s356_s6, 32 }
 0x106   :  { %p9735_p5 = scmp.ne.s32.totalorder %s356_s6, %s9734_s11  ;;  %p9739_p6 = scmp.lt.s32.totalorder %s356_s6, %s356_s6 }
 0x107   :  { %p9740_p7 = scmp.lt.s32.totalorder %s9738_s0, %s9734_s11 }
 0x109   :  { %p9741_p8 = por %p9740_p7, %p9739_p6 }
 0x10b   :  { %p9742_p9 = pnand %p9741_p8, %p9735_p5 }
 0x10d   :  { %9745 = shalt.err (!%p9742_p9)
}
 0x10e   :  { %358 = dma.hbm_to_vmem [thread:$0]  %s10610_s5, 16, %s356_s6, [#allocation36]  }
 0x10f   :  { %s9746_s13 = scalar_lea.hbm %s10625_s8, 64 }
 0x110   :  { %p9747_p10 = scmp.ne.s32.totalorder %s10625_s8, %s9746_s13  ;;  %p9750_p11 = scmp.lt.u32.totalorder %s9746_s13, %s10625_s8 }
 0x112   :  { %p9752_p12 = pnand %p9750_p11, %p9747_p10 }
 0x114   :  { %9755 = shalt.err (!%p9752_p12)
}
 0x115   :  { %s9756_s27 = scalar_lea.vmem %s380_s2, 64  ;;  %p9761_p0 = scmp.lt.s32.totalorder %s380_s2, %s380_s2 }
 0x116   :  { %p9757_p13 = scmp.ne.s32.totalorder %s380_s2, %s9756_s27  ;;  %p9762_p1 = scmp.lt.s32.totalorder %s9756_s27, %s9756_s27 }
 0x118   :  { %p9763_p2 = por %p9762_p1, %p9761_p0 }
 0x11a   :  { %p9764_p3 = pnand %p9763_p2, %p9757_p13 }
 0x11c   :  { %9767 = shalt.err (!%p9764_p3)
}
 0x11d   :  { %382 = dma.hbm_to_vmem [thread:$0]  %s10625_s8, 64, %s380_s2, [#allocation39]  }
 0x11e   :  { %s10419_s29 = smov [#allocation41]   ;;  %s10420_s15 = smov [#allocation44]  }
 0x11f   :  { %s402_s5 = sshll.u32 %s10419_s29, 4  ;;  %s424_s24 = sshll.u32 %s10420_s15, 4  ;;  %s403_s5 = int_to_ptr.vmem [resolvable:$true] %s402_s5  ;;  %s425_s24 = int_to_ptr.vmem [resolvable:$true] %s424_s24 }
 0x120   :  { %s9768_s16 = scalar_lea.hbm %s10645_s30, 2048 }
 0x121   :  { %p9769_p4 = scmp.ne.s32.totalorder %s10645_s30, %s9768_s16  ;;  %p9772_p5 = scmp.lt.u32.totalorder %s9768_s16, %s10645_s30 }
 0x123   :  { %p9774_p6 = pnand %p9772_p5, %p9769_p4 }
 0x125   :  { %9777 = shalt.err (!%p9774_p6)
}
 0x126   :  { %s9778_s18 = scalar_lea.vmem %s403_s5, 2048  ;;  %p9783_p8 = scmp.lt.s32.totalorder %s403_s5, %s403_s5 }
 0x127   :  { %p9779_p7 = scmp.ne.s32.totalorder %s403_s5, %s9778_s18  ;;  %p9784_p9 = scmp.lt.s32.totalorder %s9778_s18, %s9778_s18 }
 0x129   :  { %p9785_p10 = por %p9784_p9, %p9783_p8 }
 0x12b   :  { %p9786_p11 = pnand %p9785_p10, %p9779_p7 }
 0x12d   :  { %9789 = shalt.err (!%p9786_p11)
}
 0x12e   :  { %408 = dma.hbm_to_vmem [thread:$0]  %s10645_s30, 2048, %s403_s5, [#allocation42], %s10409_s10, %s10409_s10, %s10410_s17  }
 0x12f   :  { %s9790_s8 = scalar_lea.hbm %s10655_s20, 2048 }
 0x130   :  { %p9791_p12 = scmp.ne.s32.totalorder %s10655_s20, %s9790_s8  ;;  %p9794_p13 = scmp.lt.u32.totalorder %s9790_s8, %s10655_s20 }
 0x132   :  { %p9796_p0 = pnand %p9794_p13, %p9791_p12 }
 0x134   :  { %9799 = shalt.err (!%p9796_p0)
}
 0x135   :  { %s9800_s22 = scalar_lea.vmem %s425_s24, 2048  ;;  %p9805_p2 = scmp.lt.s32.totalorder %s425_s24, %s425_s24 }
 0x136   :  { %p9801_p1 = scmp.ne.s32.totalorder %s425_s24, %s9800_s22  ;;  %p9806_p3 = scmp.lt.s32.totalorder %s9800_s22, %s9800_s22 }
 0x138   :  { %p9807_p4 = por %p9806_p3, %p9805_p2 }
 0x13a   :  { %p9808_p5 = pnand %p9807_p4, %p9801_p1 }
 0x13c   :  { %9811 = shalt.err (!%p9808_p5)
}
 0x13d   :  { %430 = dma.hbm_to_vmem [thread:$0]  %s10655_s20, 2048, %s425_s24, [#allocation45], %s10409_s10, %s10409_s10, %s10410_s17  }
 0x13e   :  { %s10421_s30 = smov [#allocation47]   ;;  %s10422_s26 = smov [#allocation50]  }
 0x13f   :  { %s446_s23 = sshll.u32 %s10421_s30, 4  ;;  %s469_s19 = sshll.u32 %s10422_s26, 4  ;;  %s447_s23 = int_to_ptr.vmem [resolvable:$true] %s446_s23  ;;  %s470_s19 = int_to_ptr.vmem [resolvable:$true] %s469_s19 }
 0x140   :  { %s9812_s14 = scalar_lea.hbm %s10665_s3, 2048 }
 0x141   :  { %p9813_p6 = scmp.ne.s32.totalorder %s10665_s3, %s9812_s14  ;;  %p9816_p7 = scmp.lt.u32.totalorder %s9812_s14, %s10665_s3 }
 0x143   :  { %p9818_p8 = pnand %p9816_p7, %p9813_p6 }
 0x145   :  { %9821 = shalt.err (!%p9818_p8)
}
 0x146   :  { %s9822_s28 = scalar_lea.vmem %s447_s23, 2048  ;;  %p9827_p10 = scmp.lt.s32.totalorder %s447_s23, %s447_s23 }
 0x147   :  { %p9823_p9 = scmp.ne.s32.totalorder %s447_s23, %s9822_s28  ;;  %p9828_p11 = scmp.lt.s32.totalorder %s9822_s28, %s9822_s28 }
 0x149   :  { %p9829_p12 = por %p9828_p11, %p9827_p10 }
 0x14b   :  { %p9830_p13 = pnand %p9829_p12, %p9823_p9 }
 0x14d   :  { %9833 = shalt.err (!%p9830_p13)
}
 0x14e   :  { %s11837_s20 = sld [smem:[#allocation108_spill]] }
 0x14f   :  { %452 = dma.hbm_to_vmem [thread:$0]  %s10665_s3, 2048, %s447_s23, [#allocation48], %s10409_s10, %s10409_s10, %s10410_s17  }
 0x154   :  { %s9834_s25 = scalar_lea.hbm %s11837_s20, 64 }
 0x155   :  { %p9835_p0 = scmp.ne.s32.totalorder %s11837_s20, %s9834_s25  ;;  %p9838_p1 = scmp.lt.u32.totalorder %s9834_s25, %s11837_s20 }
 0x157   :  { %p9840_p2 = pnand %p9838_p1, %p9835_p0 }
 0x159   :  { %9843 = shalt.err (!%p9840_p2)
}
 0x15a   :  { %s9844_s6 = scalar_lea.vmem %s470_s19, 64  ;;  %p9849_p4 = scmp.lt.s32.totalorder %s470_s19, %s470_s19 }
 0x15b   :  { %p9845_p3 = scmp.ne.s32.totalorder %s470_s19, %s9844_s6  ;;  %p9850_p5 = scmp.lt.s32.totalorder %s9844_s6, %s9844_s6 }
 0x15d   :  { %p9851_p6 = por %p9850_p5, %p9849_p4 }
 0x15f   :  { %p9852_p7 = pnand %p9851_p6, %p9845_p3 }
 0x161   :  { %9855 = shalt.err (!%p9852_p7)
}
 0x162   :  { %s11838_s1 = sld [smem:[#allocation110_spill]]  ;;  %s10423_s2 = smov [#allocation53]  }
 0x163   :  { %472 = dma.hbm_to_vmem [thread:$0]  %s11837_s20, 64, %s470_s19, [#allocation51]  }
 0x164   :  { %s491_s3 = sshll.u32 %s10423_s2, 4  ;;  %s10424_s7 = smov [#allocation56]   ;;  %s492_s3 = int_to_ptr.vmem [resolvable:$true] %s491_s3 }
 0x165   :  { %s513_s11 = sshll.u32 %s10424_s7, 4  ;;  %s514_s11 = int_to_ptr.vmem [resolvable:$true] %s513_s11 }
 0x168   :  { %s9856_s0 = scalar_lea.hbm %s11838_s1, 16 }
 0x169   :  { %p9857_p8 = scmp.ne.s32.totalorder %s11838_s1, %s9856_s0  ;;  %p9860_p9 = scmp.lt.u32.totalorder %s9856_s0, %s11838_s1 }
 0x16b   :  { %p9862_p10 = pnand %p9860_p9, %p9857_p8 }
 0x16d   :  { %9865 = shalt.err (!%p9862_p10)
}
 0x16e   :  { %s9866_s13 = scalar_lea.vmem %s492_s3, 16  ;;  %s9870_s27 = scalar_lea.vmem %s492_s3, 32 }
 0x16f   :  { %p9867_p11 = scmp.ne.s32.totalorder %s492_s3, %s9866_s13  ;;  %p9871_p12 = scmp.lt.s32.totalorder %s492_s3, %s492_s3 }
 0x170   :  { %p9872_p13 = scmp.lt.s32.totalorder %s9870_s27, %s9866_s13 }
 0x172   :  { %p9873_p0 = por %p9872_p13, %p9871_p12 }
 0x174   :  { %p9874_p1 = pnand %p9873_p0, %p9867_p11 }
 0x176   :  { %9877 = shalt.err (!%p9874_p1)
}
 0x177   :  { %494 = dma.hbm_to_vmem [thread:$0]  %s11838_s1, 16, %s492_s3, [#allocation54]  }
 0x178   :  { %s9878_s29 = scalar_lea.hbm %s10695_s21, 16 }
 0x179   :  { %p9879_p2 = scmp.ne.s32.totalorder %s10695_s21, %s9878_s29  ;;  %p9882_p3 = scmp.lt.u32.totalorder %s9878_s29, %s10695_s21 }
 0x17b   :  { %p9884_p4 = pnand %p9882_p3, %p9879_p2 }
 0x17d   :  { %9887 = shalt.err (!%p9884_p4)
}
 0x17e   :  { %s9888_s5 = scalar_lea.vmem %s514_s11, 16  ;;  %s9892_s15 = scalar_lea.vmem %s514_s11, 32 }
 0x17f   :  { %p9889_p5 = scmp.ne.s32.totalorder %s514_s11, %s9888_s5  ;;  %p9893_p6 = scmp.lt.s32.totalorder %s514_s11, %s514_s11 }
 0x180   :  { %p9894_p7 = scmp.lt.s32.totalorder %s9892_s15, %s9888_s5 }
 0x182   :  { %p9895_p8 = por %p9894_p7, %p9893_p6 }
 0x184   :  { %p9896_p9 = pnand %p9895_p8, %p9889_p5 }
 0x186   :  { %9899 = shalt.err (!%p9896_p9)
}
 0x187   :  { %s11839_s24 = sld [smem:[#allocation80_spill]]  ;;  %s10425_s16 = smov [#allocation5]  }
 0x188   :  { %516 = dma.hbm_to_vmem [thread:$0]  %s10695_s21, 16, %s514_s11, [#allocation57]  }
 0x189   :  { %s132_s18 = sshll.u32 %s10425_s16, 4  ;;  %s10426_s8 = smov [#allocation10]   ;;  %s133_s18 = int_to_ptr.vmem [resolvable:$true] %s132_s18 }
 0x18a   :  { %s157_s22 = sshll.u32 %s10426_s8, 4  ;;  %s158_s22 = int_to_ptr.vmem [resolvable:$true] %s157_s22 }
 0x18d   :  { %s9900_s30 = scalar_lea.hbm %s11839_s24, 512 }
 0x18e   :  { %p9901_p10 = scmp.ne.s32.totalorder %s11839_s24, %s9900_s30  ;;  %p9904_p11 = scmp.lt.u32.totalorder %s9900_s30, %s11839_s24 }
 0x190   :  { %p9906_p12 = pnand %p9904_p11, %p9901_p10 }
 0x192   :  { %9909 = shalt.err (!%p9906_p12)
}
 0x193   :  { %s9910_s23 = scalar_lea.vmem %s133_s18, 512  ;;  %p9915_p0 = scmp.lt.s32.totalorder %s133_s18, %s133_s18 }
 0x194   :  { %p9911_p13 = scmp.ne.s32.totalorder %s133_s18, %s9910_s23  ;;  %p9916_p1 = scmp.lt.s32.totalorder %s9910_s23, %s9910_s23 }
 0x196   :  { %p9917_p2 = por %p9916_p1, %p9915_p0 }
 0x198   :  { %p9918_p3 = pnand %p9917_p2, %p9911_p13 }
 0x19a   :  { %9921 = shalt.err (!%p9918_p3)
}
 0x19b   :  { %s11840_s21 = sld [smem:[#allocation82_spill]] }
 0x19c   :  { %138 = dma.hbm_to_vmem [thread:$0]  %s11839_s24, 512, %s133_s18, [#allocation6], %s10409_s10, %s10409_s10, %s10410_s17  }
 0x1a1   :  { %s9922_s26 = scalar_lea.hbm %s11840_s21, 16 }
 0x1a2   :  { %p9923_p4 = scmp.ne.s32.totalorder %s11840_s21, %s9922_s26  ;;  %p9926_p5 = scmp.lt.u32.totalorder %s9922_s26, %s11840_s21 }
 0x1a4   :  { %p9928_p6 = pnand %p9926_p5, %p9923_p4 }
 0x1a6   :  { %9931 = shalt.err (!%p9928_p6)
}
 0x1a7   :  { %s9932_s19 = scalar_lea.vmem %s158_s22, 16  ;;  %s9936_s14 = scalar_lea.vmem %s158_s22, 32 }
 0x1a8   :  { %p9933_p7 = scmp.ne.s32.totalorder %s158_s22, %s9932_s19  ;;  %p9937_p8 = scmp.lt.s32.totalorder %s158_s22, %s158_s22 }
 0x1a9   :  { %p9938_p9 = scmp.lt.s32.totalorder %s9936_s14, %s9932_s19 }
 0x1ab   :  { %p9939_p10 = por %p9938_p9, %p9937_p8 }
 0x1ad   :  { %p9940_p11 = pnand %p9939_p10, %p9933_p7 }
 0x1af   :  { %9943 = shalt.err (!%p9940_p11)
}
 0x1b0   :  { %s11841_s28 = sld [smem:[#allocation84_spill]]  ;;  %s10427_s20 = smov [#allocation13]  }
 0x1b1   :  { %160 = dma.hbm_to_vmem [thread:$0]  %s11840_s21, 16, %s158_s22, [#allocation9]  }
 0x1b2   :  { %s181_s25 = sshll.u32 %s10427_s20, 4  ;;  %s10428_s6 = smov [#allocation16]   ;;  %s182_s25 = int_to_ptr.vmem [resolvable:$true] %s181_s25 }
 0x1b3   :  { %s209_s1 = sshll.u32 %s10428_s6, 4  ;;  %s210_s1 = int_to_ptr.vmem [resolvable:$true] %s209_s1 }
 0x1b6   :  { %s9944_s2 = scalar_lea.hbm %s11841_s28, 64 }
 0x1b7   :  { %p9945_p12 = scmp.ne.s32.totalorder %s11841_s28, %s9944_s2  ;;  %p9948_p13 = scmp.lt.u32.totalorder %s9944_s2, %s11841_s28 }
 0x1b9   :  { %p9950_p0 = pnand %p9948_p13, %p9945_p12 }
 0x1bb   :  { %9953 = shalt.err (!%p9950_p0)
}
 0x1bc   :  { %s9954_s3 = scalar_lea.vmem %s182_s25, 64  ;;  %p9959_p2 = scmp.lt.s32.totalorder %s182_s25, %s182_s25 }
 0x1bd   :  { %p9955_p1 = scmp.ne.s32.totalorder %s182_s25, %s9954_s3  ;;  %p9960_p3 = scmp.lt.s32.totalorder %s9954_s3, %s9954_s3 }
 0x1bf   :  { %p9961_p4 = por %p9960_p3, %p9959_p2 }
 0x1c1   :  { %p9962_p5 = pnand %p9961_p4, %p9955_p1 }
 0x1c3   :  { %9965 = shalt.err (!%p9962_p5)
}
 0x1c4   :  { %s11842_s7 = sld [smem:[#allocation88_spill]] }
 0x1c5   :  { %184 = dma.hbm_to_vmem [thread:$0]  %s11841_s28, 64, %s182_s25, [#allocation12]  }
 0x1ca   :  { %s9966_s11 = scalar_lea.hbm %s11842_s7, 16 }
 0x1cb   :  { %p9967_p6 = scmp.ne.s32.totalorder %s11842_s7, %s9966_s11  ;;  %p9970_p7 = scmp.lt.u32.totalorder %s9966_s11, %s11842_s7 }
 0x1cd   :  { %p9972_p8 = pnand %p9970_p7, %p9967_p6 }
 0x1cf   :  { %9975 = shalt.err (!%p9972_p8)
}
 0x1d0   :  { %s9976_s0 = scalar_lea.vmem %s210_s1, 16  ;;  %s9980_s13 = scalar_lea.vmem %s210_s1, 32 }
 0x1d1   :  { %p9977_p9 = scmp.ne.s32.totalorder %s210_s1, %s9976_s0  ;;  %p9981_p10 = scmp.lt.s32.totalorder %s210_s1, %s210_s1 }
 0x1d2   :  { %p9982_p11 = scmp.lt.s32.totalorder %s9980_s13, %s9976_s0 }
 0x1d4   :  { %p9983_p12 = por %p9982_p11, %p9981_p10 }
 0x1d6   :  { %p9984_p13 = pnand %p9983_p12, %p9977_p9 }
 0x1d8   :  { %9987 = shalt.err (!%p9984_p13)
}
 0x1d9   :  { %s11843_s27 = sld [smem:[#allocation89_spill]]  ;;  %s10429_s29 = smov [#allocation19]  }
 0x1da   :  { %212 = dma.hbm_to_vmem [thread:$0]  %s11842_s7, 16, %s210_s1, [#allocation15]  }
 0x1db   :  { %s229_s5 = sshll.u32 %s10429_s29, 4  ;;  %s10430_s15 = smov [#allocation22]   ;;  %s230_s5 = int_to_ptr.vmem [resolvable:$true] %s229_s5 }
 0x1dc   :  { %s253_s24 = sshll.u32 %s10430_s15, 4  ;;  %s254_s24 = int_to_ptr.vmem [resolvable:$true] %s253_s24 }
 0x1df   :  { %s9988_s16 = scalar_lea.hbm %s11843_s27, 16 }
 0x1e0   :  { %p9989_p0 = scmp.ne.s32.totalorder %s11843_s27, %s9988_s16  ;;  %p9992_p1 = scmp.lt.u32.totalorder %s9988_s16, %s11843_s27 }
 0x1e2   :  { %p9994_p2 = pnand %p9992_p1, %p9989_p0 }
 0x1e4   :  { %9997 = shalt.err (!%p9994_p2)
}
 0x1e5   :  { %s9998_s18 = scalar_lea.vmem %s230_s5, 16  ;;  %s10002_s8 = scalar_lea.vmem %s230_s5, 32 }
 0x1e6   :  { %p9999_p3 = scmp.ne.s32.totalorder %s230_s5, %s9998_s18  ;;  %p10003_p4 = scmp.lt.s32.totalorder %s230_s5, %s230_s5 }
 0x1e7   :  { %p10004_p5 = scmp.lt.s32.totalorder %s10002_s8, %s9998_s18 }
 0x1e9   :  { %p10005_p6 = por %p10004_p5, %p10003_p4 }
 0x1eb   :  { %p10006_p7 = pnand %p10005_p6, %p9999_p3 }
 0x1ed   :  { %10009 = shalt.err (!%p10006_p7)
}
 0x1ee   :  { %s11844_s22 = sld [smem:[#allocation91_spill]] }
 0x1ef   :  { %232 = dma.hbm_to_vmem [thread:$0]  %s11843_s27, 16, %s230_s5, [#allocation18]  }
 0x1f4   :  { %s10010_s30 = scalar_lea.hbm %s11844_s22, 64 }
 0x1f5   :  { %p10011_p8 = scmp.ne.s32.totalorder %s11844_s22, %s10010_s30  ;;  %p10014_p9 = scmp.lt.u32.totalorder %s10010_s30, %s11844_s22 }
 0x1f7   :  { %p10016_p10 = pnand %p10014_p9, %p10011_p8 }
 0x1f9   :  { %10019 = shalt.err (!%p10016_p10)
}
 0x1fa   :  { %s10020_s23 = scalar_lea.vmem %s254_s24, 64  ;;  %p10025_p12 = scmp.lt.s32.totalorder %s254_s24, %s254_s24 }
 0x1fb   :  { %p10021_p11 = scmp.ne.s32.totalorder %s254_s24, %s10020_s23  ;;  %p10026_p13 = scmp.lt.s32.totalorder %s10020_s23, %s10020_s23 }
 0x1fd   :  { %p10027_p0 = por %p10026_p13, %p10025_p12 }
 0x1ff   :  { %p10028_p1 = pnand %p10027_p0, %p10021_p11 }
 0x201   :  { %10031 = shalt.err (!%p10028_p1)
}
 0x202   :  { %s11845_s21 = sld [smem:[#allocation94_spill]]  ;;  %s10431_s26 = smov [#allocation25]  }
 0x203   :  { %256 = dma.hbm_to_vmem [thread:$0]  %s11844_s22, 64, %s254_s24, [#allocation21]  }
 0x204   :  { %s277_s19 = sshll.u32 %s10431_s26, 4  ;;  %s10432_s14 = smov [#allocation28]   ;;  %s278_s19 = int_to_ptr.vmem [resolvable:$true] %s277_s19 }
 0x205   :  { %s297_s28 = sshll.u32 %s10432_s14, 4  ;;  %s298_s28 = int_to_ptr.vmem [resolvable:$true] %s297_s28 }
 0x208   :  { %s10032_s20 = scalar_lea.hbm %s11845_s21, 16 }
 0x209   :  { %p10033_p2 = scmp.ne.s32.totalorder %s11845_s21, %s10032_s20  ;;  %p10036_p3 = scmp.lt.u32.totalorder %s10032_s20, %s11845_s21 }
 0x20b   :  { %p10038_p4 = pnand %p10036_p3, %p10033_p2 }
 0x20d   :  { %10041 = shalt.err (!%p10038_p4)
}
 0x20e   :  { %s10042_s25 = scalar_lea.vmem %s278_s19, 16  ;;  %s10046_s6 = scalar_lea.vmem %s278_s19, 32 }
 0x20f   :  { %p10043_p5 = scmp.ne.s32.totalorder %s278_s19, %s10042_s25  ;;  %p10047_p6 = scmp.lt.s32.totalorder %s278_s19, %s278_s19 }
 0x210   :  { %p10048_p7 = scmp.lt.s32.totalorder %s10046_s6, %s10042_s25 }
 0x212   :  { %p10049_p8 = por %p10048_p7, %p10047_p6 }
 0x214   :  { %p10050_p9 = pnand %p10049_p8, %p10043_p5 }
 0x216   :  { %10053 = shalt.err (!%p10050_p9)
}
 0x217   :  { %s11846_s1 = sld [smem:[#allocation95_spill]] }
 0x218   :  { %280 = dma.hbm_to_vmem [thread:$0]  %s11845_s21, 16, %s278_s19, [#allocation24]  }
 0x21d   :  { %s10054_s2 = scalar_lea.hbm %s11846_s1, 16 }
 0x21e   :  { %p10055_p10 = scmp.ne.s32.totalorder %s11846_s1, %s10054_s2  ;;  %p10058_p11 = scmp.lt.u32.totalorder %s10054_s2, %s11846_s1 }
 0x220   :  { %p10060_p12 = pnand %p10058_p11, %p10055_p10 }
 0x222   :  { %10063 = shalt.err (!%p10060_p12)
}
 0x223   :  { %s10064_s3 = scalar_lea.vmem %s298_s28, 16  ;;  %s10068_s7 = scalar_lea.vmem %s298_s28, 32 }
 0x224   :  { %p10065_p13 = scmp.ne.s32.totalorder %s298_s28, %s10064_s3  ;;  %p10069_p0 = scmp.lt.s32.totalorder %s298_s28, %s298_s28 }
 0x225   :  { %p10070_p1 = scmp.lt.s32.totalorder %s10068_s7, %s10064_s3 }
 0x227   :  { %p10071_p2 = por %p10070_p1, %p10069_p0 }
 0x229   :  { %p10072_p3 = pnand %p10071_p2, %p10065_p13 }
 0x22b   :  { %10075 = shalt.err (!%p10072_p3)
}
 0x22c   :  { %s11847_s11 = sld [smem:[#allocation97_spill]]  ;;  %s10433_s0 = smov [#allocation31]  }
 0x22d   :  { %300 = dma.hbm_to_vmem [thread:$0]  %s11846_s1, 16, %s298_s28, [#allocation27]  }
 0x22e   :  { %s320_s13 = sshll.u32 %s10433_s0, 4  ;;  %s10434_s27 = smov [#allocation34]   ;;  %s321_s13 = int_to_ptr.vmem [resolvable:$true] %s320_s13 }
 0x22f   :  { %s345_s29 = sshll.u32 %s10434_s27, 4  ;;  %s346_s29 = int_to_ptr.vmem [resolvable:$true] %s345_s29 }
 0x232   :  { %s10076_s5 = scalar_lea.hbm %s11847_s11, 1536 }
 0x233   :  { %p10077_p4 = scmp.ne.s32.totalorder %s11847_s11, %s10076_s5  ;;  %p10080_p5 = scmp.lt.u32.totalorder %s10076_s5, %s11847_s11 }
 0x235   :  { %p10082_p6 = pnand %p10080_p5, %p10077_p4 }
 0x237   :  { %10085 = shalt.err (!%p10082_p6)
}
 0x238   :  { %s10086_s15 = scalar_lea.vmem %s321_s13, 1536  ;;  %p10091_p8 = scmp.lt.s32.totalorder %s321_s13, %s321_s13 }
 0x239   :  { %p10087_p7 = scmp.ne.s32.totalorder %s321_s13, %s10086_s15  ;;  %p10092_p9 = scmp.lt.s32.totalorder %s10086_s15, %s10086_s15 }
 0x23b   :  { %p10093_p10 = por %p10092_p9, %p10091_p8 }
 0x23d   :  { %p10094_p11 = pnand %p10093_p10, %p10087_p7 }
 0x23f   :  { %10097 = shalt.err (!%p10094_p11)
}
 0x240   :  { %s11848_s24 = sld [smem:[#allocation99_spill]] }
 0x241   :  { %326 = dma.hbm_to_vmem [thread:$0]  %s11847_s11, 1536, %s321_s13, [#allocation30], %s10409_s10, %s10409_s10, %s10410_s17  }
 0x246   :  { %s10098_s16 = scalar_lea.hbm %s11848_s24, 16 }
 0x247   :  { %p10099_p12 = scmp.ne.s32.totalorder %s11848_s24, %s10098_s16  ;;  %p10102_p13 = scmp.lt.u32.totalorder %s10098_s16, %s11848_s24 }
 0x249   :  { %p10104_p0 = pnand %p10102_p13, %p10099_p12 }
 0x24b   :  { %10107 = shalt.err (!%p10104_p0)
}
 0x24c   :  { %s10108_s18 = scalar_lea.vmem %s346_s29, 16  ;;  %s10112_s8 = scalar_lea.vmem %s346_s29, 32 }
 0x24d   :  { %p10109_p1 = scmp.ne.s32.totalorder %s346_s29, %s10108_s18  ;;  %p10113_p2 = scmp.lt.s32.totalorder %s346_s29, %s346_s29 }
 0x24e   :  { %p10114_p3 = scmp.lt.s32.totalorder %s10112_s8, %s10108_s18 }
 0x250   :  { %p10115_p4 = por %p10114_p3, %p10113_p2 }
 0x252   :  { %p10116_p5 = pnand %p10115_p4, %p10109_p1 }
 0x254   :  { %10119 = shalt.err (!%p10116_p5)
}
 0x255   :  { %s11849_s22 = sld [smem:[#allocation101_spill]]  ;;  %s10435_s30 = smov [#allocation37]  }
 0x256   :  { %348 = dma.hbm_to_vmem [thread:$0]  %s11848_s24, 16, %s346_s29, [#allocation33]  }
 0x257   :  { %s366_s23 = sshll.u32 %s10435_s30, 4  ;;  %s10436_s21 = smov [#allocation40]   ;;  %s367_s23 = int_to_ptr.vmem [resolvable:$true] %s366_s23 }
 0x258   :  { %s393_s26 = sshll.u32 %s10436_s21, 4  ;;  %s394_s26 = int_to_ptr.vmem [resolvable:$true] %s393_s26 }
 0x25b   :  { %s10120_s19 = scalar_lea.hbm %s11849_s22, 256 }
 0x25c   :  { %p10121_p6 = scmp.ne.s32.totalorder %s11849_s22, %s10120_s19  ;;  %p10124_p7 = scmp.lt.u32.totalorder %s10120_s19, %s11849_s22 }
 0x25e   :  { %p10126_p8 = pnand %p10124_p7, %p10121_p6 }
 0x260   :  { %10129 = shalt.err (!%p10126_p8)
}
 0x261   :  { %s10130_s14 = scalar_lea.vmem %s367_s23, 256  ;;  %p10135_p10 = scmp.lt.s32.totalorder %s367_s23, %s367_s23 }
 0x262   :  { %p10131_p9 = scmp.ne.s32.totalorder %s367_s23, %s10130_s14  ;;  %p10136_p11 = scmp.lt.s32.totalorder %s10130_s14, %s10130_s14 }
 0x264   :  { %p10137_p12 = por %p10136_p11, %p10135_p10 }
 0x266   :  { %p10138_p13 = pnand %p10137_p12, %p10131_p9 }
 0x268   :  { %10141 = shalt.err (!%p10138_p13)
}
 0x269   :  { %s11850_s28 = sld [smem:[#allocation104_spill]] }
 0x26a   :  { %372 = dma.hbm_to_vmem [thread:$0]  %s11849_s22, 256, %s367_s23, [#allocation36], %s10409_s10, %s10409_s10, %s10410_s17  }
 0x26f   :  { %s10142_s20 = scalar_lea.hbm %s11850_s28, 16 }
 0x270   :  { %p10143_p0 = scmp.ne.s32.totalorder %s11850_s28, %s10142_s20  ;;  %p10146_p1 = scmp.lt.u32.totalorder %s10142_s20, %s11850_s28 }
 0x272   :  { %p10148_p2 = pnand %p10146_p1, %p10143_p0 }
 0x274   :  { %10151 = shalt.err (!%p10148_p2)
}
 0x275   :  { %s10152_s25 = scalar_lea.vmem %s394_s26, 16  ;;  %s10156_s6 = scalar_lea.vmem %s394_s26, 32 }
 0x276   :  { %p10153_p3 = scmp.ne.s32.totalorder %s394_s26, %s10152_s25  ;;  %p10157_p4 = scmp.lt.s32.totalorder %s394_s26, %s394_s26 }
 0x277   :  { %p10158_p5 = scmp.lt.s32.totalorder %s10156_s6, %s10152_s25 }
 0x279   :  { %p10159_p6 = por %p10158_p5, %p10157_p4 }
 0x27b   :  { %p10160_p7 = pnand %p10159_p6, %p10153_p3 }
 0x27d   :  { %10163 = shalt.err (!%p10160_p7)
}
 0x27e   :  { %s11851_s1 = sld [smem:[#allocation105_spill]]  ;;  %s10437_s2 = smov [#allocation43]  }
 0x27f   :  { %396 = dma.hbm_to_vmem [thread:$0]  %s11850_s28, 16, %s394_s26, [#allocation39]  }
 0x280   :  { %s415_s3 = sshll.u32 %s10437_s2, 4  ;;  %s10438_s7 = smov [#allocation46]   ;;  %s416_s3 = int_to_ptr.vmem [resolvable:$true] %s415_s3 }
 0x281   :  { %s437_s11 = sshll.u32 %s10438_s7, 4  ;;  %s438_s11 = int_to_ptr.vmem [resolvable:$true] %s437_s11 }
 0x284   :  { %s10164_s0 = scalar_lea.hbm %s11851_s1, 16 }
 0x285   :  { %p10165_p8 = scmp.ne.s32.totalorder %s11851_s1, %s10164_s0  ;;  %p10168_p9 = scmp.lt.u32.totalorder %s10164_s0, %s11851_s1 }
 0x287   :  { %p10170_p10 = pnand %p10168_p9, %p10165_p8 }
 0x289   :  { %10173 = shalt.err (!%p10170_p10)
}
 0x28a   :  { %s10174_s13 = scalar_lea.vmem %s416_s3, 16  ;;  %s10178_s27 = scalar_lea.vmem %s416_s3, 32 }
 0x28b   :  { %p10175_p11 = scmp.ne.s32.totalorder %s416_s3, %s10174_s13  ;;  %p10179_p12 = scmp.lt.s32.totalorder %s416_s3, %s416_s3 }
 0x28c   :  { %p10180_p13 = scmp.lt.s32.totalorder %s10178_s27, %s10174_s13 }
 0x28e   :  { %p10181_p0 = por %p10180_p13, %p10179_p12 }
 0x290   :  { %p10182_p1 = pnand %p10181_p0, %p10175_p11 }
 0x292   :  { %10185 = shalt.err (!%p10182_p1)
}
 0x293   :  { %s11852_s29 = sld [smem:[#allocation106_spill]] }
 0x294   :  { %418 = dma.hbm_to_vmem [thread:$0]  %s11851_s1, 16, %s416_s3, [#allocation42]  }
 0x299   :  { %s10186_s5 = scalar_lea.hbm %s11852_s29, 16 }
 0x29a   :  { %p10187_p2 = scmp.ne.s32.totalorder %s11852_s29, %s10186_s5  ;;  %p10190_p3 = scmp.lt.u32.totalorder %s10186_s5, %s11852_s29 }
 0x29c   :  { %p10192_p4 = pnand %p10190_p3, %p10187_p2 }
 0x29e   :  { %10195 = shalt.err (!%p10192_p4)
}
 0x29f   :  { %s10196_s15 = scalar_lea.vmem %s438_s11, 16  ;;  %s10200_s24 = scalar_lea.vmem %s438_s11, 32 }
 0x2a0   :  { %p10197_p5 = scmp.ne.s32.totalorder %s438_s11, %s10196_s15  ;;  %p10201_p6 = scmp.lt.s32.totalorder %s438_s11, %s438_s11 }
 0x2a1   :  { %p10202_p7 = scmp.lt.s32.totalorder %s10200_s24, %s10196_s15 }
 0x2a3   :  { %p10203_p8 = por %p10202_p7, %p10201_p6 }
 0x2a5   :  { %p10204_p9 = pnand %p10203_p8, %p10197_p5 }
 0x2a7   :  { %10207 = shalt.err (!%p10204_p9)
}
 0x2a8   :  { %s11853_s16 = sld [smem:[#allocation107_spill]]  ;;  %s10439_s18 = smov [#allocation49]  }
 0x2a9   :  { %440 = dma.hbm_to_vmem [thread:$0]  %s11852_s29, 16, %s438_s11, [#allocation45]  }
 0x2aa   :  { %s459_s8 = sshll.u32 %s10439_s18, 4  ;;  %s10440_s22 = smov [#allocation52]   ;;  %s460_s8 = int_to_ptr.vmem [resolvable:$true] %s459_s8 }
 0x2ab   :  { %s478_s30 = sshll.u32 %s10440_s22, 4  ;;  %s479_s30 = int_to_ptr.vmem [resolvable:$true] %s478_s30 }
 0x2ae   :  { %s10208_s23 = scalar_lea.hbm %s11853_s16, 16 }
 0x2af   :  { %p10209_p10 = scmp.ne.s32.totalorder %s11853_s16, %s10208_s23  ;;  %p10212_p11 = scmp.lt.u32.totalorder %s10208_s23, %s11853_s16 }
 0x2b1   :  { %p10214_p12 = pnand %p10212_p11, %p10209_p10 }
 0x2b3   :  { %10217 = shalt.err (!%p10214_p12)
}
 0x2b4   :  { %s10218_s21 = scalar_lea.vmem %s460_s8, 16  ;;  %s10222_s26 = scalar_lea.vmem %s460_s8, 32 }
 0x2b5   :  { %p10219_p13 = scmp.ne.s32.totalorder %s460_s8, %s10218_s21  ;;  %p10223_p0 = scmp.lt.s32.totalorder %s460_s8, %s460_s8 }
 0x2b6   :  { %p10224_p1 = scmp.lt.s32.totalorder %s10222_s26, %s10218_s21 }
 0x2b8   :  { %p10225_p2 = por %p10224_p1, %p10223_p0 }
 0x2ba   :  { %p10226_p3 = pnand %p10225_p2, %p10219_p13 }
 0x2bc   :  { %10229 = shalt.err (!%p10226_p3)
}
 0x2bd   :  { %s11854_s19 = sld [smem:[#allocation109_spill]] }
 0x2be   :  { %462 = dma.hbm_to_vmem [thread:$0]  %s11853_s16, 16, %s460_s8, [#allocation48]  }
 0x2c3   :  { %s10230_s14 = scalar_lea.hbm %s11854_s19, 2048 }
 0x2c4   :  { %p10231_p4 = scmp.ne.s32.totalorder %s11854_s19, %s10230_s14  ;;  %p10234_p5 = scmp.lt.u32.totalorder %s10230_s14, %s11854_s19 }
 0x2c6   :  { %p10236_p6 = pnand %p10234_p5, %p10231_p4 }
 0x2c8   :  { %10239 = shalt.err (!%p10236_p6)
}
 0x2c9   :  { %s10240_s28 = scalar_lea.vmem %s479_s30, 2048  ;;  %p10245_p8 = scmp.lt.s32.totalorder %s479_s30, %s479_s30 }
 0x2ca   :  { %p10241_p7 = scmp.ne.s32.totalorder %s479_s30, %s10240_s28  ;;  %p10246_p9 = scmp.lt.s32.totalorder %s10240_s28, %s10240_s28 }
 0x2cc   :  { %p10247_p10 = por %p10246_p9, %p10245_p8 }
 0x2ce   :  { %p10248_p11 = pnand %p10247_p10, %p10241_p7 }
 0x2d0   :  { %10251 = shalt.err (!%p10248_p11)
}
 0x2d1   :  { %s11855_s20 = sld [smem:[#allocation111_spill]]  ;;  %s10441_s25 = smov [#allocation55]  }
 0x2d2   :  { %484 = dma.hbm_to_vmem [thread:$0]  %s11854_s19, 2048, %s479_s30, [#allocation51], %s10409_s10, %s10409_s10, %s10410_s17  }
 0x2d3   :  { %s500_s6 = sshll.u32 %s10441_s25, 4  ;;  %s10442_s1 = smov [#allocation58]   ;;  %s501_s6 = int_to_ptr.vmem [resolvable:$true] %s500_s6 }
 0x2d4   :  { %s525_s2 = sshll.u32 %s10442_s1, 4  ;;  %s526_s2 = int_to_ptr.vmem [resolvable:$true] %s525_s2 }
 0x2d7   :  { %s10252_s3 = scalar_lea.hbm %s11855_s20, 2048 }
 0x2d8   :  { %p10253_p12 = scmp.ne.s32.totalorder %s11855_s20, %s10252_s3  ;;  %p10256_p13 = scmp.lt.u32.totalorder %s10252_s3, %s11855_s20 }
 0x2da   :  { %p10258_p0 = pnand %p10256_p13, %p10253_p12 }
 0x2dc   :  { %10261 = shalt.err (!%p10258_p0)
}
 0x2dd   :  { %s10262_s7 = scalar_lea.vmem %s501_s6, 2048  ;;  %p10267_p2 = scmp.lt.s32.totalorder %s501_s6, %s501_s6 }
 0x2de   :  { %p10263_p1 = scmp.ne.s32.totalorder %s501_s6, %s10262_s7  ;;  %p10268_p3 = scmp.lt.s32.totalorder %s10262_s7, %s10262_s7 }
 0x2e0   :  { %p10269_p4 = por %p10268_p3, %p10267_p2 }
 0x2e2   :  { %p10270_p5 = pnand %p10269_p4, %p10263_p1 }
 0x2e4   :  { %10273 = shalt.err (!%p10270_p5)
}
 0x2e5   :  { %506 = dma.hbm_to_vmem [thread:$0]  %s11855_s20, 2048, %s501_s6, [#allocation54], %s10409_s10, %s10409_s10, %s10410_s17  }
 0x2e6   :  { %s10274_s11 = scalar_lea.hbm %s10705_s9, 16 }
 0x2e7   :  { %p10275_p6 = scmp.ne.s32.totalorder %s10705_s9, %s10274_s11  ;;  %p10278_p7 = scmp.lt.u32.totalorder %s10274_s11, %s10705_s9 }
 0x2e9   :  { %p10280_p8 = pnand %p10278_p7, %p10275_p6 }
 0x2eb   :  { %10283 = shalt.err (!%p10280_p8)
}
 0x2ec   :  { %s10284_s0 = scalar_lea.vmem %s526_s2, 16  ;;  %s10288_s13 = scalar_lea.vmem %s526_s2, 32 }
 0x2ed   :  { %p10285_p9 = scmp.ne.s32.totalorder %s526_s2, %s10284_s0  ;;  %p10289_p10 = scmp.lt.s32.totalorder %s526_s2, %s526_s2 }
 0x2ee   :  { %p10290_p11 = scmp.lt.s32.totalorder %s10288_s13, %s10284_s0 }
 0x2f0   :  { %p10291_p12 = por %p10290_p11, %p10289_p10 }
 0x2f2   :  { %p10292_p13 = pnand %p10291_p12, %p10285_p9 }
 0x2f4   :  { %10295 = shalt.err (!%p10292_p13)
}
 0x2f5   :  { %528 = dma.hbm_to_vmem [thread:$0]  %s10705_s9, 16, %s526_s2, [#allocation57]  }
 0x2f6   :  { %10318 = dma.done.wait [#allocation6], 512  }
 0x2f7   :  { %10319 = vsyncadd [#allocation6], 4294966784 }
 0x2f8   :  { %10320 = dma.done.wait [#allocation9], 32  }
 0x2f9   :  { %10321 = vsyncadd [#allocation9], 4294967264 }
 0x2fa   :  { %10322 = dma.done.wait [#allocation12], 320  }
 0x2fb   :  { %10323 = vsyncadd [#allocation12], 4294966976 }
 0x2fc   :  { %10324 = dma.done.wait [#allocation15], 272  }
 0x2fd   :  { %10325 = vsyncadd [#allocation15], 4294967024 }
 0x2fe   :  { %10326 = dma.done.wait [#allocation18], 32  }
 0x2ff   :  { %10327 = vsyncadd [#allocation18], 4294967264 }
 0x300   :  { %10328 = dma.done.wait [#allocation21], 320  }
 0x301   :  { %10329 = vsyncadd [#allocation21], 4294966976 }
 0x302   :  { %10330 = dma.done.wait [#allocation24], 80  }
 0x303   :  { %10331 = vsyncadd [#allocation24], 4294967216 }
 0x304   :  { %10332 = dma.done.wait [#allocation27], 32  }
 0x305   :  { %10333 = vsyncadd [#allocation27], 4294967264 }
 0x306   :  { %10334 = dma.done.wait [#allocation30], 1792  }
 0x307   :  { %10335 = vsyncadd [#allocation30], 4294965504 }
 0x308   :  { %10336 = dma.done.wait [#allocation33], 32  }
 0x309   :  { %10337 = vsyncadd [#allocation33], 4294967264 }
 0x30a   :  { %10338 = dma.done.wait [#allocation36], 272  }
 0x30b   :  { %10339 = vsyncadd [#allocation36], 4294967024 }
 0x30c   :  { %10340 = dma.done.wait [#allocation39], 80  }
 0x30d   :  { %10341 = vsyncadd [#allocation39], 4294967216 }
 0x30e   :  { %10342 = dma.done.wait [#allocation42], 2064  }
 0x30f   :  { %10343 = vsyncadd [#allocation42], 4294965232 }
 0x310   :  { %10344 = dma.done.wait [#allocation45], 2064  }
 0x311   :  { %10345 = vsyncadd [#allocation45], 4294965232 }
 0x312   :  { %10346 = dma.done.wait [#allocation48], 2064  }
 0x313   :  { %10347 = vsyncadd [#allocation48], 4294965232 }
 0x314   :  { %10348 = dma.done.wait [#allocation51], 2112  }
 0x315   :  { %10349 = vsyncadd [#allocation51], 4294965184 }
 0x316   :  { %10350 = dma.done.wait [#allocation54], 2064  }
 0x317   :  { %10351 = vsyncadd [#allocation54], 4294965232 }
 0x318   :  { %10352 = dma.done.wait [#allocation57], 32  }
 0x319   :  { %10353 = vsyncadd [#allocation57], 4294967264  ;;  %s11856_s9 = sld [smem:[#allocation79_spill]]  ;;  %s11857_s10 = sld [smem:[#allocation83_spill]]  ;;  %vm678_vm0 = vcmask 1042432   ;;  %vm653_vm1 = vcmask 220160  }
 0x31a   :  { %v642_v0 = vld [vmem:[#allocation5] sm:$0xff]  ;;  %v643_v1 = vld [vmem:[#allocation5 + $0x8] sm:$0xff]  ;;  %v644_v2 = vld [vmem:[#allocation5 + $0x10] sm:$0xff]  ;;  %vm10443_vm2 = vmmov 1   ;;  %s11858_s17 = sld [smem:[#allocation81_spill]]  ;;  %vm808_vm4 = vcmask 523264  }
 0x31b   :  { %v8769_v3 = vpack.c.bf16 %v643_v1, %v642_v0  ;;  %v645_v4 = vld [vmem:[#allocation5 + $0x18] sm:$0x7]  ;;  %vm8774_vm3 = vmpackc.low %vm678_vm0, %vm10443_vm2  ;;  %v10444_v43 = vmov 0.0|0.0   ;;  %vm10445_vm5 = vmmov 0   ;;  %v10446_v44 = vmov 0.0   ;;  %s11859_s27 = sld [smem:[#allocation85_spill]] }
 0x31c   :  { %v8773_v6 = vpack.c.bf16 %v645_v4, %v644_v2  ;;  %v10968_v57 = vld [vmem:[#allocation13] sm:$0xf]  ;;  %vm1012_vm6 = vcmask 31744   ;;  %v795_v59 = vld [vmem:[#allocation11] sm:$0xff]  ;;  %v796_v60 = vld [vmem:[#allocation11 + $0x8] sm:$0xff]  ;;  %vm1037_vm7 = vcmask 1043456  }
 0x31d   :  { %8770 = vmatprep.subr.bf16.mxu0 %v8769_v3  ;;  %v10977_v61 = vpack.c.bf16 %v796_v60, %v795_v59  ;;  %vm1146_vm8 = vcmask 130048   ;;  %s11860_s29 = sld [smem:[#allocation87_spill]]  ;;  %s11861_s5 = sld [smem:[#allocation86_spill]]  ;;  %vm6040_vm2 = vcmask 27648  }
 0x31e   :  { %8772 = vmatpush3.bf16.msra.mxu0 %v8769_v3  ;;  %s11862_s15 = sld [smem:[#allocation98_spill]]  ;;  %s11864_s16 = sld [smem:[#allocation92_spill]] }
 0x31f   :  { %v634_v5 = vld [vmem:[%s11856_s9] sm:$0xff]  ;;  %v788_v8 = vld [vmem:[%s11857_s10 + $0x8] sm:$0xff]  ;;  %8775 = vmatprep.subr.msk.bf16.mxu0 %vm8774_vm3, %v8773_v6  ;;  %v789_v10 = vld [vmem:[%s11857_s10 + $0x10] sm:$0xff]  ;;  %8808 = vmatprep.subr.bf16.mxu1 %v10977_v61  ;;  %s11863_s24 = sld [smem:[#allocation90_spill]]  ;;  %s11865_s18 = sld [smem:[#allocation93_spill]] }
 0x320   :  { %7805 = vmatprep.mubr.msk.f32.mxu0 %vm653_vm1, %v634_v5  ;;  %v787_v7 = vld [vmem:[%s11857_s10] sm:$0xff]  ;;  %v790_v11 = vld [vmem:[%s11857_s10 + $0x18] sm:$0xff]  ;;  %v635_v12 = vld [vmem:[%s11856_s9 + $0x8] sm:$0xff]  ;;  %8810 = vmatpush3.bf16.msra.mxu1 %v10977_v61  ;;  %s11866_s8 = sld [smem:[#allocation96_spill]]  ;;  %s11867_s22 = sld [smem:[#allocation102_spill]] }
 0x321   :  { %v10893_v9 = vpack.c.bf16 %v788_v8, %v787_v7  ;;  %v636_v13 = vld [vmem:[%s11856_s9 + $0x10] sm:$0xff]  ;;  %v10900_v14 = vpack.c.bf16 %v790_v11, %v789_v10  ;;  %v791_v15 = vld [vmem:[%s11857_s10 + $0x20] sm:$0xff]  ;;  %v792_v16 = vld [vmem:[%s11857_s10 + $0x28] sm:$0xff]  ;;  %8827 = vmatprep.subr.bf16.mxu1 %v10444_v43  ;;  %s11868_s30 = sld [smem:[#allocation100_spill]]  ;;  %s11869_s23 = sld [smem:[#allocation103_spill]] }
 0x322   :  { %8778 = vmatpush3.bf16.msk.msra.mxu0 %vm8774_vm3, %v8773_v6  ;;  %v637_v17 = vld [vmem:[%s11856_s9 + $0x18] sm:$0xff]  ;;  %v638_v18 = vld [vmem:[%s11856_s9 + $0x20] sm:$0xff]  ;;  %v10910_v19 = vpack.c.bf16 %v792_v16, %v791_v15  ;;  %v639_v20 = vld [vmem:[%s11856_s9 + $0x28] sm:$0xff]  ;;  %s10448_s21 = smov 96   ;;  %vm6128_vm3 = vcmask 257024   ;;  %s10449_s26 = smov 64  }
 0x323   :  { %8780 = vmatprep.subr.bf16.mxu0 %v10893_v9  ;;  %v640_v21 = vld [vmem:[%s11856_s9 + $0x30] sm:$0xff]  ;;  %v641_v22 = vld [vmem:[%s11856_s9 + $0x38] sm:$0xff]  ;;  %v7013_v26 = vld [vmem:[%s11858_s17] ss:$0 sm:$0xff]  ;;  %s10450_s19 = smov 32   ;;  %s10451_s14 = smov [#allocation59]  }
 0x324   :  { %v793_v23 = vld [vmem:[%s11857_s10 + $0x30] sm:$0xff]  ;;  %v794_v24 = vld [vmem:[%s11857_s10 + $0x38] sm:$0xff]  ;;  %v10973_v58 = vld [vmem:[%s11859_s27] sm:$0xff]  ;;  %s6937_s28 = sshll.u32 %s10451_s14, 4  ;;  %s6938_s28 = int_to_ptr.vmem [resolvable:$true] %s6937_s28 }
 0x325   :  { %7806 = vmatmul.mubr.msk.f32.vlgmr.msra.gmra.mrb[0].mxu0 %vm653_vm1, %v635_v12  ;;  %v10925_v25 = vpack.c.bf16 %v794_v24, %v793_v23  ;;  %v10983_v1 = vld [vmem:[%s11859_s27 + $0x8] sm:$0xff]  ;;  %v10987_v2 = vld [vmem:[%s11859_s27 + $0x10] sm:$0xff]  ;;  %v10996_v3 = vld [vmem:[%s11859_s27 + $0x18] sm:$0xff]  ;;  %s10296_s20 = scalar_lea.vmem %s6938_s28, 64  ;;  %p10301_p1 = scmp.lt.s32.totalorder %s6938_s28, %s6938_s28 }
 0x326   :  { %7808 = vmatprep.mubr.msk.f32.mxu0 %vm653_vm1, %v636_v13  ;;  %8782 = vmatpush3.bf16.msra.mxu0 %v10893_v9  ;;  %v11000_v4 = vld [vmem:[%s11859_s27 + $0x20] sm:$0xff]  ;;  %v11008_v5 = vld [vmem:[%s11859_s27 + $0x28] sm:$0xff]  ;;  %v11012_v6 = vld [vmem:[%s11859_s27 + $0x30] sm:$0xff]  ;;  %p10297_p0 = scmp.ne.s32.totalorder %s6938_s28, %s10296_s20  ;;  %p10302_p2 = scmp.lt.s32.totalorder %s10296_s20, %s10296_s20 }
 0x327   :  { %8784 = vmatprep.subr.bf16.mxu0 %v10900_v14  ;;  %v11020_v7 = vld [vmem:[%s11859_s27 + $0x38] sm:$0xff] }
 0x328   :  { %p10303_p3 = por %p10302_p2, %p10301_p1 }
 0x329   :  { %7809 = vmatmul.mubr.msk.f32.gmra.mrb[2].mxu0 %vm653_vm1, %v637_v17 }
 0x32a   :  { %7811 = vmatprep.mubr.msk.f32.mxu0 %vm653_vm1, %v638_v18  ;;  %8786 = vmatpush3.bf16.msra.mxu0 %v10900_v14  ;;  %p10304_p4 = pnand %p10303_p3, %p10297_p0 }
 0x32b   :  { %8788 = vmatprep.subr.bf16.mxu0 %v10910_v19 }
 0x32d   :  { %7812 = vmatmul.mubr.msk.f32.gmra.mrb[4].mxu0 %vm653_vm1, %v639_v20 }
 0x32e   :  { %7814 = vmatprep.mubr.msk.f32.mxu0 %vm653_vm1, %v640_v21  ;;  %8790 = vmatpush3.bf16.msra.mxu0 %v10910_v19 }
 0x32f   :  { %8792 = vmatprep.subr.bf16.mxu0 %v10925_v25 }
 0x331   :  { %7815 = vmatmul.mubr.msk.f32.gmra.mrb[6].mxu0 %vm653_vm1, %v641_v22  ;;  %vm3598_vm1 = vcmask 23552  }
 0x332   :  { %8794 = vmatpush3.bf16.msra.mxu0 %v10925_v25 }
 0x333   :  { %8795 = vmatprep.subr.bf16.mxu0 %v10444_v43 }
 0x3f8   :  { %v7807_v27 = vpop.f32.mrb[0].mxu0 }
 0x3f9   :  { %v748_v28 = vpop.f32.mrb[1].mxu0  ;;  %v10932_v30 = vadd.f32 %v7807_v27, %v7013_v26 }
 0x3fa   :  { %v10930_v29 = vadd.f32 %v7013_v26, %v748_v28 }
 0x3fc   :  { %v7810_v31 = vpop.f32.mrb[2].mxu0  ;;  %7833 = vmatprep.mubr.msk.f32.mxu0 %vm808_vm4, %v10930_v29 }
 0x3fd   :  { %v758_v32 = vpop.f32.mrb[3].mxu0  ;;  %7834 = vmatmul.mubr.msk.f32.vlgmr.msra.gmra.mrb[8].mxu0 %vm808_vm4, %v10932_v30  ;;  %v10940_v34 = vadd.f32 %v7810_v31, %v7013_v26 }
 0x3fe   :  { %v10938_v33 = vadd.f32 %v7013_v26, %v758_v32 }
 0x400   :  { %v7813_v35 = vpop.f32.mrb[4].mxu0  ;;  %7836 = vmatprep.mubr.msk.f32.mxu0 %vm808_vm4, %v10938_v33 }
 0x401   :  { %v768_v36 = vpop.f32.mrb[5].mxu0  ;;  %7837 = vmatmul.mubr.msk.f32.gmra.mrb[10].mxu0 %vm808_vm4, %v10940_v34  ;;  %v10948_v38 = vadd.f32 %v7813_v35, %v7013_v26 }
 0x402   :  { %v10946_v37 = vadd.f32 %v7013_v26, %v768_v36 }
 0x404   :  { %v7816_v39 = vpop.f32.mrb[6].mxu0  ;;  %7839 = vmatprep.mubr.msk.f32.mxu0 %vm808_vm4, %v10946_v37 }
 0x405   :  { %v778_v40 = vpop.f32.mrb[7].mxu0  ;;  %7840 = vmatmul.mubr.msk.f32.gmra.mrb[12].mxu0 %vm808_vm4, %v10948_v38  ;;  %v10956_v42 = vadd.f32 %v7816_v39, %v7013_v26 }
 0x406   :  { %v10954_v41 = vadd.f32 %v7013_v26, %v778_v40 }
 0x408   :  { %7842 = vmatprep.mubr.msk.f32.mxu0 %vm808_vm4, %v10954_v41 }
 0x409   :  { %7843 = vmatmul.mubr.msk.f32.gmra.mrb[14].mxu0 %vm808_vm4, %v10956_v42 }
 0x40a   :  { %7861 = vmatprep.mubr.msk.f32.mxu0 %vm10445_vm5, %v10446_v44 }
 0x4d0   :  { %v7835_v45 = vpop.f32.mrb[8].mxu0 }
 0x4d1   :  { %v899_v46 = vpop.f32.mrb[9].mxu0 }
 0x4d2   :  { %v8796_v47 = vpack.c.bf16 %v7835_v45, %v899_v46 }
 0x4d4   :  { %v7838_v48 = vpop.f32.mrb[10].mxu0  ;;  %8797 = vmatpush3.bf16.msra.mxu0 %v8796_v47 }
 0x4d5   :  { %v909_v49 = vpop.f32.mrb[11].mxu0  ;;  %8798 = vmatprep.subr.bf16.mxu0 %v10444_v43 }
 0x4d6   :  { %v8799_v50 = vpack.c.bf16 %v7838_v48, %v909_v49 }
 0x4d8   :  { %v7841_v51 = vpop.f32.mrb[12].mxu0  ;;  %8800 = vmatpush3.bf16.msra.mxu0 %v8799_v50 }
 0x4d9   :  { %v919_v52 = vpop.f32.mrb[13].mxu0  ;;  %8801 = vmatprep.subr.bf16.mxu0 %v10444_v43 }
 0x4da   :  { %v8802_v53 = vpack.c.bf16 %v7841_v51, %v919_v52 }
 0x4dc   :  { %v7844_v54 = vpop.f32.mrb[14].mxu0  ;;  %8803 = vmatpush3.bf16.msra.mxu0 %v8802_v53 }
 0x4dd   :  { %v929_v55 = vpop.f32.mrb[15].mxu0  ;;  %8804 = vmatprep.subr.bf16.mxu0 %v10444_v43 }
 0x4de   :  { %v8805_v56 = vpack.c.bf16 %v7844_v54, %v929_v55 }
 0x4e0   :  { %8806 = vmatpush3.bf16.msra.mxu0 %v8805_v56 }
 0x4e3   :  { %7862 = vmatmul.mubr.msk.f32.vlgmr.msra.gmra.mrb[16].mxu0 %vm808_vm4, %v10968_v57 }
 0x4e4   :  { %7866 = vmatprep.mubr.msk.f32.mxu0 %vm1012_vm6, %v10973_v58 }
 0x5b6   :  { %v1007_v62 = vpop.f32.mrb[16].mxu0 }
 0x5b7   :  { %v1011_v63 = vmul.f32 0.015625, %v1007_v62  ;;  %v7863_v0 = vpop.f32.mrb[17].mxu0 }
 0x5b9   :  { %7864 = vmatprep.subr.msk.mxu0 %vm1037_vm7, %v1011_v63 }
 0x5ba   :  { %7865 = vmatpush3.msk.msra.mxu0 %vm1037_vm7, %v1011_v63 }
 0x5bb   :  { %7867 = vmatmul.mubr.msk.f32.vlgmr.msra.gmra.mrb[18].mxu0 %vm1012_vm6, %v10983_v1  ;;  %8812 = vmatprep.subr.bf16.mxu0 %v10893_v9 }
 0x5bc   :  { %7869 = vmatprep.mubr.msk.f32.mxu0 %vm1012_vm6, %v10987_v2  ;;  %8814 = vmatpush3.bf16.msra.mxu0 %v10893_v9 }
 0x5bd   :  { %8816 = vmatprep.subr.bf16.mxu0 %v10900_v14 }
 0x5bf   :  { %7870 = vmatmul.mubr.msk.f32.gmra.mrb[20].mxu0 %vm1012_vm6, %v10996_v3 }
 0x5c0   :  { %7872 = vmatprep.mubr.msk.f32.mxu0 %vm1012_vm6, %v11000_v4  ;;  %8818 = vmatpush3.bf16.msra.mxu0 %v10900_v14 }
 0x5c1   :  { %8820 = vmatprep.subr.bf16.mxu0 %v10910_v19 }
 0x5c3   :  { %7873 = vmatmul.mubr.msk.f32.gmra.mrb[22].mxu0 %vm1012_vm6, %v11008_v5 }
 0x5c4   :  { %7875 = vmatprep.mubr.msk.f32.mxu0 %vm1012_vm6, %v11012_v6  ;;  %8822 = vmatpush3.bf16.msra.mxu0 %v10910_v19 }
 0x5c5   :  { %8824 = vmatprep.subr.bf16.mxu0 %v10925_v25 }
 0x5c7   :  { %7876 = vmatmul.mubr.msk.f32.gmra.mrb[24].mxu0 %vm1012_vm6, %v11020_v7 }
 0x5c8   :  { %8826 = vmatpush3.bf16.msra.mxu0 %v10925_v25 }
 0x5c9   :  { %8840 = vmatprep.subr.bf16.mxu0 %v10977_v61 }
 0x68e   :  { %v7868_v8 = vpop.f32.mrb[18].mxu0 }
 0x68f   :  { %v1107_v9 = vpop.f32.mrb[19].mxu0 }
 0x690   :  { %7882 = vmatprep.mubr.msk.f32.mxu1 %vm1146_vm8, %v1107_v9  ;;  %v7094_v9 = vld [vmem:[%s11860_s29 + $0x20] sm:$0xff] }
 0x691   :  { %7883 = vmatmul.mubr.msk.f32.vlgmr.msra.gmra.mrb[0].mxu1 %vm1146_vm8, %v7868_v8  ;;  %v7083_v8 = vld [vmem:[%s11860_s29 + $0x18] sm:$0xff] }
 0x692   :  { %v7871_v10 = vpop.f32.mrb[20].mxu0 }
 0x693   :  { %v1117_v11 = vpop.f32.mrb[21].mxu0 }
 0x694   :  { %7885 = vmatprep.mubr.msk.f32.mxu1 %vm1146_vm8, %v1117_v11  ;;  %v7106_v11 = vld [vmem:[%s11860_s29 + $0x30] sm:$0xff] }
 0x695   :  { %7886 = vmatmul.mubr.msk.f32.gmra.mrb[2].mxu1 %vm1146_vm8, %v7871_v10  ;;  %v7095_v10 = vld [vmem:[%s11860_s29 + $0x28] sm:$0xff] }
 0x696   :  { %v7874_v12 = vpop.f32.mrb[22].mxu0 }
 0x697   :  { %v1127_v13 = vpop.f32.mrb[23].mxu0 }
 0x698   :  { %7888 = vmatprep.mubr.msk.f32.mxu1 %vm1146_vm8, %v1127_v13  ;;  %v7118_v13 = vld [vmem:[%s11860_s29 + $0x40] sm:$0xff] }
 0x699   :  { %7889 = vmatmul.mubr.msk.f32.gmra.mrb[4].mxu1 %vm1146_vm8, %v7874_v12  ;;  %v7107_v12 = vld [vmem:[%s11860_s29 + $0x38] sm:$0xff] }
 0x69a   :  { %v7877_v14 = vpop.f32.mrb[24].mxu0 }
 0x69b   :  { %v1137_v15 = vpop.f32.mrb[25].mxu0 }
 0x69c   :  { %7891 = vmatprep.mubr.msk.f32.mxu1 %vm1146_vm8, %v1137_v15  ;;  %v7130_v15 = vld [vmem:[%s11860_s29 + $0x50] sm:$0xff] }
 0x69d   :  { %7892 = vmatmul.mubr.msk.f32.gmra.mrb[6].mxu1 %vm1146_vm8, %v7877_v14  ;;  %v7119_v14 = vld [vmem:[%s11860_s29 + $0x48] sm:$0xff] }
 0x69e   :  { %7938 = vmatprep.mubr.msk.f32.mxu1 %vm10445_vm5, %v10446_v44 }
 0x764   :  { %v7884_v16 = vpop.f32.mrb[0].mxu1 }
 0x765   :  { %v11039_v17 = vsub.f32 %v10932_v30, %v7884_v16  ;;  %v1237_v18 = vpop.f32.mrb[1].mxu1  ;;  %v7131_v16 = vld [vmem:[%s11860_s29 + $0x58] sm:$0xff] }
 0x766   :  { %v11042_v19 = vsub.f32 %v10930_v29, %v1237_v18  ;;  %v7142_v18 = vld [vmem:[%s11860_s29 + $0x60] sm:$0xff] }
 0x767   :  { %v1285_v22 = vmul.f32 %v11039_v17, %v11039_v17 }
 0x768   :  { %v1284_v20 = vmul.f32 %v11042_v19, %v11042_v19  ;;  %v7887_v21 = vpop.f32.mrb[2].mxu1 }
 0x769   :  { %v11049_v23 = vsub.f32 %v10940_v34, %v7887_v21  ;;  %v1247_v24 = vpop.f32.mrb[3].mxu1  ;;  %v7154_v21 = vld [vmem:[%s11860_s29 + $0x70] sm:$0xff] }
 0x76a   :  { %v11052_v25 = vsub.f32 %v10938_v33, %v1247_v24  ;;  %7910 = vmatprep.mubr.msk.f32.mxu0 %vm808_vm4, %v1284_v20  ;;  %v7143_v20 = vld [vmem:[%s11860_s29 + $0x68] sm:$0xff]  ;;  %v7166_v24 = vld [vmem:[%s11860_s29 + $0x80] sm:$0xff] }
 0x76b   :  { %7911 = vmatmul.mubr.msk.f32.vlgmr.msra.gmra.mrb[26].mxu0 %vm808_vm4, %v1285_v22  ;;  %v1287_v28 = vmul.f32 %v11049_v23, %v11049_v23  ;;  %v7155_v22 = vld [vmem:[%s11860_s29 + $0x78] sm:$0xff] }
 0x76c   :  { %v1286_v26 = vmul.f32 %v11052_v25, %v11052_v25  ;;  %v7890_v27 = vpop.f32.mrb[4].mxu1  ;;  %8842 = vmatpush3.bf16.msra.mxu0 %v10977_v61 }
 0x76d   :  { %v11062_v29 = vsub.f32 %v10948_v38, %v7890_v27  ;;  %v1257_v30 = vpop.f32.mrb[5].mxu1  ;;  %v1937_v27 = vld [vmem:[%s11861_s5] sm:$0xff] }
 0x76e   :  { %v11065_v31 = vsub.f32 %v10946_v37, %v1257_v30  ;;  %7913 = vmatprep.mubr.msk.f32.mxu0 %vm808_vm4, %v1286_v26  ;;  %v7167_v26 = vld [vmem:[%s11860_s29 + $0x88] sm:$0xff] }
 0x76f   :  { %7914 = vmatmul.mubr.msk.f32.gmra.mrb[28].mxu0 %vm808_vm4, %v1287_v28  ;;  %v1289_v34 = vmul.f32 %v11062_v29, %v11062_v29  ;;  %v1938_v28 = vld [vmem:[%s11861_s5 + $0x8] sm:$0xff] }
 0x770   :  { %v1288_v32 = vmul.f32 %v11065_v31, %v11065_v31  ;;  %v7893_v33 = vpop.f32.mrb[6].mxu1  ;;  %v8859_v30 = vpack.c.bf16 %v1938_v28, %v1937_v27 }
 0x771   :  { %v11074_v35 = vsub.f32 %v10956_v42, %v7893_v33  ;;  %v1267_v36 = vpop.f32.mrb[7].mxu1  ;;  %v4365_v33 = vld [vmem:[%s11862_s15 + $0x8] sm:$0xff] }
 0x772   :  { %v11077_v38 = vsub.f32 %v10954_v41, %v1267_v36  ;;  %7916 = vmatprep.mubr.msk.f32.mxu0 %vm808_vm4, %v1288_v32  ;;  %v4364_v32 = vld [vmem:[%s11862_s15] sm:$0xff]  ;;  %8860 = vmatprep.subr.bf16.mxu0 %v8859_v30  ;;  %v1940_v36 = vld [vmem:[%s11861_s5 + $0x18] sm:$0xff] }
 0x773   :  { %7917 = vmatmul.mubr.msk.f32.gmra.mrb[30].mxu0 %vm808_vm4, %v1289_v34  ;;  %v1291_v39 = vmul.f32 %v11074_v35, %v11074_v35  ;;  %v1939_v34 = vld [vmem:[%s11861_s5 + $0x10] sm:$0xff] }
 0x774   :  { %v1290_v37 = vmul.f32 %v11077_v38, %v11077_v38 }
 0x776   :  { %7919 = vmatprep.mubr.msk.f32.mxu0 %vm808_vm4, %v1290_v37  ;;  %v8863_v37 = vpack.c.bf16 %v1940_v36, %v1939_v34 }
 0x777   :  { %7920 = vmatmul.mubr.msk.f32.gmra.mrb[32].mxu0 %vm808_vm4, %v1291_v39  ;;  %v7217_v39 = vld [vmem:[%s11862_s15 + $0x10] sm:$0xff] }
 0x83e   :  { %v7912_v40 = vpop.f32.mrb[26].mxu0 }
 0x83f   :  { %v1382_v42 = vpop.f32.mrb[27].mxu0 }
 0x840   :  { %v8828_v45 = vpack.c.bf16 %v7912_v40, %v1382_v42  ;;  %v7218_v40 = vld [vmem:[%s11862_s15 + $0x18] sm:$0xff]  ;;  %v1941_v42 = vld [vmem:[%s11861_s5 + $0x20] sm:$0xff] }
 0x842   :  { %v7915_v46 = vpop.f32.mrb[28].mxu0  ;;  %8829 = vmatpush3.bf16.msra.mxu1 %v8828_v45  ;;  %v1942_v45 = vld [vmem:[%s11861_s5 + $0x28] sm:$0xff] }
 0x843   :  { %v1392_v41 = vpop.f32.mrb[29].mxu0  ;;  %8830 = vmatprep.subr.bf16.mxu1 %v10444_v43 }
 0x844   :  { %v8831_v47 = vpack.c.bf16 %v7915_v46, %v1392_v41  ;;  %v8867_v46 = vpack.c.bf16 %v1942_v45, %v1941_v42  ;;  %v7221_v41 = vld [vmem:[%s11862_s15 + $0x20] sm:$0xff] }
 0x846   :  { %v7918_v48 = vpop.f32.mrb[30].mxu0  ;;  %8832 = vmatpush3.bf16.msra.mxu1 %v8831_v47  ;;  %v7222_v47 = vld [vmem:[%s11862_s15 + $0x28] sm:$0xff] }
 0x847   :  { %v1402_v49 = vpop.f32.mrb[31].mxu0  ;;  %8833 = vmatprep.subr.bf16.mxu1 %v10444_v43 }
 0x848   :  { %v8834_v50 = vpack.c.bf16 %v7918_v48, %v1402_v49  ;;  %v7075_v48 = vld [vmem:[#allocation8] ss:$0 sm:$0xff] }
 0x84a   :  { %v7921_v51 = vpop.f32.mrb[32].mxu0  ;;  %8835 = vmatpush3.bf16.msra.mxu1 %v8834_v50 }
 0x84b   :  { %v1412_v52 = vpop.f32.mrb[33].mxu0  ;;  %8836 = vmatprep.subr.bf16.mxu1 %v10444_v43 }
 0x84c   :  { %v8837_v53 = vpack.c.bf16 %v7921_v51, %v1412_v52  ;;  %v1783_v52 = vlaneseq }
 0x84e   :  { %8838 = vmatpush3.bf16.msra.mxu1 %v8837_v53  ;;  %v7076_v53 = vld [vmem:[#allocation10] ss:$0 sm:$0xff] }
 0x851   :  { %7939 = vmatmul.mubr.msk.f32.vlgmr.msra.gmra.mrb[8].mxu1 %vm808_vm4, %v10968_v57 }
 0x852   :  { %7943 = vmatprep.mubr.msk.f32.mxu1 %vm1012_vm6, %v10973_v58 }
 0x924   :  { %v1487_v54 = vpop.f32.mrb[8].mxu1 }
 0x925   :  { %v1491_v55 = vmul.f32 0.015625, %v1487_v54  ;;  %v7940_v56 = vpop.f32.mrb[9].mxu1 }
 0x927   :  { %v1492_v59 = vadd.f32 1e-05, %v1491_v55 }
 0x929   :  { %9502 = vrsqrt.f32 %v1492_v59 }
 0x933   :  { %v9503_v60 = vpop.eup %9502 }
 0x934   :  { %7941 = vmatprep.subr.msk.mxu1 %vm1037_vm7, %v9503_v60 }
 0x935   :  { %7942 = vmatpush3.msk.msra.mxu1 %vm1037_vm7, %v9503_v60 }
 0x936   :  { %7944 = vmatmul.mubr.msk.f32.vlgmr.msra.gmra.mrb[10].mxu1 %vm1012_vm6, %v10983_v1 }
 0x937   :  { %7946 = vmatprep.mubr.msk.f32.mxu1 %vm1012_vm6, %v10987_v2 }
 0x93a   :  { %7947 = vmatmul.mubr.msk.f32.gmra.mrb[12].mxu1 %vm1012_vm6, %v10996_v3  ;;  %v1827_v3 = vld [vmem:[#allocation14] sm:$0xff] }
 0x93b   :  { %7949 = vmatprep.mubr.msk.f32.mxu1 %vm1012_vm6, %v11000_v4  ;;  %v1923_v4 = vld [vmem:[%s11860_s29] sm:$0xff] }
 0x93e   :  { %7950 = vmatmul.mubr.msk.f32.gmra.mrb[14].mxu1 %vm1012_vm6, %v11008_v5  ;;  %v10447_v5 = vmov 0  }
 0x93f   :  { %7952 = vmatprep.mubr.msk.f32.mxu1 %vm1012_vm6, %v11012_v6  ;;  %9500 = vset.pattern.permute.xlu0 %v10447_v5  ;;  %v7082_v6 = vld [vmem:[%s11860_s29 + $0x10] sm:$0xff] }
 0x940   :  { %9501 = vset.pattern.permute.xlu1 %v10447_v5  ;;  %1927 = vperm.xlu0 %9500, %v1923_v4  }
 0x941   :  { %2038 = vperm.xlu1 %9501, %v7082_v6  }
 0x942   :  { %7953 = vmatmul.mubr.msk.f32.gmra.mrb[16].mxu1 %vm1012_vm6, %v11020_v7  ;;  %v1924_v7 = vld [vmem:[%s11860_s29 + $0x8] sm:$0xff] }
 0x943   :  { %7987 = vmatprep.mubr.msk.f32.mxu1 %vm808_vm4, %v1827_v3 }
 0x944   :  { %1932 = vperm.xlu0 %9500, %v1924_v7  }
 0x945   :  { %2043 = vperm.xlu1 %9501, %v7083_v8  }
 0x948   :  { %2150 = vperm.xlu0 %9500, %v7094_v9  }
 0x949   :  { %2155 = vperm.xlu1 %9501, %v7095_v10  }
 0x94c   :  { %2257 = vperm.xlu0 %9500, %v7106_v11  }
 0x94d   :  { %2262 = vperm.xlu1 %9501, %v7107_v12  }
 0x950   :  { %2364 = vperm.xlu0 %9500, %v7118_v13  }
 0x951   :  { %2369 = vperm.xlu1 %9501, %v7119_v14  }
 0x954   :  { %2475 = vperm.xlu0 %9500, %v7130_v15  }
 0x955   :  { %2480 = vperm.xlu1 %9501, %v7131_v16  }
 0x958   :  { %2582 = vperm.xlu0 %9500, %v7142_v18  }
 0x959   :  { %2587 = vperm.xlu1 %9501, %v7143_v20  }
 0x95c   :  { %2694 = vperm.xlu0 %9500, %v7154_v21  }
 0x95d   :  { %2699 = vperm.xlu1 %9501, %v7155_v22  }
 0x960   :  { %2806 = vperm.xlu0 %9500, %v7166_v24  }
 0x961   :  { %2811 = vperm.xlu1 %9501, %v7167_v26  }
 0x964   :  { %4368 = vperm.xlu0 %9500, %v4364_v32  }
 0x965   :  { %4373 = vperm.xlu1 %9501, %v4365_v33  }
 0x968   :  { %4470 = vperm.xlu0 %9500, %v7217_v39  }
 0x969   :  { %4475 = vperm.xlu1 %9501, %v7218_v40  }
 0x96c   :  { %4577 = vperm.xlu0 %9500, %v7221_v41  }
 0x96d   :  { %4582 = vperm.xlu1 %9501, %v7222_v47  }
 0xa09   :  { %v7945_v57 = vpop.f32.mrb[10].mxu1 }
 0xa0a   :  { %v1563_v58 = vpop.f32.mrb[11].mxu1 }
 0xa0b   :  { %7959 = vmatprep.mubr.msk.f32.mxu0 %vm1146_vm8, %v1563_v58 }
 0xa0c   :  { %7960 = vmatmul.mubr.msk.f32.vlgmr.msra.gmra.mrb[34].mxu0 %vm1146_vm8, %v7945_v57  ;;  %v11151_v57 = vshrl.u32 %v1783_v52, 7 }
 0xa0d   :  { %v7948_v61 = vpop.f32.mrb[12].mxu1  ;;  %8862 = vmatpush3.bf16.msra.mxu0 %v8859_v30 }
 0xa0e   :  { %v1573_v62 = vpop.f32.mrb[13].mxu1  ;;  %8864 = vmatprep.subr.bf16.mxu0 %v8863_v37  ;;  %vm1785_vm9 = vcmp.lt.s32.totalorder %v11151_v57, 7  ;;  %vm1810_vm10 = vcmp.lt.s32.totalorder %v11151_v57, 4  ;;  %vm2798_vm11 = vcmp.lt.s32.totalorder %v11151_v57, 5  ;;  %vm1920_vm12 = vcmp.lt.s32.totalorder %v11151_v57, 3 }
 0xa0f   :  { %7962 = vmatprep.mubr.msk.f32.mxu0 %vm1146_vm8, %v1573_v62  ;;  %vm2030_vm13 = vcmp.lt.s32.totalorder %v11151_v57, 2  ;;  %vm2142_vm14 = vcmp.lt.s32.totalorder %v11151_v57, 1  ;;  %vm2686_vm15 = vcmp.lt.s32.totalorder %v11151_v57, 6 }
 0xa10   :  { %7963 = vmatmul.mubr.msk.f32.gmra.mrb[36].mxu0 %vm1146_vm8, %v7948_v61 }
 0xa11   :  { %v7951_v63 = vpop.f32.mrb[14].mxu1  ;;  %8866 = vmatpush3.bf16.msra.mxu0 %v8863_v37 }
 0xa12   :  { %v1583_v0 = vpop.f32.mrb[15].mxu1  ;;  %8868 = vmatprep.subr.bf16.mxu0 %v8867_v46 }
 0xa13   :  { %7965 = vmatprep.mubr.msk.f32.mxu0 %vm1146_vm8, %v1583_v0 }
 0xa14   :  { %7966 = vmatmul.mubr.msk.f32.gmra.mrb[38].mxu0 %vm1146_vm8, %v7951_v63 }
 0xa15   :  { %v7954_v1 = vpop.f32.mrb[16].mxu1  ;;  %8870 = vmatpush3.bf16.msra.mxu0 %v8867_v46 }
 0xa16   :  { %v1593_v2 = vpop.f32.mrb[17].mxu1 }
 0xa17   :  { %7968 = vmatprep.mubr.msk.f32.mxu0 %vm1146_vm8, %v1593_v2 }
 0xa18   :  { %7969 = vmatmul.mubr.msk.f32.gmra.mrb[40].mxu0 %vm1146_vm8, %v7954_v1 }
 0xadf   :  { %v7961_v49 = vpop.f32.mrb[34].mxu0 }
 0xae0   :  { %v1732_v50 = vmul.f32 %v7961_v49, %v11039_v17  ;;  %v1692_v51 = vpop.f32.mrb[35].mxu0 }
 0xae1   :  { %v1731_v54 = vmul.f32 %v1692_v51, %v11042_v19 }
 0xae2   :  { %v1746_v55 = vmul.f32 %v7075_v48, %v1732_v50 }
 0xae3   :  { %v1745_v56 = vmul.f32 %v7075_v48, %v1731_v54  ;;  %v7964_v59 = vpop.f32.mrb[36].mxu0 }
 0xae4   :  { %v1760_v60 = vadd.f32 %v7076_v53, %v1746_v55  ;;  %v1734_v58 = vmul.f32 %v7964_v59, %v11049_v23  ;;  %v1702_v61 = vpop.f32.mrb[37].mxu0 }
 0xae5   :  { %v1759_v62 = vadd.f32 %v7076_v53, %v1745_v56  ;;  %v1733_v63 = vmul.f32 %v1702_v61, %v11052_v25 }
 0xae6   :  { %v1768_v0 = vmax.f32 %v1760_v60, 0.0  ;;  %v1748_v1 = vmul.f32 %v7075_v48, %v1734_v58 }
 0xae7   :  { %v1767_v17 = vmax.f32 %v1759_v62, 0.0  ;;  %v1747_v2 = vmul.f32 %v7075_v48, %v1733_v63  ;;  %v7967_v3 = vpop.f32.mrb[38].mxu0 }
 0xae8   :  { %v1776_v4 = vrot.slane %v1768_v0, 1  ;;  %v1762_v19 = vadd.f32 %v7076_v53, %v1748_v1  ;;  %v1736_v5 = vmul.f32 %v7967_v3, %v11062_v29  ;;  %v1712_v6 = vpop.f32.mrb[39].mxu0 }
 0xae9   :  { %v1775_v7 = vrot.slane %v1767_v17, 1  ;;  %v1761_v8 = vadd.f32 %v7076_v53, %v1747_v2  ;;  %v1735_v23 = vmul.f32 %v1712_v6, %v11065_v31 }
 0xaea   :  { %v1770_v9 = vmax.f32 %v1762_v19, 0.0  ;;  %v1750_v10 = vmul.f32 %v7075_v48, %v1736_v5 }
 0xaeb   :  { %v1792_v25 = vsel %vm1785_vm9, %v1775_v7, %v1776_v4  ;;  %v1769_v11 = vmax.f32 %v1761_v8, 0.0  ;;  %v1749_v12 = vmul.f32 %v7075_v48, %v1735_v23  ;;  %v7970_v13 = vpop.f32.mrb[40].mxu0 }
 0xaec   :  { %v1794_v14 = vmax.f32 %v1767_v17, %v1792_v25  ;;  %v1778_v15 = vrot.slane %v1770_v9, 1  ;;  %v1764_v16 = vadd.f32 %v7076_v53, %v1750_v10  ;;  %v1738_v18 = vmul.f32 %v7970_v13, %v11074_v35  ;;  %v1722_v20 = vpop.f32.mrb[41].mxu0 }
 0xaed   :  { %v1777_v29 = vrot.slane %v1769_v11, 1  ;;  %v1763_v21 = vadd.f32 %v7076_v53, %v1749_v12  ;;  %v1737_v22 = vmul.f32 %v1722_v20, %v11077_v38 }
 0xaee   :  { %v1772_v24 = vmax.f32 %v1764_v16, 0.0  ;;  %v1752_v31 = vmul.f32 %v7075_v48, %v1738_v18  ;;  %v1802_v39 = vrot.slane %v1794_v14, 4  ;;  %v1943_v16 = vld [vmem:[%s11861_s5 + $0x30] sm:$0xff]  ;;  %v1944_v18 = vld [vmem:[%s11861_s5 + $0x38] sm:$0xff] }
 0xaef   :  { %v1790_v26 = vsel %vm1785_vm9, %v1777_v29, %v1778_v15  ;;  %v1771_v27 = vmax.f32 %v1763_v21, 0.0  ;;  %v1751_v28 = vmul.f32 %v7075_v48, %v1737_v22  ;;  %v1791_v30 = vsel %vm1785_vm9, %v1776_v4, %v1777_v29  ;;  %v7084_v29 = vld [vmem:[%s11861_s5 + $0x40] sm:$0xff]  ;;  %v7085_v21 = vld [vmem:[%s11861_s5 + $0x48] sm:$0xff] }
 0xaf0   :  { %v1796_v32 = vmax.f32 %v1769_v11, %v1790_v26  ;;  %v1780_v33 = vrot.slane %v1772_v24, 1  ;;  %v1766_v34 = vadd.f32 %v7076_v53, %v1752_v31  ;;  %v1795_v36 = vmax.f32 %v1768_v0, %v1791_v30 }
 0xaf1   :  { %v1779_v35 = vrot.slane %v1771_v27, 1  ;;  %v1765_v37 = vadd.f32 %v7076_v53, %v1751_v28  ;;  %v8871_v20 = vpack.c.bf16 %v1944_v18, %v1943_v16  ;;  %v8875_v22 = vpack.c.bf16 %v7085_v21, %v7084_v29  ;;  %v7098_v18 = vld [vmem:[%s11861_s5 + $0x90] sm:$0xff]  ;;  %v2916_v29 = vld [vmem:[%s11863_s24 + $0x40] sm:$0xff]  ;;  %v2917_v21 = vld [vmem:[%s11863_s24 + $0x48] sm:$0xff] }
 0xaf2   :  { %v1804_v38 = vrot.slane %v1796_v32, 4  ;;  %v1774_v40 = vmax.f32 %v1766_v34, 0.0  ;;  %v1803_v42 = vrot.slane %v1795_v36, 4 }
 0xaf3   :  { %v1788_v45 = vsel %vm1785_vm9, %v1779_v35, %v1780_v33  ;;  %v1773_v46 = vmax.f32 %v1765_v37, 0.0  ;;  %v1789_v41 = vsel %vm1785_vm9, %v1778_v15, %v1779_v35  ;;  %v1828_v15 = vld [vmem:[#allocation14 + $0x8] sm:$0xff]  ;;  %8872 = vmatprep.subr.bf16.mxu0 %v8871_v20  ;;  %v7086_v35 = vld [vmem:[%s11861_s5 + $0x50] sm:$0xff]  ;;  %v7087_v37 = vld [vmem:[%s11861_s5 + $0x58] sm:$0xff] }
 0xaf4   :  { %v1798_v47 = vmax.f32 %v1771_v27, %v1788_v45  ;;  %v1782_v48 = vrot.slane %v1774_v40, 1  ;;  %v1816_v49 = vsel %vm1810_vm10, %v1803_v42, %v1804_v38  ;;  %v1817_v50 = vsel %vm1810_vm10, %v1802_v39, %v1803_v42  ;;  %8874 = vmatpush3.bf16.msra.mxu0 %v8871_v20  ;;  %v7099_v20 = vld [vmem:[%s11861_s5 + $0x98] sm:$0xff] }
 0xaf5   :  { %v1781_v51 = vrot.slane %v1773_v46, 1  ;;  %v1819_v52 = vmax.f32 %v1794_v14, %v1817_v50  ;;  %v1820_v53 = vmax.f32 %v1795_v36, %v1816_v49  ;;  %v1797_v54 = vmax.f32 %v1770_v9, %v1789_v41  ;;  %8876 = vmatprep.subr.bf16.mxu0 %v8875_v22 }
 0xaf6   :  { %v1806_v55 = vrot.slane %v1798_v47, 4  ;;  %v1793_v56 = vsel %vm1785_vm9, %v1782_v48, %v1775_v7  ;;  %v8879_v50 = vpack.c.bf16 %v7087_v37, %v7086_v35  ;;  %v2919_v35 = vld [vmem:[%s11863_s24 + $0x58] sm:$0xff] }
 0xaf7   :  { %v1801_v59 = vmax.f32 %v1774_v40, %v1793_v56  ;;  %v1786_v60 = vsel %vm1785_vm9, %v1781_v51, %v1782_v48  ;;  %v8843_v58 = vpack.c.bf16 %v1820_v53, %v1819_v52  ;;  %v1805_v61 = vrot.slane %v1797_v54, 4 }
 0xaf8   :  { %v1800_v62 = vmax.f32 %v1773_v46, %v1786_v60  ;;  %v1787_v63 = vsel %vm1785_vm9, %v1780_v33, %v1781_v51  ;;  %v2039_v51 = vpop.permute.xlu1 %2038  ;;  %v7089_v60 = vld [vmem:[%s11861_s5 + $0x68] sm:$0xff] }
 0xaf9   :  { %v1809_v0 = vrot.slane %v1801_v59, 4  ;;  %8844 = vmatprep.subr.bf16.mxu1 %v8843_v58  ;;  %v1814_v1 = vsel %vm1810_vm10, %v1805_v61, %v1806_v55  ;;  %v1815_v17 = vsel %vm1810_vm10, %v1804_v38, %v1805_v61  ;;  %v1799_v2 = vmax.f32 %v1772_v24, %v1787_v63  ;;  %v1928_v24 = vpop.permute.xlu0 %1927  ;;  %v2909_v63 = vld [vmem:[%s11863_s24 + $0x8] sm:$0xff] }
 0xafa   :  { %v1808_v3 = vrot.slane %v1800_v62, 4  ;;  %8846 = vmatpush3.bf16.msra.mxu1 %v8843_v58  ;;  %v1821_v4 = vmax.f32 %v1796_v32, %v1815_v17  ;;  %v1822_v19 = vmax.f32 %v1797_v54, %v1814_v1  ;;  %v2911_v17 = vld [vmem:[%s11863_s24 + $0x18] sm:$0xff] }
 0xafb   :  { %v1807_v5 = vrot.slane %v1799_v2, 4  ;;  %v1818_v6 = vsel %vm1810_vm10, %v1809_v0, %v1802_v39 }
 0xafc   :  { %v8847_v7 = vpack.c.bf16 %v1822_v19, %v1821_v4  ;;  %v1811_v8 = vsel %vm1810_vm10, %v1808_v3, %v1809_v0  ;;  %v1826_v23 = vmax.f32 %v1801_v59, %v1818_v6  ;;  %v7088_v59 = vld [vmem:[%s11861_s5 + $0x60] sm:$0xff]  ;;  %v2910_v0 = vld [vmem:[%s11863_s24 + $0x10] sm:$0xff] }
 0xafd   :  { %v1812_v9 = vsel %vm1810_vm10, %v1807_v5, %v1808_v3  ;;  %v1813_v10 = vsel %vm1810_vm10, %v1806_v55, %v1807_v5  ;;  %v1825_v25 = vmax.f32 %v1800_v62, %v1811_v8  ;;  %v1933_v42 = vpop.permute.xlu0 %1932  ;;  %v2908_v62 = vld [vmem:[%s11863_s24] sm:$0xff]  ;;  %v7090_v3 = vld [vmem:[%s11861_s5 + $0x70] sm:$0xff]  ;;  %v7091_v5 = vld [vmem:[%s11861_s5 + $0x78] sm:$0xff]  ;;  %v11262_v6 = vpack.c.bf16 %v2911_v17, %v2910_v0 }
 0xafe   :  { %8848 = vmatprep.subr.bf16.mxu1 %v8847_v7  ;;  %v1823_v11 = vmax.f32 %v1798_v47, %v1813_v10  ;;  %v1824_v12 = vmax.f32 %v1799_v2, %v1812_v9  ;;  %v8883_v2 = vpack.c.bf16 %v7089_v60, %v7088_v59  ;;  %v11259_v19 = vpack.c.bf16 %v2909_v63, %v2908_v62  ;;  %v2913_v8 = vld [vmem:[%s11863_s24 + $0x28] sm:$0xff]  ;;  %v7112_v0 = vld [vmem:[%s11861_s5 + $0xe0] sm:$0xff] }
 0xaff   :  { %8850 = vmatpush3.bf16.msra.mxu1 %v8847_v7  ;;  %v8855_v13 = vpack.c.bf16 %v1826_v23, %v1825_v25  ;;  %v2912_v7 = vld [vmem:[%s11863_s24 + $0x20] sm:$0xff]  ;;  %v8887_v10 = vpack.c.bf16 %v7091_v5, %v7090_v3  ;;  %v7115_v3 = vld [vmem:[%s11861_s5 + $0xf8] sm:$0xff] }
 0xb00   :  { %v8851_v14 = vpack.c.bf16 %v1824_v12, %v1823_v11  ;;  %v7096_v25 = vld [vmem:[%s11861_s5 + $0x80] sm:$0xff]  ;;  %v11274_v11 = vpack.c.bf16 %v2913_v8, %v2912_v7  ;;  %v7097_v12 = vld [vmem:[%s11861_s5 + $0x88] sm:$0xff]  ;;  %v7122_v8 = vld [vmem:[%s11861_s5 + $0x110] sm:$0xff] }
 0xb01   :  { %v7120_v5 = vld [vmem:[%s11861_s5 + $0x100] sm:$0xff] }
 0xb02   :  { %8852 = vmatprep.subr.bf16.mxu1 %v8851_v14 }
 0xb03   :  { %8854 = vmatpush3.bf16.msra.mxu1 %v8851_v14  ;;  %v2915_v14 = vld [vmem:[%s11863_s24 + $0x38] sm:$0xff] }
 0xb04   :  { %8856 = vmatprep.subr.bf16.mxu1 %v8855_v13 }
 0xb07   :  { %8858 = vmatpush3.bf16.msra.mxu1 %v8855_v13  ;;  %v2914_v13 = vld [vmem:[%s11863_s24 + $0x30] sm:$0xff] }
 0xb08   :  { %9004 = vmatprep.subr.bf16.mxu1 %v11259_v19  ;;  %v11281_v16 = vpack.c.bf16 %v2915_v14, %v2914_v13 }
 0xb0a   :  { %7988 = vmatmul.mubr.msk.f32.vlgmr.msra.gmra.mrb[18].mxu1 %vm808_vm4, %v1828_v15  ;;  %v8891_v15 = vpack.c.bf16 %v7097_v12, %v7096_v25 }
 0xb0b   :  { %9006 = vmatpush3.bf16.msra.mxu1 %v11259_v19 }
 0xb0c   :  { %9008 = vmatprep.subr.bf16.mxu1 %v11262_v6 }
 0xb0f   :  { %9010 = vmatpush3.bf16.msra.mxu1 %v11262_v6 }
 0xb10   :  { %9012 = vmatprep.subr.bf16.mxu1 %v11274_v11 }
 0xb13   :  { %9014 = vmatpush3.bf16.msra.mxu1 %v11274_v11 }
 0xb14   :  { %9016 = vmatprep.subr.bf16.mxu1 %v11281_v16 }
 0xb17   :  { %9018 = vmatpush3.bf16.msra.mxu1 %v11281_v16 }
 0xbdd   :  { %v11198_v31 = vpop.f32.mrb[18].mxu1 }
 0xbde   :  { %v11202_v26 = vpop.f32.mrb[19].mxu1  ;;  %v2797_v27 = vrot.slane %v11198_v31, 3  ;;  %v1919_v28 = vrot.slane %v11198_v31, 5  ;;  %v2029_v30 = vrot.slane %v11198_v31, 6  ;;  %v2141_v32 = vrot.slane %v11198_v31, 7 }
 0xbdf   :  { %v2796_v33 = vrot.slane %v11202_v26, 3  ;;  %v1918_v34 = vrot.slane %v11202_v26, 5  ;;  %v2028_v36 = vrot.slane %v11202_v26, 6  ;;  %v2140_v39 = vrot.slane %v11202_v26, 7 }
 0xbe0   :  { %v2466_v38 = vrot.slane %v11202_v26, 1  ;;  %v2467_v40 = vrot.slane %v11198_v31, 1  ;;  %v2684_v1 = vrot.slane %v11202_v26, 2  ;;  %v2685_v4 = vrot.slane %v11198_v31, 2 }
 0xbe1   :  { %v11220_v45 = vsel %vm2798_vm11, %v2796_v33, %v2797_v27  ;;  %v11224_v46 = vsel %vm2798_vm11, %v2797_v27, %v2796_v33  ;;  %v1921_v41 = vsel %vm1920_vm12, %v1918_v34, %v1919_v28  ;;  %v1922_v47 = vsel %vm1920_vm12, %v1919_v28, %v1918_v34  ;;  %v7101_v33 = vld [vmem:[%s11861_s5 + $0xa8] sm:$0xff] }
 0xbe2   :  { %v1935_v48 = vmul.f32 %v1928_v24, %v1922_v47  ;;  %v1936_v49 = vmul.f32 %v1933_v42, %v1921_v41  ;;  %v2032_v52 = vsel %vm2030_vm13, %v2029_v30, %v2028_v36  ;;  %v2031_v53 = vsel %vm2030_vm13, %v2028_v36, %v2029_v30  ;;  %v2151_v24 = vpop.permute.xlu0 %2150  ;;  %v2918_v36 = vld [vmem:[%s11863_s24 + $0x50] sm:$0xff]  ;;  %v2920_v42 = vld [vmem:[%s11863_s24 + $0x60] sm:$0xff]  ;;  %v2921_v41 = vld [vmem:[%s11863_s24 + $0x68] sm:$0xff] }
 0xbe3   :  { %v11232_v54 = vsel %vm2142_vm14, %v2141_v32, %v2140_v39  ;;  %v11236_v55 = vsel %vm2142_vm14, %v2140_v39, %v2141_v32  ;;  %v2046_v56 = vmul.f32 %v2039_v51, %v2032_v52  ;;  %v11244_v58 = vsel %vm1785_vm9, %v2466_v38, %v2467_v40  ;;  %v7100_v32 = vld [vmem:[%s11861_s5 + $0xa0] sm:$0xff]  ;;  %v7102_v39 = vld [vmem:[%s11861_s5 + $0xb0] sm:$0xff] }
 0xbe4   :  { %8006 = vmatprep.mubr.msk.f32.mxu0 %vm808_vm4, %v1935_v48  ;;  %v11248_v61 = vsel %vm1785_vm9, %v2467_v40, %v2466_v38  ;;  %v11266_v23 = vsel %vm2686_vm15, %v2684_v1, %v2685_v4  ;;  %v11268_v9 = vsel %vm2686_vm15, %v2685_v4, %v2684_v1  ;;  %v8895_v28 = vpack.c.bf16 %v7099_v20, %v7098_v18  ;;  %v7103_v38 = vld [vmem:[%s11861_s5 + $0xb8] sm:$0xff]  ;;  %v7108_v48 = vld [vmem:[%s11861_s5 + $0xc0] sm:$0xff]  ;;  %v7110_v52 = vld [vmem:[%s11861_s5 + $0xd0] sm:$0xff] }
 0xbe5   :  { %8007 = vmatmul.mubr.msk.f32.vlgmr.msra.gmra.mrb[42].mxu0 %vm808_vm4, %v1936_v49  ;;  %v2158_v30 = vmul.f32 %v2151_v24, %v11232_v54  ;;  %v11292_v34 = vpack.c.bf16 %v2917_v21, %v2916_v29  ;;  %v8899_v37 = vpack.c.bf16 %v7101_v33, %v7100_v32  ;;  %v11302_v40 = vpack.c.bf16 %v2919_v35, %v2918_v36  ;;  %v7109_v49 = vld [vmem:[%s11861_s5 + $0xc8] sm:$0xff]  ;;  %v7124_v18 = vld [vmem:[%s11861_s5 + $0x120] sm:$0xff]  ;;  %v7126_v21 = vld [vmem:[%s11861_s5 + $0x130] sm:$0xff] }
 0xbe6   :  { %8878 = vmatpush3.bf16.msra.mxu0 %v8875_v22  ;;  %8025 = vmatprep.mubr.msk.f32.mxu0 %vm808_vm4, %v2046_v56  ;;  %v2044_v22 = vpop.permute.xlu1 %2043  ;;  %v8903_v47 = vpack.c.bf16 %v7103_v38, %v7102_v39  ;;  %v8907_v51 = vpack.c.bf16 %v7109_v49, %v7108_v48  ;;  %v2258_v59 = vpop.permute.xlu0 %2257  ;;  %v7113_v1 = vld [vmem:[%s11861_s5 + $0xe8] sm:$0xff]  ;;  %v7132_v24 = vld [vmem:[%s11861_s5 + $0x140] sm:$0xff] }
 0xbe7   :  { %8880 = vmatprep.subr.bf16.mxu0 %v8879_v50  ;;  %v2047_v27 = vmul.f32 %v2044_v22, %v2031_v53  ;;  %9020 = vmatprep.subr.bf16.mxu1 %v11292_v34  ;;  %v7111_v53 = vld [vmem:[%s11861_s5 + $0xd8] sm:$0xff]  ;;  %v2265_v63 = vmul.f32 %v2258_v59, %v11232_v54  ;;  %v8915_v17 = vpack.c.bf16 %v7113_v1, %v7112_v0  ;;  %v7121_v54 = vld [vmem:[%s11861_s5 + $0x108] sm:$0xff]  ;;  %v7136_v39 = vld [vmem:[%s11861_s5 + $0x160] sm:$0xff] }
 0xbe8   :  { %9022 = vmatpush3.bf16.msra.mxu1 %v11292_v34  ;;  %v8911_v62 = vpack.c.bf16 %v7111_v53, %v7110_v52  ;;  %v8923_v7 = vpack.c.bf16 %v7121_v54, %v7120_v5  ;;  %v7125_v20 = vld [vmem:[%s11861_s5 + $0x128] sm:$0xff]  ;;  %v7127_v22 = vld [vmem:[%s11861_s5 + $0x138] sm:$0xff]  ;;  %v7144_v48 = vld [vmem:[%s11861_s5 + $0x180] sm:$0xff] }
 0xbe9   :  { %9024 = vmatprep.subr.bf16.mxu1 %v11302_v40  ;;  %v8931_v29 = vpack.c.bf16 %v7125_v20, %v7124_v18  ;;  %v7137_v38 = vld [vmem:[%s11861_s5 + $0x168] sm:$0xff]  ;;  %v7146_v52 = vld [vmem:[%s11861_s5 + $0x190] sm:$0xff]  ;;  %v7147_v53 = vld [vmem:[%s11861_s5 + $0x198] sm:$0xff] }
 0xbea   :  { %8882 = vmatpush3.bf16.msra.mxu0 %v8879_v50  ;;  %v11310_v50 = vpack.c.bf16 %v2921_v41, %v2920_v42  ;;  %v2156_v56 = vpop.permute.xlu1 %2155  ;;  %v2365_v12 = vpop.permute.xlu0 %2364  ;;  %v8947_v42 = vpack.c.bf16 %v7137_v38, %v7136_v39  ;;  %v7138_v41 = vld [vmem:[%s11861_s5 + $0x170] sm:$0xff]  ;;  %v7145_v49 = vld [vmem:[%s11861_s5 + $0x188] sm:$0xff]  ;;  %v7148_v0 = vld [vmem:[%s11861_s5 + $0x1a0] sm:$0xff] }
 0xbeb   :  { %8884 = vmatprep.subr.bf16.mxu0 %v8883_v2  ;;  %v2159_v60 = vmul.f32 %v2156_v56, %v11236_v55  ;;  %v7149_v1 = vld [vmem:[%s11861_s5 + $0x1a8] sm:$0xff]  ;;  %v7156_v5 = vld [vmem:[%s11861_s5 + $0x1c0] sm:$0xff]  ;;  %v7174_v39 = vld [vmem:[%s11861_s5 + $0x230] sm:$0xff] }
 0xbec   :  { %9026 = vmatpush3.bf16.msra.mxu1 %v11302_v40  ;;  %v7161_v18 = vld [vmem:[%s11861_s5 + $0x1e8] sm:$0xff]  ;;  %v7175_v38 = vld [vmem:[%s11861_s5 + $0x238] sm:$0xff] }
 0xbed   :  { %9028 = vmatprep.subr.bf16.mxu1 %v11310_v50 }
 0xbee   :  { %8886 = vmatpush3.bf16.msra.mxu0 %v8883_v2  ;;  %v7114_v2 = vld [vmem:[%s11861_s5 + $0xf0] sm:$0xff]  ;;  %v2263_v25 = vpop.permute.xlu1 %2262  ;;  %v2476_v33 = vpop.permute.xlu0 %2475 }
 0xbef   :  { %8888 = vmatprep.subr.bf16.mxu0 %v8887_v10  ;;  %v8919_v4 = vpack.c.bf16 %v7115_v3, %v7114_v2  ;;  %v2266_v13 = vmul.f32 %v2263_v25, %v11236_v55  ;;  %v8935_v55 = vpack.c.bf16 %v7127_v22, %v7126_v21  ;;  %v7150_v2 = vld [vmem:[%s11861_s5 + $0x1b0] sm:$0xff]  ;;  %v7151_v3 = vld [vmem:[%s11861_s5 + $0x1b8] sm:$0xff]  ;;  %v7168_v22 = vld [vmem:[%s11861_s5 + $0x200] sm:$0xff] }
 0xbf0   :  { %9030 = vmatpush3.bf16.msra.mxu1 %v11310_v50  ;;  %v7163_v21 = vld [vmem:[%s11861_s5 + $0x1f8] sm:$0xff] }
 0xbf2   :  { %8890 = vmatpush3.bf16.msra.mxu0 %v8887_v10  ;;  %v7123_v10 = vld [vmem:[%s11861_s5 + $0x118] sm:$0xff]  ;;  %v2370_v32 = vpop.permute.xlu1 %2369  ;;  %v2583_v59 = vpop.permute.xlu0 %2582 }
 0xbf3   :  { %8892 = vmatprep.subr.bf16.mxu0 %v8891_v15  ;;  %v8927_v14 = vpack.c.bf16 %v7123_v10, %v7122_v8  ;;  %v2373_v36 = vmul.f32 %v11198_v31, %v2370_v32  ;;  %v7159_v8 = vld [vmem:[%s11861_s5 + $0x1d8] sm:$0xff] }
 0xbf5   :  { %8026 = vmatmul.mubr.msk.f32.vlgmr.msra.gmra.mrb[42].mxu0 %vm808_vm4, %v2047_v27 }
 0xbf6   :  { %8894 = vmatpush3.bf16.msra.mxu0 %v8891_v15  ;;  %8044 = vmatprep.mubr.msk.f32.mxu0 %vm808_vm4, %v2158_v30  ;;  %v2372_v15 = vmul.f32 %v2365_v12, %v11202_v26  ;;  %v7133_v26 = vld [vmem:[%s11861_s5 + $0x148] sm:$0xff]  ;;  %v7135_v30 = vld [vmem:[%s11861_s5 + $0x158] sm:$0xff]  ;;  %v2481_v56 = vpop.permute.xlu1 %2480  ;;  %v2695_v25 = vpop.permute.xlu0 %2694 }
 0xbf7   :  { %8896 = vmatprep.subr.bf16.mxu0 %v8895_v28  ;;  %v8939_v27 = vpack.c.bf16 %v7133_v26, %v7132_v24  ;;  %v7170_v24 = vld [vmem:[%s11861_s5 + $0x210] sm:$0xff]  ;;  %v7171_v26 = vld [vmem:[%s11861_s5 + $0x218] sm:$0xff] }
 0xbf8   :  { %v8991_v32 = vpack.c.bf16 %v7171_v26, %v7170_v24  ;;  %v7190_v26 = vld [vmem:[#allocation17] ss:$0 sm:$0xff] }
 0xbfa   :  { %8898 = vmatpush3.bf16.msra.mxu0 %v8895_v28  ;;  %v7134_v28 = vld [vmem:[%s11861_s5 + $0x150] sm:$0xff]  ;;  %v2588_v10 = vpop.permute.xlu1 %2587 }
 0xbfb   :  { %8900 = vmatprep.subr.bf16.mxu0 %v8899_v37  ;;  %v8943_v35 = vpack.c.bf16 %v7135_v30, %v7134_v28  ;;  %v2591_v12 = vmul.f32 %v2588_v10, %v11248_v61  ;;  %v2807_v28 = vpop.permute.xlu0 %2806 }
 0xbfe   :  { %8902 = vmatpush3.bf16.msra.mxu0 %v8899_v37  ;;  %v2483_v37 = vmul.f32 %v2476_v33, %v11244_v58  ;;  %v2814_v33 = vmul.f32 %v2807_v28, %v11220_v45 }
 0xbff   :  { %8904 = vmatprep.subr.bf16.mxu0 %v8903_v47 }
 0xc02   :  { %8906 = vmatpush3.bf16.msra.mxu0 %v8903_v47  ;;  %v7139_v47 = vld [vmem:[%s11861_s5 + $0x178] sm:$0xff] }
 0xc03   :  { %8908 = vmatprep.subr.bf16.mxu0 %v8907_v51  ;;  %v8951_v31 = vpack.c.bf16 %v7139_v47, %v7138_v41  ;;  %v2922_v41 = vld [vmem:[%s11863_s24 + $0x70] sm:$0xff]  ;;  %v2923_v47 = vld [vmem:[%s11863_s24 + $0x78] sm:$0xff] }
 0xc05   :  { %8045 = vmatmul.mubr.msk.f32.vlgmr.msra.gmra.mrb[42].mxu0 %vm808_vm4, %v2159_v60  ;;  %v2484_v60 = vmul.f32 %v2481_v56, %v11248_v61 }
 0xc06   :  { %8910 = vmatpush3.bf16.msra.mxu0 %v8907_v51  ;;  %8063 = vmatprep.mubr.msk.f32.mxu0 %vm808_vm4, %v2265_v63  ;;  %v8955_v51 = vpack.c.bf16 %v7145_v49, %v7144_v48  ;;  %v2590_v63 = vmul.f32 %v2583_v59, %v11244_v58  ;;  %v7157_v58 = vld [vmem:[%s11861_s5 + $0x1c8] sm:$0xff] }
 0xc07   :  { %8912 = vmatprep.subr.bf16.mxu0 %v8911_v62  ;;  %v8971_v54 = vpack.c.bf16 %v7157_v58, %v7156_v5  ;;  %v7079_v48 = vld [vmem:[#allocation16] ss:$0 sm:$0xff] }
 0xc0a   :  { %8914 = vmatpush3.bf16.msra.mxu0 %v8911_v62  ;;  %v8959_v62 = vpack.c.bf16 %v7147_v53, %v7146_v52 }
 0xc0b   :  { %8916 = vmatprep.subr.bf16.mxu0 %v8915_v17 }
 0xc0e   :  { %8918 = vmatpush3.bf16.msra.mxu0 %v8915_v17  ;;  %v8963_v17 = vpack.c.bf16 %v7149_v1, %v7148_v0  ;;  %v2925_v0 = vld [vmem:[#allocation20 + $0x8] sm:$0xff] }
 0xc0f   :  { %8920 = vmatprep.subr.bf16.mxu0 %v8919_v4 }
 0xc12   :  { %8922 = vmatpush3.bf16.msra.mxu0 %v8919_v4  ;;  %v8967_v4 = vpack.c.bf16 %v7151_v3, %v7150_v2 }
 0xc13   :  { %8924 = vmatprep.subr.bf16.mxu0 %v8923_v7 }
 0xc15   :  { %8064 = vmatmul.mubr.msk.f32.vlgmr.msra.gmra.mrb[42].mxu0 %vm808_vm4, %v2266_v13 }
 0xc16   :  { %8926 = vmatpush3.bf16.msra.mxu0 %v8923_v7  ;;  %8082 = vmatprep.mubr.msk.f32.mxu0 %vm808_vm4, %v2372_v15  ;;  %v7158_v7 = vld [vmem:[%s11861_s5 + $0x1d0] sm:$0xff]  ;;  %v7160_v15 = vld [vmem:[%s11861_s5 + $0x1e0] sm:$0xff] }
 0xc17   :  { %8928 = vmatprep.subr.bf16.mxu0 %v8927_v14  ;;  %v8975_v13 = vpack.c.bf16 %v7159_v8, %v7158_v7  ;;  %v8979_v20 = vpack.c.bf16 %v7161_v18, %v7160_v15 }
 0xc1a   :  { %8930 = vmatpush3.bf16.msra.mxu0 %v8927_v14  ;;  %v2702_v14 = vmul.f32 %v2695_v25, %v11266_v23  ;;  %v7169_v23 = vld [vmem:[%s11861_s5 + $0x208] sm:$0xff] }
 0xc1b   :  { %8932 = vmatprep.subr.bf16.mxu0 %v8931_v29 }
 0xc1e   :  { %8934 = vmatpush3.bf16.msra.mxu0 %v8931_v29  ;;  %v7162_v29 = vld [vmem:[%s11861_s5 + $0x1f0] sm:$0xff] }
 0xc1f   :  { %8936 = vmatprep.subr.bf16.mxu0 %v8935_v55  ;;  %v8983_v61 = vpack.c.bf16 %v7163_v21, %v7162_v29  ;;  %v3589_v29 = vld [vmem:[%s11865_s18 + $0x8] sm:$0xff]  ;;  %v3683_v21 = vld [vmem:[%s11866_s8] sm:$0xff] }
 0xc22   :  { %8938 = vmatpush3.bf16.msra.mxu0 %v8935_v55  ;;  %v8987_v55 = vpack.c.bf16 %v7169_v23, %v7168_v22  ;;  %v3685_v23 = vld [vmem:[%s11866_s8 + $0x10] sm:$0xff] }
 0xc23   :  { %8940 = vmatprep.subr.bf16.mxu0 %v8939_v27 }
 0xc25   :  { %8083 = vmatmul.mubr.msk.f32.vlgmr.msra.gmra.mrb[42].mxu0 %vm808_vm4, %v2373_v36  ;;  %v7172_v36 = vld [vmem:[%s11861_s5 + $0x220] sm:$0xff] }
 0xc26   :  { %8942 = vmatpush3.bf16.msra.mxu0 %v8939_v27  ;;  %8101 = vmatprep.mubr.msk.f32.mxu0 %vm808_vm4, %v2483_v37  ;;  %v2700_v27 = vpop.permute.xlu1 %2699 }
 0xc27   :  { %8944 = vmatprep.subr.bf16.mxu0 %v8943_v35  ;;  %v2703_v30 = vmul.f32 %v2700_v27, %v11268_v9  ;;  %v8999_v9 = vpack.c.bf16 %v7175_v38, %v7174_v39 }
 0xc2a   :  { %8946 = vmatpush3.bf16.msra.mxu0 %v8943_v35  ;;  %v7173_v35 = vld [vmem:[%s11861_s5 + $0x228] sm:$0xff] }
 0xc2b   :  { %8948 = vmatprep.subr.bf16.mxu0 %v8947_v42  ;;  %v8995_v37 = vpack.c.bf16 %v7173_v35, %v7172_v36  ;;  %v7192_v35 = vld [vmem:[#allocation25] ss:$0 sm:$0xff] }
 0xc2e   :  { %8950 = vmatpush3.bf16.msra.mxu0 %v8947_v42  ;;  %v2812_v42 = vpop.permute.xlu1 %2811 }
 0xc2f   :  { %8952 = vmatprep.subr.bf16.mxu0 %v8951_v31  ;;  %v2815_v45 = vmul.f32 %v2812_v42, %v11224_v46 }
 0xc32   :  { %8954 = vmatpush3.bf16.msra.mxu0 %v8951_v31  ;;  %v9031_v31 = vpack.c.bf16 %v2923_v47, %v2922_v41 }
 0xc33   :  { %8956 = vmatprep.subr.bf16.mxu0 %v8955_v51 }
 0xc34   :  { %9032 = vmatprep.subr.bf16.mxu1 %v9031_v31 }
 0xc35   :  { %8102 = vmatmul.mubr.msk.f32.vlgmr.msra.gmra.mrb[42].mxu0 %vm808_vm4, %v2484_v60  ;;  %9034 = vmatpush3.bf16.msra.mxu1 %v9031_v31  ;;  %v2926_v60 = vld [vmem:[#allocation22] sm:$0xf] }
 0xc36   :  { %8958 = vmatpush3.bf16.msra.mxu0 %v8955_v51  ;;  %8120 = vmatprep.mubr.msk.f32.mxu0 %vm808_vm4, %v2590_v63  ;;  %v2924_v63 = vld [vmem:[#allocation20] sm:$0xff] }
 0xc37   :  { %8960 = vmatprep.subr.bf16.mxu0 %v8959_v62  ;;  %9035 = vmatprep.subr.bf16.mxu1 %v10444_v43  ;;  %v9038_v3 = vpack.c.bf16 %v2925_v0, %v2924_v63  ;;  %v11448_v0 = vld [vmem:[%s11867_s22 + $0x8] sm:$0xff] }
 0xc3a   :  { %8962 = vmatpush3.bf16.msra.mxu0 %v8959_v62  ;;  %v2927_v62 = vld [vmem:[%s11864_s16] sm:$0xff] }
 0xc3b   :  { %8964 = vmatprep.subr.bf16.mxu0 %v8963_v17 }
 0xc3e   :  { %8966 = vmatpush3.bf16.msra.mxu0 %v8963_v17 }
 0xc3f   :  { %8968 = vmatprep.subr.bf16.mxu0 %v8967_v4 }
 0xc42   :  { %8970 = vmatpush3.bf16.msra.mxu0 %v8967_v4  ;;  %v2928_v4 = vld [vmem:[%s11864_s16 + $0x8] sm:$0xff] }
 0xc43   :  { %8972 = vmatprep.subr.bf16.mxu0 %v8971_v54 }
 0xc45   :  { %8121 = vmatmul.mubr.msk.f32.vlgmr.msra.gmra.mrb[42].mxu0 %vm808_vm4, %v2591_v12 }
 0xc46   :  { %8974 = vmatpush3.bf16.msra.mxu0 %v8971_v54  ;;  %8139 = vmatprep.mubr.msk.f32.mxu0 %vm808_vm4, %v2702_v14  ;;  %v3590_v14 = vld [vmem:[#allocation23] sm:$0x7] }
 0xc47   :  { %8976 = vmatprep.subr.bf16.mxu0 %v8975_v13 }
 0xc4a   :  { %8978 = vmatpush3.bf16.msra.mxu0 %v8975_v13 }
 0xc4b   :  { %8980 = vmatprep.subr.bf16.mxu0 %v8979_v20 }
 0xc4e   :  { %8982 = vmatpush3.bf16.msra.mxu0 %v8979_v20  ;;  %v3588_v20 = vld [vmem:[%s11865_s18] sm:$0xff] }
 0xc4f   :  { %8984 = vmatprep.subr.bf16.mxu0 %v8983_v61 }
 0xc52   :  { %8986 = vmatpush3.bf16.msra.mxu0 %v8983_v61  ;;  %v3684_v61 = vld [vmem:[%s11866_s8 + $0x8] sm:$0xff] }
 0xc53   :  { %8988 = vmatprep.subr.bf16.mxu0 %v8987_v55  ;;  %v9081_v22 = vpack.c.bf16 %v3684_v61, %v3683_v21  ;;  %v4675_v61 = vld [vmem:[%s11868_s30] sm:$0xff] }
 0xc55   :  { %8140 = vmatmul.mubr.msk.f32.vlgmr.msra.gmra.mrb[42].mxu0 %vm808_vm4, %v2703_v30 }
 0xc56   :  { %8990 = vmatpush3.bf16.msra.mxu0 %v8987_v55  ;;  %8158 = vmatprep.mubr.msk.f32.mxu0 %vm808_vm4, %v2814_v33  ;;  %v3686_v55 = vld [vmem:[%s11866_s8 + $0x18] sm:$0xff] }
 0xc57   :  { %8992 = vmatprep.subr.bf16.mxu0 %v8991_v32  ;;  %v9085_v24 = vpack.c.bf16 %v3686_v55, %v3685_v23  ;;  %v4677_v23 = vld [vmem:[%s11868_s30 + $0x10] sm:$0xff] }
 0xc5a   :  { %8994 = vmatpush3.bf16.msra.mxu0 %v8991_v32  ;;  %v7191_v32 = vld [vmem:[#allocation19] ss:$0 sm:$0xff] }
 0xc5b   :  { %8996 = vmatprep.subr.bf16.mxu0 %v8995_v37 }
 0xc5e   :  { %8998 = vmatpush3.bf16.msra.mxu0 %v8995_v37 }
 0xc5f   :  { %9000 = vmatprep.subr.bf16.mxu0 %v8999_v9 }
 0xc62   :  { %9002 = vmatpush3.bf16.msra.mxu0 %v8999_v9 }
 0xc65   :  { %8159 = vmatmul.mubr.msk.f32.vlgmr.msra.gmra.mrb[42].mxu0 %vm808_vm4, %v2815_v45 }
 0xd38   :  { %v8160_v49 = vpop.f32.mrb[42].mxu0 }
 0xd39   :  { %v2897_v51 = vpop.f32.mrb[43].mxu0  ;;  %v9373_v53 = vadd.f32 %v8160_v49, %v7079_v48 }
 0xd3a   :  { %v9374_v52 = vadd.f32 %v7079_v48, %v2897_v51 }
 0xd3c   :  { %8193 = vmatprep.mubr.f32.mxu1 %v9374_v52 }
 0xd3d   :  { %8194 = vmatmul.mubr.f32.vlgmr.msra.gmra.mrb[20].mxu1 %v9373_v53 }
 0xd3e   :  { %8200 = vmatprep.mubr.msk.f32.mxu1 %vm10445_vm5, %v10446_v44 }
 0xe10   :  { %v8195_v46 = vpop.f32.mrb[20].mxu1 }
 0xe11   :  { %v2997_v56 = vpop.f32.mrb[21].mxu1 }
 0xe12   :  { %v9036_v59 = vpack.c.bf16 %v8195_v46, %v2997_v56  ;;  %v3687_v46 = vld [vmem:[#allocation29] sm:$0xff]  ;;  %v3688_v56 = vld [vmem:[#allocation29 + $0x8] sm:$0xff] }
 0xe13   :  { %v9092_v63 = vpack.c.bf16 %v3688_v56, %v3687_v46  ;;  %v4483_v56 = vld [vmem:[#allocation31 + $0x30] sm:$0xff] }
 0xe14   :  { %9037 = vmatpush3.bf16.msra.mxu1 %v9036_v59 }
 0xe17   :  { %8201 = vmatmul.mubr.msk.f32.vlgmr.msra.gmra.mrb[22].mxu1 %vm1146_vm8, %v2926_v60 }
 0xe18   :  { %8205 = vmatprep.mubr.msk.f32.mxu1 %vm1012_vm6, %v2927_v62 }
 0xeea   :  { %v3075_v1 = vpop.f32.mrb[22].mxu1 }
 0xeeb   :  { %v3079_v17 = vmul.f32 0.03125, %v3075_v1  ;;  %v8202_v2 = vpop.f32.mrb[23].mxu1 }
 0xeed   :  { %8203 = vmatprep.subr.msk.mxu1 %vm1037_vm7, %v3079_v17 }
 0xeee   :  { %8204 = vmatpush3.msk.msra.mxu1 %vm1037_vm7, %v3079_v17 }
 0xeef   :  { %8206 = vmatmul.mubr.msk.f32.vlgmr.msra.gmra.mrb[24].mxu1 %vm1012_vm6, %v2928_v4  ;;  %9039 = vmatprep.subr.bf16.mxu1 %v9038_v3 }
 0xef0   :  { %9041 = vmatpush3.bf16.msra.mxu1 %v9038_v3 }
 0xef1   :  { %9043 = vmatprep.subr.bf16.mxu1 %v11259_v19 }
 0xfc2   :  { %v8207_v5 = vpop.f32.mrb[24].mxu1 }
 0xfc3   :  { %v3155_v58 = vpop.f32.mrb[25].mxu1 }
 0xfc4   :  { %8212 = vmatprep.mubr.msk.f32.mxu1 %vm1146_vm8, %v3155_v58 }
 0xfc5   :  { %8213 = vmatmul.mubr.msk.f32.vlgmr.msra.gmra.mrb[26].mxu1 %vm1146_vm8, %v8207_v5 }
 0xfc6   :  { %9045 = vmatpush3.bf16.msra.mxu1 %v11259_v19 }
 0xfc7   :  { %9047 = vmatprep.subr.bf16.mxu1 %v11262_v6 }
 0xfca   :  { %9049 = vmatpush3.bf16.msra.mxu1 %v11262_v6 }
 0xfcb   :  { %9051 = vmatprep.subr.bf16.mxu1 %v11274_v11 }
 0xfce   :  { %9053 = vmatpush3.bf16.msra.mxu1 %v11274_v11 }
 0xfcf   :  { %9055 = vmatprep.subr.bf16.mxu1 %v11281_v16 }
 0xfd2   :  { %9057 = vmatpush3.bf16.msra.mxu1 %v11281_v16 }
 0xfd3   :  { %9059 = vmatprep.subr.bf16.mxu1 %v11292_v34 }
 0xfd6   :  { %9061 = vmatpush3.bf16.msra.mxu1 %v11292_v34 }
 0xfd7   :  { %9063 = vmatprep.subr.bf16.mxu1 %v11302_v40 }
 0xfda   :  { %9065 = vmatpush3.bf16.msra.mxu1 %v11302_v40 }
 0xfdb   :  { %9067 = vmatprep.subr.bf16.mxu1 %v11310_v50 }
 0xfde   :  { %9069 = vmatpush3.bf16.msra.mxu1 %v11310_v50 }
 0xfdf   :  { %9071 = vmatprep.subr.bf16.mxu1 %v9031_v31 }
 0xfe2   :  { %9073 = vmatpush3.bf16.msra.mxu1 %v9031_v31 }
 0xfe3   :  { %9074 = vmatprep.subr.bf16.mxu1 %v10444_v43 }
0x1098   :  { %v8214_v19 = vpop.f32.mrb[26].mxu1 }
0x1099   :  { %v3246_v6 = vsub.f32 %v9373_v53, %v8214_v19  ;;  %v3236_v11 = vpop.f32.mrb[27].mxu1  ;;  %v11443_v53 = vld [vmem:[%s11867_s22] sm:$0xff] }
0x109a   :  { %v3245_v16 = vsub.f32 %v9374_v52, %v3236_v11  ;;  %v11438_v52 = vld [vmem:[#allocation38] sm:$0xf] }
0x109b   :  { %v3248_v7 = vmul.f32 %v3246_v6, %v3246_v6 }
0x109c   :  { %v3247_v54 = vmul.f32 %v3245_v16, %v3245_v16 }
0x109e   :  { %8247 = vmatprep.mubr.f32.mxu1 %v3247_v54 }
0x109f   :  { %8248 = vmatmul.mubr.f32.vlgmr.msra.gmra.mrb[28].mxu1 %v3248_v7 }
0x10a0   :  { %8254 = vmatprep.mubr.msk.f32.mxu1 %vm10445_vm5, %v10446_v44 }
0x1172   :  { %v8249_v34 = vpop.f32.mrb[28].mxu1 }
0x1173   :  { %v3315_v40 = vpop.f32.mrb[29].mxu1 }
0x1174   :  { %v9075_v8 = vpack.c.bf16 %v8249_v34, %v3315_v40 }
0x1176   :  { %9076 = vmatpush3.bf16.msra.mxu1 %v9075_v8 }
0x1179   :  { %8255 = vmatmul.mubr.msk.f32.vlgmr.msra.gmra.mrb[30].mxu1 %vm1146_vm8, %v2926_v60 }
0x117a   :  { %8259 = vmatprep.mubr.msk.f32.mxu1 %vm1012_vm6, %v2927_v62 }
0x124c   :  { %v3390_v50 = vpop.f32.mrb[30].mxu1 }
0x124d   :  { %v3394_v10 = vmul.f32 0.03125, %v3390_v50  ;;  %v8256_v25 = vpop.f32.mrb[31].mxu1 }
0x124e   :  { %v4378_v25 = vld [vmem:[#allocation31] sm:$0xff] }
0x124f   :  { %v3395_v12 = vadd.f32 1e-05, %v3394_v10 }
0x1251   :  { %9504 = vrsqrt.f32 %v3395_v12  ;;  %v4379_v12 = vld [vmem:[#allocation31 + $0x8] sm:$0xff] }
0x125b   :  { %v9505_v13 = vpop.eup %9504 }
0x125c   :  { %8257 = vmatprep.subr.msk.mxu1 %vm1037_vm7, %v9505_v13 }
0x125d   :  { %8258 = vmatpush3.msk.msra.mxu1 %vm1037_vm7, %v9505_v13  ;;  %v4380_v13 = vld [vmem:[#allocation31 + $0x10] sm:$0xff] }
0x125e   :  { %8260 = vmatmul.mubr.msk.f32.vlgmr.msra.gmra.mrb[32].mxu1 %vm1012_vm6, %v2928_v4  ;;  %9078 = vmatprep.subr.bf16.mxu1 %v9038_v3 }
0x125f   :  { %9080 = vmatpush3.bf16.msra.mxu1 %v9038_v3 }
0x1260   :  { %8269 = vmatprep.subr.msk.mxu1 %vm678_vm0, %v3590_v14 }
0x1331   :  { %v8261_v15 = vpop.f32.mrb[32].mxu1 }
0x1332   :  { %v3466_v18 = vpop.f32.mrb[33].mxu1 }
0x1333   :  { %8266 = vmatprep.mubr.msk.f32.mxu1 %vm1146_vm8, %v3466_v18 }
0x1334   :  { %8267 = vmatmul.mubr.msk.f32.vlgmr.msra.gmra.mrb[34].mxu1 %vm1146_vm8, %v8261_v15  ;;  %v4381_v15 = vld [vmem:[#allocation31 + $0x18] sm:$0xff] }
0x1335   :  { %8270 = vmatpush3.msk.msra.mxu1 %vm678_vm0, %v3590_v14  ;;  %8271 = vmatprep.mubr.msk.f32.mxu1 %vm3598_vm1, %v3588_v20  ;;  %vm3694_vm0 = vcmask 261120   ;;  %v9111_v14 = vpack.c.bf16 %v4379_v12, %v4378_v25  ;;  %v9115_v18 = vpack.c.bf16 %v4381_v15, %v4380_v13  ;;  %v4481_v20 = vld [vmem:[#allocation31 + $0x20] sm:$0xff]  ;;  %v4681_v25 = vld [vmem:[%s11868_s30 + $0x30] sm:$0xff]  ;;  %v4682_v12 = vld [vmem:[%s11868_s30 + $0x38] sm:$0xff] }
0x1336   :  { %9082 = vmatprep.subr.bf16.mxu1 %v9081_v22  ;;  %v9147_v13 = vpack.c.bf16 %v4682_v12, %v4681_v25  ;;  %v5693_v25 = vld [vmem:[#allocation41 + $0x50] sm:$0xff]  ;;  %v5694_v12 = vld [vmem:[#allocation41 + $0x58] sm:$0xff] }
0x1338   :  { %8272 = vmatmul.mubr.msk.f32.vlgmr.msra.gmra.mrb[36].mxu1 %vm3598_vm1, %v3589_v29  ;;  %v4482_v29 = vld [vmem:[#allocation31 + $0x28] sm:$0xff] }
0x1339   :  { %9084 = vmatpush3.bf16.msra.mxu1 %v9081_v22  ;;  %v9119_v21 = vpack.c.bf16 %v4482_v29, %v4481_v20 }
0x133a   :  { %9086 = vmatprep.subr.bf16.mxu1 %v9085_v24 }
0x133d   :  { %9088 = vmatpush3.bf16.msra.mxu1 %v9085_v24 }
0x133e   :  { %9089 = vmatprep.subr.bf16.mxu1 %v10444_v43 }
0x1407   :  { %v8268_v27 = vpop.f32.mrb[34].mxu1 }
0x1408   :  { %v3557_v28 = vmul.f32 %v8268_v27, %v3246_v6  ;;  %v3547_v30 = vpop.f32.mrb[35].mxu1  ;;  %v4679_v27 = vld [vmem:[%s11868_s30 + $0x20] sm:$0xff] }
0x1409   :  { %v3556_v33 = vmul.f32 %v3547_v30, %v3245_v16 }
0x140a   :  { %v3565_v36 = vmul.f32 %v7190_v26, %v3557_v28  ;;  %v4680_v28 = vld [vmem:[%s11868_s30 + $0x28] sm:$0xff] }
0x140b   :  { %v3564_v37 = vmul.f32 %v7190_v26, %v3556_v33  ;;  %v8273_v39 = vpop.f32.mrb[36].mxu1  ;;  %v11484_v30 = vpack.c.bf16 %v4680_v28, %v4679_v27 }
0x140c   :  { %v3573_v38 = vadd.f32 %v7191_v32, %v3565_v36  ;;  %v3674_v9 = vpop.f32.mrb[37].mxu1  ;;  %v3680_v47 = vadd.f32 %v8273_v39, %v7192_v35 }
0x140d   :  { %v3572_v42 = vadd.f32 %v7191_v32, %v3564_v37  ;;  %v3675_v45 = vadd.f32 %v7192_v35, %v3674_v9  ;;  %v7212_v32 = vld [vmem:[#allocation26] ss:$0 sm:$0xff]  ;;  %v7213_v37 = vld [vmem:[#allocation28] ss:$0 sm:$0xff] }
0x140e   :  { %v3575_v41 = vmax.f32 %v3573_v38, 0.0 }
0x140f   :  { %v3574_v31 = vmax.f32 %v3572_v42, 0.0  ;;  %8282 = vmatprep.mubr.msk.f32.mxu1 %vm3694_vm0, %v3675_v45 }
0x1410   :  { %3577 = vst [vmem:[#allocation2 + $0x8] sm:$0xff] %v3575_v41  ;;  %8283 = vmatmul.mubr.msk.f32.vlgmr.msra.gmra.mrb[38].mxu1 %vm3694_vm0, %v3680_v47 }
0x1411   :  { %3576 = vst [vmem:[#allocation2] sm:$0xff] %v3574_v31  ;;  %8289 = vmatprep.mubr.msk.f32.mxu1 %vm10445_vm5, %v10446_v44 }
0x14e3   :  { %v8284_v48 = vpop.f32.mrb[38].mxu1 }
0x14e4   :  { %v3767_v49 = vpop.f32.mrb[39].mxu1 }
0x14e5   :  { %v9090_v51 = vpack.c.bf16 %v8284_v48, %v3767_v49 }
0x14e7   :  { %9091 = vmatpush3.bf16.msra.mxu1 %v9090_v51 }
0x14ea   :  { %8290 = vmatmul.mubr.msk.f32.vlgmr.msra.gmra.mrb[40].mxu1 %vm1146_vm8, %v11438_v52 }
0x14eb   :  { %8294 = vmatprep.mubr.msk.f32.mxu1 %vm1012_vm6, %v11443_v53 }
0x15bd   :  { %v3845_v59 = vpop.f32.mrb[40].mxu1 }
0x15be   :  { %v3849_v60 = vmul.f32 0.125, %v3845_v59  ;;  %v8291_v62 = vpop.f32.mrb[41].mxu1  ;;  %v4484_v59 = vld [vmem:[#allocation31 + $0x38] sm:$0xff] }
0x15c0   :  { %8292 = vmatprep.subr.msk.mxu1 %vm1037_vm7, %v3849_v60 }
0x15c1   :  { %8293 = vmatpush3.msk.msra.mxu1 %vm1037_vm7, %v3849_v60  ;;  %v4374_v60 = vpop.permute.xlu1 %4373 }
0x15c2   :  { %8295 = vmatmul.mubr.msk.f32.vlgmr.msra.gmra.mrb[42].mxu1 %vm1012_vm6, %v11448_v0  ;;  %9093 = vmatprep.subr.bf16.mxu1 %v9092_v63 }
0x15c3   :  { %9095 = vmatpush3.bf16.msra.mxu1 %v9092_v63 }
0x15c4   :  { %9097 = vmatprep.subr.bf16.mxu1 %v9081_v22 }
0x15c5   :  { %v4476_v57 = vpop.permute.xlu1 %4475 }
0x1695   :  { %v8296_v1 = vpop.f32.mrb[42].mxu1 }
0x1696   :  { %v3925_v17 = vpop.f32.mrb[43].mxu1 }
0x1697   :  { %8301 = vmatprep.mubr.msk.f32.mxu1 %vm1146_vm8, %v3925_v17 }
0x1698   :  { %8302 = vmatmul.mubr.msk.f32.vlgmr.msra.gmra.mrb[44].mxu1 %vm1146_vm8, %v8296_v1 }
0x1699   :  { %9099 = vmatpush3.bf16.msra.mxu1 %v9081_v22  ;;  %v4676_v22 = vld [vmem:[%s11868_s30 + $0x8] sm:$0xff] }
0x169a   :  { %9101 = vmatprep.subr.bf16.mxu1 %v9085_v24  ;;  %v11474_v55 = vpack.c.bf16 %v4676_v22, %v4675_v61 }
0x169c   :  { %9136 = vmatprep.subr.bf16.mxu0 %v11474_v55 }
0x169d   :  { %9103 = vmatpush3.bf16.msra.mxu1 %v9085_v24  ;;  %v4678_v24 = vld [vmem:[%s11868_s30 + $0x18] sm:$0xff]  ;;  %9138 = vmatpush3.bf16.msra.mxu0 %v11474_v55 }
0x169e   :  { %9104 = vmatprep.subr.bf16.mxu1 %v10444_v43  ;;  %v11477_v26 = vpack.c.bf16 %v4678_v24, %v4677_v23  ;;  %v4683_v23 = vld [vmem:[#allocation37] sm:$0xff] }
0x16a0   :  { %9140 = vmatprep.subr.bf16.mxu0 %v11477_v26 }
0x16a1   :  { %9142 = vmatpush3.bf16.msra.mxu0 %v11477_v26 }
0x16a2   :  { %9144 = vmatprep.subr.bf16.mxu0 %v11484_v30 }
0x16a5   :  { %9146 = vmatpush3.bf16.msra.mxu0 %v11484_v30 }
0x16a6   :  { %9148 = vmatprep.subr.bf16.mxu0 %v9147_v13 }
0x16a9   :  { %9150 = vmatpush3.bf16.msra.mxu0 %v9147_v13 }
0x16aa   :  { %9159 = vmatprep.subr.bf16.mxu0 %v11474_v55 }
0x176b   :  { %v8303_v2 = vpop.f32.mrb[44].mxu1 }
0x176c   :  { %v4016_v3 = vsub.f32 %v3680_v47, %v8303_v2  ;;  %v4006_v4 = vpop.f32.mrb[45].mxu1  ;;  %v4369_v47 = vpop.permute.xlu0 %4368 }
0x176d   :  { %v4015_v5 = vsub.f32 %v3675_v45, %v4006_v4 }
0x176e   :  { %v4018_v19 = vmul.f32 %v4016_v3, %v4016_v3 }
0x176f   :  { %v4017_v58 = vmul.f32 %v4015_v5, %v4015_v5 }
0x1770   :  { %v4471_v4 = vpop.permute.xlu0 %4470 }
0x1771   :  { %8312 = vmatprep.mubr.msk.f32.mxu1 %vm3694_vm0, %v4017_v58 }
0x1772   :  { %8313 = vmatmul.mubr.msk.f32.vlgmr.msra.gmra.mrb[46].mxu1 %vm3694_vm0, %v4018_v19  ;;  %v4588_v19 = vld [vmem:[#allocation31 + $0x40] sm:$0xff] }
0x1773   :  { %8319 = vmatprep.mubr.msk.f32.mxu1 %vm10445_vm5, %v10446_v44 }
0x1845   :  { %v8314_v6 = vpop.f32.mrb[46].mxu1 }
0x1846   :  { %v4091_v11 = vpop.f32.mrb[47].mxu1 }
0x1847   :  { %v9105_v16 = vpack.c.bf16 %v8314_v6, %v4091_v11  ;;  %v4589_v6 = vld [vmem:[#allocation31 + $0x48] sm:$0xff] }
0x1848   :  { %v9127_v11 = vpack.c.bf16 %v4589_v6, %v4588_v19  ;;  %v5686_v6 = vld [vmem:[#allocation41 + $0x18] sm:$0xff] }
0x1849   :  { %9106 = vmatpush3.bf16.msra.mxu1 %v9105_v16  ;;  %v4590_v16 = vld [vmem:[#allocation31 + $0x50] sm:$0xff] }
0x184c   :  { %8320 = vmatmul.mubr.msk.f32.vlgmr.msra.gmra.mrb[48].mxu1 %vm1146_vm8, %v11438_v52 }
0x184d   :  { %8324 = vmatprep.mubr.msk.f32.mxu1 %vm1012_vm6, %v11443_v53 }
0x191f   :  { %v4166_v54 = vpop.f32.mrb[48].mxu1 }
0x1920   :  { %v4170_v7 = vmul.f32 0.125, %v4166_v54  ;;  %v8321_v34 = vpop.f32.mrb[49].mxu1  ;;  %v4591_v54 = vld [vmem:[#allocation31 + $0x58] sm:$0xff] }
0x1922   :  { %v4171_v40 = vadd.f32 1e-05, %v4170_v7  ;;  %v4578_v7 = vpop.permute.xlu0 %4577 }
0x1924   :  { %9506 = vrsqrt.f32 %v4171_v40  ;;  %v9131_v40 = vpack.c.bf16 %v4591_v54, %v4590_v16  ;;  %v5687_v16 = vld [vmem:[#allocation41 + $0x20] sm:$0xff]  ;;  %v5688_v54 = vld [vmem:[#allocation41 + $0x28] sm:$0xff] }
0x192e   :  { %v9507_v8 = vpop.eup %9506 }
0x192f   :  { %8322 = vmatprep.subr.msk.mxu1 %vm1037_vm7, %v9507_v8 }
0x1930   :  { %8323 = vmatpush3.msk.msra.mxu1 %vm1037_vm7, %v9507_v8 }
0x1931   :  { %8325 = vmatmul.mubr.msk.f32.vlgmr.msra.gmra.mrb[50].mxu1 %vm1012_vm6, %v11448_v0  ;;  %9108 = vmatprep.subr.bf16.mxu1 %v9092_v63 }
0x1932   :  { %9110 = vmatpush3.bf16.msra.mxu1 %v9092_v63 }
0x1933   :  { %9112 = vmatprep.subr.bf16.mxu1 %v9111_v14 }
0x1a04   :  { %v8326_v50 = vpop.f32.mrb[50].mxu1 }
0x1a05   :  { %v4242_v10 = vpop.f32.mrb[51].mxu1 }
0x1a06   :  { %8331 = vmatprep.mubr.msk.f32.mxu1 %vm1146_vm8, %v4242_v10 }
0x1a07   :  { %8332 = vmatmul.mubr.msk.f32.vlgmr.msra.gmra.mrb[52].mxu1 %vm1146_vm8, %v8326_v50  ;;  %v4583_v50 = vpop.permute.xlu1 %4582 }
0x1a08   :  { %9114 = vmatpush3.bf16.msra.mxu1 %v9111_v14  ;;  %v7214_v14 = vld [vmem:[#allocation32] ss:$0 sm:$0xff] }
0x1a09   :  { %9116 = vmatprep.subr.bf16.mxu1 %v9115_v18 }
0x1a0c   :  { %9118 = vmatpush3.bf16.msra.mxu1 %v9115_v18 }
0x1a0d   :  { %9120 = vmatprep.subr.bf16.mxu1 %v9119_v21 }
0x1ada   :  { %v8333_v33 = vpop.f32.mrb[52].mxu1 }
0x1adb   :  { %v4333_v36 = vmul.f32 %v8333_v33, %v4016_v3  ;;  %v4323_v35 = vpop.f32.mrb[53].mxu1 }
0x1adc   :  { %v4332_v39 = vmul.f32 %v4323_v35, %v4015_v5  ;;  %v9123_v5 = vpack.c.bf16 %v4484_v59, %v4483_v56  ;;  %v5348_v56 = vld [vmem:[%s11869_s23 + $0x10] sm:$0xff]  ;;  %v5349_v59 = vld [vmem:[%s11869_s23 + $0x18] sm:$0xff] }
0x1add   :  { %v4341_v38 = vmul.f32 %v7212_v32, %v4333_v36 }
0x1ade   :  { %v4340_v9 = vmul.f32 %v7212_v32, %v4332_v39 }
0x1adf   :  { %v4349_v42 = vadd.f32 %v7213_v37, %v4341_v38 }
0x1ae0   :  { %v4348_v45 = vadd.f32 %v7213_v37, %v4340_v9 }
0x1ae1   :  { %v4351_v41 = vmax.f32 %v4349_v42, 0.0 }
0x1ae2   :  { %v4350_v31 = vmax.f32 %v4348_v45, 0.0 }
0x1ae3   :  { %v4361_v48 = vrot.slane %v4351_v41, 7  ;;  %v4569_v49 = vrot.slane %v4351_v41, 1  ;;  %v4479_v34 = vmul.f32 %v4476_v57, %v4351_v41  ;;  %v9236_v57 = vpack.c.bf16 %v5688_v54, %v5687_v16  ;;  %v7267_v54 = vld [vmem:[%s11869_s23 + $0xe0] sm:$0xff] }
0x1ae4   :  { %v4360_v51 = vrot.slane %v4350_v31, 7  ;;  %v4568_v46 = vrot.slane %v4350_v31, 1  ;;  %v4478_v58 = vmul.f32 %v4471_v4, %v4350_v31  ;;  %v5683_v4 = vld [vmem:[#allocation41] sm:$0xff] }
0x1ae6   :  { %v4363_v62 = vsel %vm2142_vm14, %v4361_v48, %v4360_v51  ;;  %v4362_v63 = vsel %vm2142_vm14, %v4360_v51, %v4361_v48  ;;  %v4570_v1 = vsel %vm1785_vm9, %v4568_v46, %v4569_v49  ;;  %v4571_v17 = vsel %vm1785_vm9, %v4569_v49, %v4568_v46  ;;  %v5346_v51 = vld [vmem:[%s11869_s23] sm:$0xff]  ;;  %v5347_v46 = vld [vmem:[%s11869_s23 + $0x8] sm:$0xff] }
0x1ae7   :  { %v4376_v2 = vmul.f32 %v4369_v47, %v4363_v62  ;;  %v4377_v3 = vmul.f32 %v4374_v60, %v4362_v63  ;;  %v4585_v8 = vmul.f32 %v4578_v7, %v4570_v1  ;;  %v4586_v10 = vmul.f32 %v4583_v50, %v4571_v17  ;;  %v5350_v62 = vld [vmem:[%s11869_s23 + $0x20] sm:$0xff]  ;;  %v5351_v63 = vld [vmem:[%s11869_s23 + $0x28] sm:$0xff]  ;;  %v5352_v17 = vld [vmem:[%s11869_s23 + $0x30] sm:$0xff] }
0x1ae8   :  { %v9185_v60 = vpack.c.bf16 %v5349_v59, %v5348_v56  ;;  %v9188_v1 = vpack.c.bf16 %v5351_v63, %v5350_v62  ;;  %v5689_v7 = vld [vmem:[#allocation41 + $0x30] sm:$0xff]  ;;  %v5692_v50 = vld [vmem:[#allocation41 + $0x48] sm:$0xff]  ;;  %v7257_v56 = vld [vmem:[%s11869_s23 + $0x98] sm:$0xff] }
0x1ae9   :  { %8342 = vmatprep.mubr.msk.f32.mxu1 %vm3694_vm0, %v4376_v2  ;;  %v5353_v2 = vld [vmem:[%s11869_s23 + $0x38] sm:$0xff]  ;;  %v7258_v62 = vld [vmem:[%s11869_s23 + $0xa0] sm:$0xff]  ;;  %v7259_v63 = vld [vmem:[%s11869_s23 + $0xa8] sm:$0xff] }
0x1aea   :  { %8343 = vmatmul.mubr.msk.f32.vlgmr.msra.gmra.mrb[54].mxu1 %vm3694_vm0, %v4377_v3  ;;  %v9191_v3 = vpack.c.bf16 %v5353_v2, %v5352_v17  ;;  %v7260_v17 = vld [vmem:[%s11869_s23 + $0xb0] sm:$0xff]  ;;  %v7261_v2 = vld [vmem:[%s11869_s23 + $0xb8] sm:$0xff] }
0x1aeb   :  { %9122 = vmatpush3.bf16.msra.mxu1 %v9119_v21  ;;  %8353 = vmatprep.mubr.msk.f32.mxu1 %vm3694_vm0, %v4478_v58  ;;  %v5685_v58 = vld [vmem:[#allocation41 + $0x10] sm:$0xff] }
0x1aec   :  { %9124 = vmatprep.subr.bf16.mxu1 %v9123_v5 }
0x1aef   :  { %9126 = vmatpush3.bf16.msra.mxu1 %v9123_v5  ;;  %v5684_v5 = vld [vmem:[#allocation41 + $0x8] sm:$0xff] }
0x1af0   :  { %9128 = vmatprep.subr.bf16.mxu1 %v9127_v11  ;;  %v9230_v19 = vpack.c.bf16 %v5684_v5, %v5683_v4  ;;  %v7263_v4 = vld [vmem:[%s11869_s23 + $0xc0] sm:$0xff]  ;;  %v7264_v5 = vld [vmem:[%s11869_s23 + $0xc8] sm:$0xff] }
0x1af2   :  { %8354 = vmatmul.mubr.msk.f32.vlgmr.msra.gmra.mrb[54].mxu1 %vm3694_vm0, %v4479_v34  ;;  %v5690_v34 = vld [vmem:[#allocation41 + $0x38] sm:$0xff] }
0x1af3   :  { %9130 = vmatpush3.bf16.msra.mxu1 %v9127_v11  ;;  %8364 = vmatprep.mubr.msk.f32.mxu1 %vm3694_vm0, %v4585_v8  ;;  %v9233_v11 = vpack.c.bf16 %v5686_v6, %v5685_v58  ;;  %v5691_v8 = vld [vmem:[#allocation41 + $0x40] sm:$0xff]  ;;  %v9218_v58 = vpack.c.bf16 %v7264_v5, %v7263_v4  ;;  %v5786_v4 = vld [vmem:[#allocation44 + $0x48] sm:$0xff] }
0x1af4   :  { %9132 = vmatprep.subr.bf16.mxu1 %v9131_v40  ;;  %v7266_v6 = vld [vmem:[%s11869_s23 + $0xd8] sm:$0xff] }
0x1af7   :  { %9134 = vmatpush3.bf16.msra.mxu1 %v9131_v40  ;;  %v9239_v40 = vpack.c.bf16 %v5690_v34, %v5689_v7  ;;  %v7269_v34 = vld [vmem:[%s11869_s23 + $0xf0] sm:$0xff] }
0x1af8   :  { %9151 = vmatprep.subr.bf16.mxu1 %v10444_v43 }
0x1afa   :  { %8365 = vmatmul.mubr.msk.f32.vlgmr.msra.gmra.mrb[54].mxu1 %vm3694_vm0, %v4586_v10  ;;  %v9242_v10 = vpack.c.bf16 %v5692_v50, %v5691_v8  ;;  %v5870_v50 = vld [vmem:[#allocation47] sm:$0xff] }
0x1afb   :  { %8390 = vmatprep.mubr.msk.f32.mxu1 %vm10445_vm5, %v10446_v44 }
0x1bcd   :  { %v8366_v15 = vpop.f32.mrb[54].mxu1 }
0x1bce   :  { %v4664_v18 = vpop.f32.mrb[55].mxu1  ;;  %v9375_v29 = vadd.f32 %v8366_v15, %v7214_v14  ;;  %v5696_v15 = vld [vmem:[#allocation41 + $0x68] sm:$0xff] }
0x1bcf   :  { %v9376_v20 = vadd.f32 %v7214_v14, %v4664_v18  ;;  %v5695_v14 = vld [vmem:[#allocation41 + $0x60] sm:$0xff] }
0x1bd0   :  { %v9248_v18 = vpack.c.bf16 %v5696_v15, %v5695_v14 }
0x1bd1   :  { %8383 = vmatprep.mubr.msk.f32.mxu0 %vm808_vm4, %v9376_v20 }
0x1bd2   :  { %8384 = vmatmul.mubr.msk.f32.vlgmr.msra.gmra.mrb[44].mxu0 %vm808_vm4, %v9375_v29 }
0x1bd3   :  { %9161 = vmatpush3.bf16.msra.mxu0 %v11474_v55  ;;  %v4684_v55 = vld [vmem:[#allocation37 + $0x8] sm:$0xff] }
0x1bd4   :  { %9163 = vmatprep.subr.bf16.mxu0 %v11477_v26  ;;  %v9154_v28 = vpack.c.bf16 %v4684_v55, %v4683_v23 }
0x1bd7   :  { %9165 = vmatpush3.bf16.msra.mxu0 %v11477_v26 }
0x1bd8   :  { %9167 = vmatprep.subr.bf16.mxu0 %v11484_v30 }
0x1bdb   :  { %9169 = vmatpush3.bf16.msra.mxu0 %v11484_v30 }
0x1bdc   :  { %9171 = vmatprep.subr.bf16.mxu0 %v9147_v13 }
0x1bdf   :  { %9173 = vmatpush3.bf16.msra.mxu0 %v9147_v13  ;;  %v9245_v13 = vpack.c.bf16 %v5694_v12, %v5693_v25  ;;  %v5872_v12 = vld [vmem:[#allocation47 + $0x10] sm:$0xff] }
0x1be0   :  { %9229 = vmatprep.subr.bf16.mxu0 %v10444_v43 }
0x1ca5   :  { %v8385_v21 = vpop.f32.mrb[44].mxu0 }
0x1ca6   :  { %v4759_v61 = vpop.f32.mrb[45].mxu0 }
0x1ca7   :  { %v9152_v22 = vpack.c.bf16 %v8385_v21, %v4759_v61  ;;  %v7241_v61 = vld [vmem:[#allocation34] ss:$0 sm:$0xff] }
0x1ca9   :  { %9153 = vmatpush3.bf16.msra.mxu1 %v9152_v22 }
0x1cac   :  { %8391 = vmatmul.mubr.msk.f32.vlgmr.msra.gmra.mrb[56].mxu1 %vm1146_vm8, %v11438_v52 }
0x1cad   :  { %8395 = vmatprep.mubr.msk.f32.mxu1 %vm1012_vm6, %v11443_v53 }
0x1d7f   :  { %v4834_v24 = vpop.f32.mrb[56].mxu1 }
0x1d80   :  { %v4838_v26 = vmul.f32 0.0625, %v4834_v24  ;;  %v8392_v27 = vpop.f32.mrb[57].mxu1  ;;  %v7242_v24 = vld [vmem:[#allocation35] ss:$0 sm:$0xff] }
0x1d82   :  { %8393 = vmatprep.subr.msk.mxu1 %vm1037_vm7, %v4838_v26 }
0x1d83   :  { %8394 = vmatpush3.msk.msra.mxu1 %vm1037_vm7, %v4838_v26 }
0x1d84   :  { %8396 = vmatmul.mubr.msk.f32.vlgmr.msra.gmra.mrb[58].mxu1 %vm1012_vm6, %v11448_v0  ;;  %9155 = vmatprep.subr.bf16.mxu1 %v9154_v28 }
0x1d85   :  { %9157 = vmatpush3.bf16.msra.mxu1 %v9154_v28 }
0x1d86   :  { %9174 = vmatprep.subr.bf16.mxu1 %v10444_v43 }
0x1e57   :  { %v8397_v30 = vpop.f32.mrb[58].mxu1 }
0x1e58   :  { %v4908_v32 = vpop.f32.mrb[59].mxu1 }
0x1e59   :  { %8402 = vmatprep.mubr.msk.f32.mxu1 %vm1146_vm8, %v4908_v32 }
0x1e5a   :  { %8403 = vmatmul.mubr.msk.f32.vlgmr.msra.gmra.mrb[60].mxu1 %vm1146_vm8, %v8397_v30 }
0x1e5b   :  { %8428 = vmatprep.mubr.msk.f32.mxu1 %vm10445_vm5, %v10446_v44 }
0x1f2d   :  { %v8404_v33 = vpop.f32.mrb[60].mxu1 }
0x1f2e   :  { %v11530_v36 = vsub.f32 %v9375_v29, %v8404_v33  ;;  %v4989_v35 = vpop.f32.mrb[61].mxu1  ;;  %v5698_v29 = vld [vmem:[#allocation41 + $0x78] sm:$0xff] }
0x1f2f   :  { %v11532_v37 = vsub.f32 %v9376_v20, %v4989_v35  ;;  %v5697_v20 = vld [vmem:[#allocation41 + $0x70] sm:$0xff] }
0x1f30   :  { %v5001_v38 = vmul.f32 %v11530_v36, %v11530_v36  ;;  %v9251_v21 = vpack.c.bf16 %v5698_v29, %v5697_v20  ;;  %v5875_v20 = vld [vmem:[#allocation47 + $0x28] sm:$0xff] }
0x1f31   :  { %v5000_v39 = vmul.f32 %v11532_v37, %v11532_v37 }
0x1f33   :  { %8421 = vmatprep.mubr.msk.f32.mxu0 %vm808_vm4, %v5000_v39  ;;  %v7246_v39 = vld [vmem:[%s11869_s23 + $0x48] sm:$0xff] }
0x1f34   :  { %8422 = vmatmul.mubr.msk.f32.vlgmr.msra.gmra.mrb[46].mxu0 %vm808_vm4, %v5001_v38 }
0x1f35   :  { %8551 = vmatprep.mubr.msk.f32.mxu0 %vm10445_vm5, %v10446_v44  ;;  %9231 = vmatpush3.bf16.msra.mxu0 %v9230_v19  ;;  %v7265_v19 = vld [vmem:[%s11869_s23 + $0xd0] sm:$0xff] }
0x1f36   :  { %9232 = vmatprep.subr.bf16.mxu0 %v10444_v43  ;;  %v9221_v16 = vpack.c.bf16 %v7266_v6, %v7265_v19  ;;  %v5788_v19 = vld [vmem:[#allocation44 + $0x58] sm:$0xff] }
0x1f39   :  { %9234 = vmatpush3.bf16.msra.mxu0 %v9233_v11 }
0x1f3a   :  { %9235 = vmatprep.subr.bf16.mxu0 %v10444_v43 }
0x1f3d   :  { %9237 = vmatpush3.bf16.msra.mxu0 %v9236_v57  ;;  %v7268_v57 = vld [vmem:[%s11869_s23 + $0xe8] sm:$0xff] }
0x1f3e   :  { %9238 = vmatprep.subr.bf16.mxu0 %v10444_v43  ;;  %v9224_v7 = vpack.c.bf16 %v7268_v57, %v7267_v54  ;;  %v5791_v57 = vld [vmem:[#allocation44 + $0x70] sm:$0xff] }
0x1f41   :  { %9240 = vmatpush3.bf16.msra.mxu0 %v9239_v40  ;;  %v7270_v40 = vld [vmem:[%s11869_s23 + $0xf8] sm:$0xff] }
0x1f42   :  { %9241 = vmatprep.subr.bf16.mxu0 %v10444_v43  ;;  %v9227_v8 = vpack.c.bf16 %v7270_v40, %v7269_v34 }
0x1f45   :  { %9243 = vmatpush3.bf16.msra.mxu0 %v9242_v10  ;;  %v5871_v10 = vld [vmem:[#allocation47 + $0x8] sm:$0xff] }
0x1f46   :  { %9244 = vmatprep.subr.bf16.mxu0 %v10444_v43  ;;  %v9278_v25 = vpack.c.bf16 %v5871_v10, %v5870_v50 }
0x1f49   :  { %9246 = vmatpush3.bf16.msra.mxu0 %v9245_v13  ;;  %v5873_v13 = vld [vmem:[#allocation47 + $0x18] sm:$0xff] }
0x1f4a   :  { %9247 = vmatprep.subr.bf16.mxu0 %v10444_v43  ;;  %v9281_v15 = vpack.c.bf16 %v5873_v13, %v5872_v12  ;;  %v7273_v12 = vld [vmem:[#allocation46] ss:$0 sm:$0xff] }
0x1f4d   :  { %9249 = vmatpush3.bf16.msra.mxu0 %v9248_v18  ;;  %v5874_v18 = vld [vmem:[#allocation47 + $0x20] sm:$0xff] }
0x1f4e   :  { %9250 = vmatprep.subr.bf16.mxu0 %v10444_v43  ;;  %v9284_v29 = vpack.c.bf16 %v5875_v20, %v5874_v18  ;;  %v7274_v20 = vld [vmem:[#allocation49] ss:$0 sm:$0xff] }
0x1f51   :  { %9252 = vmatpush3.bf16.msra.mxu0 %v9251_v21  ;;  %v5876_v21 = vld [vmem:[#allocation47 + $0x30] sm:$0xff] }
0x1f52   :  { %9253 = vmatprep.subr.bf16.mxu0 %v10444_v43 }
0x2007   :  { %v8423_v9 = vpop.f32.mrb[46].mxu0 }
0x2008   :  { %v5074_v42 = vpop.f32.mrb[47].mxu0 }
0x2009   :  { %v9175_v45 = vpack.c.bf16 %v8423_v9, %v5074_v42  ;;  %v7248_v9 = vld [vmem:[%s11869_s23 + $0x58] sm:$0xff] }
0x200b   :  { %9176 = vmatpush3.bf16.msra.mxu1 %v9175_v45 }
0x200e   :  { %8429 = vmatmul.mubr.msk.f32.vlgmr.msra.gmra.mrb[62].mxu1 %vm1146_vm8, %v11438_v52 }
0x200f   :  { %8433 = vmatprep.mubr.msk.f32.mxu1 %vm1012_vm6, %v11443_v53 }
0x20e1   :  { %v5149_v41 = vpop.f32.mrb[62].mxu1 }
0x20e2   :  { %v5153_v47 = vmul.f32 0.0625, %v5149_v41  ;;  %v8430_v31 = vpop.f32.mrb[63].mxu1  ;;  %v7249_v41 = vld [vmem:[%s11869_s23 + $0x60] sm:$0xff] }
0x20e4   :  { %v5154_v48 = vadd.f32 1e-05, %v5153_v47  ;;  %v7250_v47 = vld [vmem:[%s11869_s23 + $0x68] sm:$0xff] }
0x20e5   :  { %v9200_v31 = vpack.c.bf16 %v7250_v47, %v7249_v41  ;;  %v3586_v41 = vld [vmem:[#allocation2 + $0x3] ss:$4 sm:$0xf] }
0x20e6   :  { %9508 = vrsqrt.f32 %v5154_v48  ;;  %v7251_v48 = vld [vmem:[%s11869_s23 + $0x70] sm:$0xff] }
0x20f0   :  { %v9509_v49 = vpop.eup %9508 }
0x20f1   :  { %8431 = vmatprep.subr.msk.mxu1 %vm1037_vm7, %v9509_v49 }
0x20f2   :  { %8432 = vmatpush3.msk.msra.mxu1 %vm1037_vm7, %v9509_v49  ;;  %v7252_v49 = vld [vmem:[%s11869_s23 + $0x78] sm:$0xff] }
0x20f3   :  { %8434 = vmatmul.mubr.msk.f32.vlgmr.msra.gmra.mrb[64].mxu1 %vm1012_vm6, %v11448_v0  ;;  %9178 = vmatprep.subr.bf16.mxu1 %v9154_v28  ;;  %v9182_v0 = vpack.c.bf16 %v5347_v46, %v5346_v51  ;;  %v7255_v51 = vld [vmem:[%s11869_s23 + $0x88] sm:$0xff] }
0x20f4   :  { %9180 = vmatpush3.bf16.msra.mxu1 %v9154_v28 }
0x20f5   :  { %9181 = vmatprep.subr.bf16.mxu1 %v10444_v43 }
0x21c6   :  { %v8435_v52 = vpop.f32.mrb[64].mxu1 }
0x21c7   :  { %v5225_v53 = vpop.f32.mrb[65].mxu1 }
0x21c8   :  { %8440 = vmatprep.mubr.msk.f32.mxu1 %vm1146_vm8, %v5225_v53  ;;  %v7254_v53 = vld [vmem:[%s11869_s23 + $0x80] sm:$0xff] }
0x21c9   :  { %8441 = vmatmul.mubr.msk.f32.vlgmr.msra.gmra.mrb[66].mxu1 %vm1146_vm8, %v8435_v52  ;;  %v9203_v52 = vpack.c.bf16 %v7252_v49, %v7251_v48  ;;  %v9206_v46 = vpack.c.bf16 %v7255_v51, %v7254_v53  ;;  %v5778_v48 = vld [vmem:[#allocation44 + $0x8] sm:$0xff]  ;;  %v7243_v49 = vld [vmem:[#allocation40] ss:$0 sm:$0xff]  ;;  %vm6474_vm8 = vcmask 781824  }
0x21ca   :  { %8459 = vmatprep.mubr.msk.f32.mxu1 %vm10445_vm5, %v10446_v44  ;;  %9183 = vmatpush3.bf16.msra.mxu1 %v9182_v0  ;;  %v7256_v0 = vld [vmem:[%s11869_s23 + $0x90] sm:$0xff] }
0x21cb   :  { %9184 = vmatprep.subr.bf16.mxu1 %v10444_v43 }
0x21ce   :  { %9186 = vmatpush3.bf16.msra.mxu1 %v9185_v60  ;;  %v9209_v60 = vpack.c.bf16 %v7257_v56, %v7256_v0  ;;  %v5779_v0 = vld [vmem:[#allocation44 + $0x10] sm:$0xff]  ;;  %v5780_v56 = vld [vmem:[#allocation44 + $0x18] sm:$0xff] }
0x21cf   :  { %9187 = vmatprep.subr.bf16.mxu1 %v10444_v43 }
0x21d2   :  { %9189 = vmatpush3.bf16.msra.mxu1 %v9188_v1  ;;  %v9212_v1 = vpack.c.bf16 %v7259_v63, %v7258_v62  ;;  %v5782_v62 = vld [vmem:[#allocation44 + $0x28] sm:$0xff] }
0x21d3   :  { %9190 = vmatprep.subr.bf16.mxu1 %v10444_v43 }
0x21d6   :  { %9192 = vmatpush3.bf16.msra.mxu1 %v9191_v3  ;;  %v9215_v3 = vpack.c.bf16 %v7261_v2, %v7260_v17  ;;  %v5784_v17 = vld [vmem:[#allocation44 + $0x38] sm:$0xff] }
0x21d7   :  { %9193 = vmatprep.subr.bf16.mxu1 %v10444_v43 }
0x229c   :  { %v8442_v22 = vpop.f32.mrb[66].mxu1 }
0x229d   :  { %v5316_v23 = vmul.f32 %v8442_v22, %v11530_v36  ;;  %v5306_v55 = vpop.f32.mrb[67].mxu1  ;;  %v7245_v36 = vld [vmem:[%s11869_s23 + $0x40] sm:$0xff] }
0x229e   :  { %v5315_v26 = vmul.f32 %v5306_v55, %v11532_v37  ;;  %v9194_v38 = vpack.c.bf16 %v7246_v39, %v7245_v36  ;;  %v7247_v37 = vld [vmem:[%s11869_s23 + $0x50] sm:$0xff]  ;;  %v5879_v55 = vld [vmem:[#allocation47 + $0x48] sm:$0xff] }
0x229f   :  { %v5324_v27 = vmul.f32 %v7241_v61, %v5316_v23  ;;  %v9197_v45 = vpack.c.bf16 %v7248_v9, %v7247_v37  ;;  %v5878_v23 = vld [vmem:[#allocation47 + $0x40] sm:$0xff]  ;;  %v5884_v39 = vld [vmem:[#allocation47 + $0x70] sm:$0xff] }
0x22a0   :  { %v5323_v28 = vmul.f32 %v7241_v61, %v5315_v26  ;;  %v5877_v61 = vld [vmem:[#allocation47 + $0x38] sm:$0xff]  ;;  %v5880_v26 = vld [vmem:[#allocation47 + $0x50] sm:$0xff] }
0x22a1   :  { %v5332_v30 = vadd.f32 %v7242_v24, %v5324_v27  ;;  %v9287_v22 = vpack.c.bf16 %v5877_v61, %v5876_v21  ;;  %v5881_v27 = vld [vmem:[#allocation47 + $0x58] sm:$0xff]  ;;  %v5963_v61 = vld [vmem:[#allocation50] sm:$0xf] }
0x22a2   :  { %v5331_v32 = vadd.f32 %v7242_v24, %v5323_v28  ;;  %v9290_v24 = vpack.c.bf16 %v5879_v55, %v5878_v23  ;;  %v9293_v28 = vpack.c.bf16 %v5881_v27, %v5880_v26 }
0x22a3   :  { %v5334_v33 = vmax.f32 %v5332_v30, 0.0  ;;  %v5882_v30 = vld [vmem:[#allocation47 + $0x60] sm:$0xff] }
0x22a4   :  { %v5333_v35 = vmax.f32 %v5331_v32, 0.0  ;;  %v5883_v32 = vld [vmem:[#allocation47 + $0x68] sm:$0xff] }
0x22a5   :  { %5336 = vst.msk [vmem:[#allocation3 + $0x8] sm:$0xff] %vm808_vm4, %v5334_v33  ;;  %v3578_v33 = vld [vmem:[#allocation2] ss:$4 sm:$0xf]  ;;  %v9296_v36 = vpack.c.bf16 %v5883_v32, %v5882_v30 }
0x22a6   :  { %5335 = vst.msk [vmem:[#allocation3] sm:$0xff] %vm808_vm4, %v5333_v35  ;;  %v3580_v35 = vld [vmem:[#allocation2 + $0x1] ss:$4 sm:$0xf] }
0x22a7   :  { %v3581_v37 = vmax.f32 %v3578_v33, %v3580_v35 }
0x22ad   :  { %v5345_v42 = vld [vmem:[#allocation3] ss:$4 sm:$0xf]  ;;  %v5429_v59 = vld [vmem:[#allocation3 + $0x1] ss:$4 sm:$0xf] }
0x22ae   :  { %8460 = vmatmul.mubr.msk.f32.vlgmr.msra.gmra.mrb[68].mxu1 %vm808_vm4, %v5345_v42  ;;  %v5514_v11 = vld [vmem:[#allocation3 + $0x2] ss:$4 sm:$0xf]  ;;  %v5599_v14 = vld [vmem:[#allocation3 + $0x3] ss:$4 sm:$0xf] }
0x22af   :  { %9195 = vmatpush3.bf16.msra.mxu1 %v9194_v38  ;;  %8478 = vmatprep.mubr.msk.f32.mxu1 %vm10445_vm5, %v10446_v44  ;;  %v5885_v38 = vld [vmem:[#allocation47 + $0x78] sm:$0xff]  ;;  %v3583_v42 = vld [vmem:[#allocation2 + $0x2] ss:$4 sm:$0xf] }
0x22b0   :  { %9196 = vmatprep.subr.bf16.mxu1 %v10444_v43  ;;  %v9299_v9 = vpack.c.bf16 %v5885_v38, %v5884_v39 }
0x22b3   :  { %9198 = vmatpush3.bf16.msra.mxu1 %v9197_v45  ;;  %v3584_v45 = vmax.f32 %v3581_v37, %v3583_v42  ;;  %v6130_v42 = vld [vmem:[#allocation50] sm:$0xf] }
0x22b4   :  { %9199 = vmatprep.subr.bf16.mxu1 %v10444_v43 }
0x22b5   :  { %v3587_v47 = vmax.f32 %v3584_v45, %v3586_v41 }
0x22b7   :  { %9201 = vmatpush3.bf16.msra.mxu1 %v9200_v31  ;;  %v5777_v31 = vld [vmem:[#allocation44] sm:$0xff] }
0x22b8   :  { %9202 = vmatprep.subr.bf16.mxu1 %v10444_v43  ;;  %v9254_v53 = vpack.c.bf16 %v5778_v48, %v5777_v31 }
0x22bb   :  { %9204 = vmatpush3.bf16.msra.mxu1 %v9203_v52 }
0x22bc   :  { %9205 = vmatprep.subr.bf16.mxu1 %v10444_v43 }
0x22be   :  { %8479 = vmatmul.mubr.msk.f32.vlgmr.msra.gmra.mrb[68].mxu1 %vm808_vm4, %v5429_v59  ;;  %v9257_v59 = vpack.c.bf16 %v5780_v56, %v5779_v0 }
0x22bf   :  { %9207 = vmatpush3.bf16.msra.mxu1 %v9206_v46  ;;  %8497 = vmatprep.mubr.msk.f32.mxu1 %vm10445_vm5, %v10446_v44 }
0x22c0   :  { %9208 = vmatprep.subr.bf16.mxu1 %v10444_v43 }
0x22c3   :  { %9210 = vmatpush3.bf16.msra.mxu1 %v9209_v60  ;;  %v5781_v60 = vld [vmem:[#allocation44 + $0x20] sm:$0xff] }
0x22c4   :  { %9211 = vmatprep.subr.bf16.mxu1 %v10444_v43  ;;  %v9260_v63 = vpack.c.bf16 %v5782_v62, %v5781_v60 }
0x22c7   :  { %9213 = vmatpush3.bf16.msra.mxu1 %v9212_v1  ;;  %v5783_v1 = vld [vmem:[#allocation44 + $0x30] sm:$0xff] }
0x22c8   :  { %9214 = vmatprep.subr.bf16.mxu1 %v10444_v43  ;;  %v9263_v2 = vpack.c.bf16 %v5784_v17, %v5783_v1  ;;  %v6303_v17 = vld [vmem:[#allocation50] sm:$0xf] }
0x22cb   :  { %9216 = vmatpush3.bf16.msra.mxu1 %v9215_v3  ;;  %v5785_v3 = vld [vmem:[#allocation44 + $0x40] sm:$0xff] }
0x22cc   :  { %9217 = vmatprep.subr.bf16.mxu1 %v10444_v43  ;;  %v9266_v5 = vpack.c.bf16 %v5786_v4, %v5785_v3 }
0x22ce   :  { %8498 = vmatmul.mubr.msk.f32.vlgmr.msra.gmra.mrb[68].mxu1 %vm808_vm4, %v5514_v11  ;;  %v5789_v11 = vld [vmem:[#allocation44 + $0x60] sm:$0xff] }
0x22cf   :  { %9219 = vmatpush3.bf16.msra.mxu1 %v9218_v58  ;;  %8516 = vmatprep.mubr.msk.f32.mxu1 %vm10445_vm5, %v10446_v44  ;;  %v5787_v58 = vld [vmem:[#allocation44 + $0x50] sm:$0xff] }
0x22d0   :  { %9220 = vmatprep.subr.bf16.mxu1 %v10444_v43  ;;  %v9269_v6 = vpack.c.bf16 %v5788_v19, %v5787_v58 }
0x22d3   :  { %9222 = vmatpush3.bf16.msra.mxu1 %v9221_v16  ;;  %v5790_v16 = vld [vmem:[#allocation44 + $0x68] sm:$0xff] }
0x22d4   :  { %9223 = vmatprep.subr.bf16.mxu1 %v10444_v43  ;;  %v9272_v54 = vpack.c.bf16 %v5790_v16, %v5789_v11 }
0x22d7   :  { %9225 = vmatpush3.bf16.msra.mxu1 %v9224_v7  ;;  %v5792_v7 = vld [vmem:[#allocation44 + $0x78] sm:$0xff] }
0x22d8   :  { %9226 = vmatprep.subr.bf16.mxu1 %v10444_v43  ;;  %v9275_v34 = vpack.c.bf16 %v5792_v7, %v5791_v57 }
0x22db   :  { %9228 = vmatpush3.bf16.msra.mxu1 %v9227_v8 }
0x22dc   :  { %9277 = vmatprep.subr.bf16.mxu1 %v10444_v43 }
0x22de   :  { %8517 = vmatmul.mubr.msk.f32.vlgmr.msra.gmra.mrb[68].mxu1 %vm808_vm4, %v5599_v14  ;;  %vm6301_vm4 = vcmask 519424  }
0x22df   :  { %9279 = vmatpush3.bf16.msra.mxu1 %v9278_v25  ;;  %8621 = vmatprep.mubr.msk.f32.mxu1 %vm10445_vm5, %v10446_v44  ;;  %v7272_v25 = vld [vmem:[#allocation43] ss:$0 sm:$0xff] }
0x22e0   :  { %9280 = vmatprep.subr.bf16.mxu1 %v10444_v43 }
0x22e3   :  { %9282 = vmatpush3.bf16.msra.mxu1 %v9281_v15 }
0x22e4   :  { %9283 = vmatprep.subr.bf16.mxu1 %v10444_v43 }
0x22e7   :  { %9285 = vmatpush3.bf16.msra.mxu1 %v9284_v29 }
0x22e8   :  { %9286 = vmatprep.subr.bf16.mxu1 %v10444_v43 }
0x22eb   :  { %9288 = vmatpush3.bf16.msra.mxu1 %v9287_v22 }
0x22ec   :  { %9289 = vmatprep.subr.bf16.mxu1 %v10444_v43 }
0x22ef   :  { %9291 = vmatpush3.bf16.msra.mxu1 %v9290_v24 }
0x22f0   :  { %9292 = vmatprep.subr.bf16.mxu1 %v10444_v43 }
0x22f3   :  { %9294 = vmatpush3.bf16.msra.mxu1 %v9293_v28 }
0x22f4   :  { %9295 = vmatprep.subr.bf16.mxu1 %v10444_v43 }
0x22f7   :  { %9297 = vmatpush3.bf16.msra.mxu1 %v9296_v36 }
0x22f8   :  { %9298 = vmatprep.subr.bf16.mxu1 %v10444_v43 }
0x22fb   :  { %9300 = vmatpush3.bf16.msra.mxu1 %v9299_v9 }
0x22fc   :  { %9301 = vmatprep.subr.bf16.mxu1 %v10444_v43 }
0x22fe   :  { %8622 = vmatmul.mubr.f32.vlgmr.msra.gmra.mrb[70].mxu1 %v3587_v47 }
0x22ff   :  { %8696 = vmatprep.mubr.msk.f32.mxu1 %vm10445_vm5, %v10446_v44 }
0x23b1   :  { %v5678_v52 = vpop.f32.mrb[68].mxu1 }
0x23b2   :  { %v9377_v51 = vadd.f32 %v7243_v49, %v5678_v52  ;;  %v8518_v46 = vpop.f32.mrb[69].mxu1 }
0x23b4   :  { %8552 = vmatmul.mubr.f32.vlgmr.msra.gmra.mrb[48].mxu0 %v9377_v51 }
0x23b5   :  { %9255 = vmatpush3.bf16.msra.mxu0 %v9254_v53  ;;  %8586 = vmatprep.mubr.msk.f32.mxu0 %vm10445_vm5, %v10446_v44 }
0x23b6   :  { %9256 = vmatprep.subr.bf16.mxu0 %v10444_v43 }
0x23b9   :  { %9258 = vmatpush3.bf16.msra.mxu0 %v9257_v59 }
0x23ba   :  { %9259 = vmatprep.subr.bf16.mxu0 %v10444_v43 }
0x23bd   :  { %9261 = vmatpush3.bf16.msra.mxu0 %v9260_v63 }
0x23be   :  { %9262 = vmatprep.subr.bf16.mxu0 %v10444_v43 }
0x23c1   :  { %9264 = vmatpush3.bf16.msra.mxu0 %v9263_v2 }
0x23c2   :  { %9265 = vmatprep.subr.bf16.mxu0 %v10444_v43 }
0x23c5   :  { %9267 = vmatpush3.bf16.msra.mxu0 %v9266_v5 }
0x23c6   :  { %9268 = vmatprep.subr.bf16.mxu0 %v10444_v43 }
0x23c9   :  { %9270 = vmatpush3.bf16.msra.mxu0 %v9269_v6 }
0x23ca   :  { %9271 = vmatprep.subr.bf16.mxu0 %v10444_v43 }
0x23cd   :  { %9273 = vmatpush3.bf16.msra.mxu0 %v9272_v54 }
0x23ce   :  { %9274 = vmatprep.subr.bf16.mxu0 %v10444_v43 }
0x23d1   :  { %9276 = vmatpush3.bf16.msra.mxu0 %v9275_v34  ;;  %v5959_v40 = vpop.f32.mrb[70].mxu1 }
0x23d2   :  { %v8623_v8 = vpop.f32.mrb[71].mxu1  ;;  %8624 = vmatprep.subr.mxu0 %v10446_v44  ;;  %v11656_v21 = vadd.f32 %v7274_v20, %v5959_v40 }
0x23d4   :  { %8587 = vmatmul.mubr.f32.vlgmr.msra.gmra.mrb[50].mxu0 %v3587_v47 }
0x23d5   :  { %8626 = vmatprep.mubr.msk.f32.mxu0 %vm10445_vm5, %v10446_v44 }
0x2487   :  { %v5772_v50 = vpop.f32.mrb[48].mxu0 }
0x2488   :  { %v8553_v10 = vpop.f32.mrb[49].mxu0  ;;  %v5773_v13 = vadd.f32 %v7272_v25, %v5772_v50  ;;  %v6476_v25 = vld [vmem:[#allocation50] sm:$0xf] }
0x248a   :  { %v11653_v29 = vmul.f32 0.17677669, %v5773_v13 }
0x24a7   :  { %v5866_v14 = vpop.f32.mrb[50].mxu0 }
0x24a8   :  { %v11649_v15 = vadd.f32 %v7273_v12, %v5866_v14  ;;  %v8588_v18 = vpop.f32.mrb[51].mxu0 }
0x24aa   :  { %8625 = vmatpush3.xpose.msk.msra.mxu0 %vm3694_vm0, %v11649_v15 }
0x24ab   :  { %8629 = vmatprep.subr.mxu0 %v10446_v44 }
0x24ad   :  { %8627 = vmatmul.mubr.msk.f32.vlgmr.msra.gmra.mrb[52].mxu0 %vm3694_vm0, %v11653_v29 }
0x24ae   :  { %8630 = vmatpush3.msk.msra.mxu0 %vm1037_vm7, %v11656_v21  ;;  %8631 = vmatprep.mubr.msk.f32.mxu0 %vm10445_vm5, %v10446_v44 }
0x24af   :  { %8634 = vmatprep.subr.mxu0 %v10446_v44 }
0x2580   :  { %v6036_v22 = vpop.f32.mrb[52].mxu0 }
0x2581   :  { %v6037_v23 = vadd.f32 %v6036_v22, %v5963_v61  ;;  %v8628_v55 = vpop.f32.mrb[53].mxu0 }
0x2583   :  { %v6041_v24 = vsel %vm6040_vm2, %v6037_v23, -inf }
0x2584   :  { %6042 = vmax.xlane.f32.xlu0 %v6041_v24 }
0x259a   :  { %6133 = vrot.lane.b32.xlu0 %v11649_v15, %s10448_s21 }
0x2611   :  { %v6043_v26 = vpop.xlane.xlu0 %6042 }
0x2612   :  { %v6044_v27 = vsub.f32 %v6037_v23, %v6043_v26 }
0x2614   :  { %v6045_v28 = vmul.f32 1.442695, %v6044_v27 }
0x2615   :  { %v6134_v39 = vpop.permute.xlu0 %6133 }
0x2616   :  { %9510 = vpow2.f32 %v6045_v28  ;;  %v6650_v28 = vld [vmem:[#allocation52] sm:$0xff] }
0x2620   :  { %v9511_v30 = vpop.eup %9510 }
0x2621   :  { %v6047_v32 = vsel %vm6040_vm2, %v9511_v30, 0.0 }
0x2622   :  { %6048 = vadd.xlane.f32.xlu1 %v6047_v32  ;;  %v6652_v32 = vld [vmem:[#allocation52 + $0x10] sm:$0xff] }
0x2633   :  { %6131 = vrot.lane.b32.xlu1 %v11653_v29, %s10448_s21 }
0x26af   :  { %v6049_v33 = vpop.xlane.xlu1 %6048 }
0x26b0   :  { %9512 = vrcp.f32 %v6049_v33 }
0x26b3   :  { %v6132_v38 = vpop.permute.xlu1 %6131 }
0x26ba   :  { %v9513_v35 = vpop.eup %9512 }
0x26bb   :  { %v6051_v36 = vmul.f32 %v9513_v35, %v9511_v30  ;;  %v6651_v30 = vld [vmem:[#allocation52 + $0x8] sm:$0xff]  ;;  %v6653_v35 = vld [vmem:[#allocation52 + $0x18] sm:$0xff] }
0x26bc   :  { %v9302_v33 = vpack.c.bf16 %v6651_v30, %v6650_v28  ;;  %v6845_v30 = vld [vmem:[%s10700_s4 + $0x40] sm:$0xff] }
0x26bd   :  { %8632 = vmatmul.mubr.msk.f32.vlgmr.msra.gmra.mrb[54].mxu0 %vm1012_vm6, %v6051_v36  ;;  %v9305_v36 = vpack.c.bf16 %v6653_v35, %v6652_v32  ;;  %v6846_v32 = vld [vmem:[%s10700_s4 + $0x48] sm:$0xff]  ;;  %v6847_v35 = vld [vmem:[%s10700_s4 + $0x50] sm:$0xff] }
0x26be   :  { %8635 = vmatpush3.xpose.msk.msra.mxu0 %vm3694_vm0, %v6134_v39  ;;  %8636 = vmatprep.mubr.msk.f32.mxu0 %vm10445_vm5, %v10446_v44  ;;  %v6654_v39 = vld [vmem:[#allocation52 + $0x20] sm:$0xff] }
0x26bf   :  { %8639 = vmatprep.subr.mxu0 %v10446_v44  ;;  %9303 = vmatpush3.bf16.msra.mxu1 %v9302_v33  ;;  %v9362_v33 = vpack.c.bf16 %v6846_v32, %v6845_v30 }
0x26c0   :  { %9304 = vmatprep.subr.bf16.mxu1 %v10444_v43 }
0x26c1   :  { %8637 = vmatmul.mubr.msk.f32.vlgmr.msra.gmra.mrb[56].mxu0 %vm3694_vm0, %v6132_v38  ;;  %v6655_v38 = vld [vmem:[#allocation52 + $0x28] sm:$0xff] }
0x26c2   :  { %8641 = vmatprep.mubr.msk.f32.mxu0 %vm10445_vm5, %v10446_v44 }
0x26c3   :  { %9306 = vmatpush3.bf16.msra.mxu1 %v9305_v36  ;;  %v6848_v36 = vld [vmem:[%s10700_s4 + $0x58] sm:$0xff] }
0x26c4   :  { %9307 = vmatprep.subr.bf16.mxu1 %v10444_v43 }
0x2790   :  { %v6124_v37 = vpop.f32.mrb[54].mxu0 }
0x2791   :  { %6129 = vst.msk [vmem:[#allocation4] sm:$0xf] %vm6128_vm3, %v6124_v37  ;;  %v8633_v9 = vpop.f32.mrb[55].mxu0  ;;  %v9308_v37 = vpack.c.bf16 %v6655_v38, %v6654_v39  ;;  %v9365_v39 = vpack.c.bf16 %v6848_v36, %v6847_v35  ;;  %v6849_v38 = vld [vmem:[%s10700_s4 + $0x60] sm:$0xff] }
0x2792   :  { %v6656_v9 = vld [vmem:[#allocation52 + $0x30] sm:$0xff] }
0x2793   :  { %9309 = vmatpush3.bf16.msra.mxu1 %v9308_v37  ;;  %v6850_v37 = vld [vmem:[%s10700_s4 + $0x68] sm:$0xff] }
0x2794   :  { %v6205_v45 = vpop.f32.mrb[56].mxu0  ;;  %9310 = vmatprep.subr.bf16.mxu1 %v10444_v43 }
0x2795   :  { %v6206_v41 = vadd.f32 %v6205_v45, %v6130_v42  ;;  %v8638_v47 = vpop.f32.mrb[57].mxu0  ;;  %v6657_v42 = vld [vmem:[#allocation52 + $0x38] sm:$0xff] }
0x2796   :  { %v9311_v45 = vpack.c.bf16 %v6657_v42, %v6656_v9  ;;  %v6659_v47 = vld [vmem:[#allocation52 + $0x48] sm:$0xff]  ;;  %v9368_v9 = vpack.c.bf16 %v6850_v37, %v6849_v38  ;;  %v7291_v42 = vld [vmem:[#allocation53] ss:$0 sm:$0xff] }
0x2797   :  { %v6209_v31 = vsel %vm6040_vm2, %v6206_v41, -inf }
0x2798   :  { %6210 = vmax.xlane.f32.xlu0 %v6209_v31  ;;  %9312 = vmatpush3.bf16.msra.mxu1 %v9311_v45 }
0x2799   :  { %9313 = vmatprep.subr.bf16.mxu1 %v10444_v43 }
0x27ae   :  { %6220 = vrot.lane.b32.xlu0 %v11656_v21, %s10448_s21 }
0x27b2   :  { %6304 = vrot.lane.b32.xlu0 %v11653_v29, %s10449_s26 }
0x2825   :  { %v6211_v48 = vpop.xlane.xlu0 %6210 }
0x2826   :  { %v6212_v49 = vsub.f32 %v6206_v41, %v6211_v48  ;;  %v6658_v41 = vld [vmem:[#allocation52 + $0x40] sm:$0xff]  ;;  %v6660_v48 = vld [vmem:[#allocation52 + $0x50] sm:$0xff] }
0x2827   :  { %v9314_v31 = vpack.c.bf16 %v6659_v47, %v6658_v41 }
0x2828   :  { %v6213_v52 = vmul.f32 1.442695, %v6212_v49  ;;  %v6661_v49 = vld [vmem:[#allocation52 + $0x58] sm:$0xff] }
0x2829   :  { %v6221_v53 = vpop.permute.xlu0 %6220  ;;  %9315 = vmatpush3.bf16.msra.mxu1 %v9314_v31  ;;  %v6851_v31 = vld [vmem:[%s10700_s4 + $0x70] sm:$0xff] }
0x282a   :  { %9514 = vpow2.f32 %v6213_v52  ;;  %8640 = vmatpush3.msk.msra.mxu0 %vm1037_vm7, %v6221_v53  ;;  %v9317_v52 = vpack.c.bf16 %v6661_v49, %v6660_v48  ;;  %9316 = vmatprep.subr.bf16.mxu1 %v10444_v43  ;;  %v6662_v53 = vld [vmem:[#allocation52 + $0x60] sm:$0xff]  ;;  %v6852_v48 = vld [vmem:[%s10700_s4 + $0x78] sm:$0xff] }
0x282b   :  { %8644 = vmatprep.subr.mxu0 %v10446_v44  ;;  %v9371_v49 = vpack.c.bf16 %v6852_v48, %v6851_v31 }
0x282d   :  { %v6305_v62 = vpop.permute.xlu0 %6304  ;;  %9318 = vmatpush3.bf16.msra.mxu1 %v9317_v52  ;;  %v7292_v52 = vld [vmem:[#allocation56] ss:$0 sm:$0xff] }
0x282e   :  { %9319 = vmatprep.subr.bf16.mxu1 %v10444_v43 }
0x2834   :  { %v9515_v51 = vpop.eup %9514 }
0x2835   :  { %v6215_v46 = vsel %vm6040_vm2, %v9515_v51, 0.0 }
0x2836   :  { %6216 = vadd.xlane.f32.xlu1 %v6215_v46  ;;  %v6664_v46 = vld [vmem:[#allocation52 + $0x70] sm:$0xff] }
0x2847   :  { %6306 = vrot.lane.b32.xlu1 %v11649_v15, %s10449_s26 }
0x28c3   :  { %v6217_v0 = vpop.xlane.xlu1 %6216 }
0x28c4   :  { %9516 = vrcp.f32 %v6217_v0 }
0x28c7   :  { %v6307_v60 = vpop.permute.xlu1 %6306 }
0x28ce   :  { %v9517_v56 = vpop.eup %9516 }
0x28cf   :  { %v6219_v59 = vmul.f32 %v9517_v56, %v9515_v51  ;;  %v6663_v51 = vld [vmem:[#allocation52 + $0x68] sm:$0xff]  ;;  %v6665_v56 = vld [vmem:[#allocation52 + $0x78] sm:$0xff] }
0x28d0   :  { %v9320_v0 = vpack.c.bf16 %v6663_v51, %v6662_v53 }
0x28d1   :  { %8642 = vmatmul.mubr.msk.f32.vlgmr.msra.gmra.mrb[58].mxu0 %vm1012_vm6, %v6219_v59  ;;  %v9323_v59 = vpack.c.bf16 %v6665_v56, %v6664_v46  ;;  %v7293_v56 = vld [vmem:[#allocation58] ss:$0 sm:$0xff] }
0x28d2   :  { %8645 = vmatpush3.xpose.msk.msra.mxu0 %vm3694_vm0, %v6307_v60  ;;  %8646 = vmatprep.mubr.msk.f32.mxu0 %vm10445_vm5, %v10446_v44  ;;  %v6743_v60 = vld [vmem:[#allocation55] sm:$0xff] }
0x28d3   :  { %8649 = vmatprep.subr.mxu0 %v10446_v44  ;;  %9321 = vmatpush3.bf16.msra.mxu1 %v9320_v0 }
0x28d4   :  { %9322 = vmatprep.subr.bf16.mxu1 %v10444_v43 }
0x28d5   :  { %8647 = vmatmul.mubr.msk.f32.vlgmr.msra.gmra.mrb[60].mxu0 %vm3694_vm0, %v6305_v62  ;;  %v6744_v62 = vld [vmem:[#allocation55 + $0x8] sm:$0xff] }
0x28d6   :  { %8651 = vmatprep.mubr.msk.f32.mxu0 %vm10445_vm5, %v10446_v44 }
0x28d7   :  { %9324 = vmatpush3.bf16.msra.mxu1 %v9323_v59 }
0x28d8   :  { %9349 = vmatprep.subr.bf16.mxu1 %v10444_v43 }
0x29a4   :  { %v6293_v63 = vpop.f32.mrb[58].mxu0 }
0x29a5   :  { %v8643_v1 = vpop.f32.mrb[59].mxu0 }
0x29a6   :  { %v9326_v1 = vpack.c.bf16 %v6744_v62, %v6743_v60 }
0x29a8   :  { %v6378_v2 = vpop.f32.mrb[60].mxu0 }
0x29a9   :  { %v6379_v3 = vadd.f32 %v6378_v2, %v6303_v17  ;;  %v8648_v4 = vpop.f32.mrb[61].mxu0  ;;  %v6746_v17 = vld [vmem:[#allocation55 + $0x18] sm:$0xff] }
0x29aa   :  { %v6747_v4 = vld [vmem:[#allocation55 + $0x20] sm:$0xff] }
0x29ab   :  { %v6382_v5 = vsel %vm6040_vm2, %v6379_v3, -inf }
0x29ac   :  { %6383 = vmax.xlane.f32.xlu1 %v6382_v5  ;;  %v6748_v5 = vld [vmem:[#allocation55 + $0x28] sm:$0xff] }
0x29bd   :  { %6479 = vrot.lane.b32.xlu1 %v11649_v15, %s10450_s19 }
0x29c1   :  { %6477 = vrot.lane.b32.xlu1 %v11653_v29, %s10450_s19 }
0x2a39   :  { %v6384_v58 = vpop.xlane.xlu1 %6383 }
0x2a3a   :  { %v6385_v19 = vsub.f32 %v6379_v3, %v6384_v58 }
0x2a3c   :  { %v6386_v6 = vmul.f32 1.442695, %v6385_v19  ;;  %v9332_v19 = vpack.c.bf16 %v6748_v5, %v6747_v4 }
0x2a3d   :  { %v6480_v34 = vpop.permute.xlu1 %6479 }
0x2a3e   :  { %9518 = vpow2.f32 %v6386_v6  ;;  %v6749_v6 = vld [vmem:[#allocation55 + $0x30] sm:$0xff] }
0x2a41   :  { %v6478_v8 = vpop.permute.xlu1 %6477 }
0x2a48   :  { %v9519_v11 = vpop.eup %9518 }
0x2a49   :  { %v6388_v16 = vsel %vm6040_vm2, %v9519_v11, 0.0 }
0x2a4a   :  { %6389 = vadd.xlane.f32.xlu0 %v6388_v16 }
0x2a60   :  { %6393 = vrot.lane.b32.xlu0 %v11656_v21, %s10449_s26 }
0x2ad7   :  { %v6390_v54 = vpop.xlane.xlu0 %6389 }
0x2ad8   :  { %9520 = vrcp.f32 %v6390_v54  ;;  %v6751_v54 = vld [vmem:[#allocation55 + $0x40] sm:$0xff] }
0x2adb   :  { %v6394_v57 = vpop.permute.xlu0 %6393 }
0x2adc   :  { %8650 = vmatpush3.msk.msra.mxu0 %vm1037_vm7, %v6394_v57  ;;  %v6752_v57 = vld [vmem:[#allocation55 + $0x48] sm:$0xff] }
0x2add   :  { %8654 = vmatprep.subr.mxu0 %v10446_v44 }
0x2ae2   :  { %v9521_v7 = vpop.eup %9520 }
0x2ae3   :  { %v6392_v40 = vmul.f32 %v9521_v7, %v9519_v11  ;;  %v6750_v11 = vld [vmem:[#allocation55 + $0x38] sm:$0xff]  ;;  %v9338_v7 = vpack.c.bf16 %v6752_v57, %v6751_v54 }
0x2ae4   :  { %v9335_v16 = vpack.c.bf16 %v6750_v11, %v6749_v6 }
0x2ae5   :  { %8652 = vmatmul.mubr.msk.f32.vlgmr.msra.gmra.mrb[62].mxu0 %vm1012_vm6, %v6392_v40  ;;  %v6754_v40 = vld [vmem:[#allocation55 + $0x58] sm:$0xff] }
0x2ae6   :  { %8655 = vmatpush3.xpose.msk.msra.mxu0 %vm3694_vm0, %v6480_v34  ;;  %8656 = vmatprep.mubr.msk.f32.mxu0 %vm10445_vm5, %v10446_v44  ;;  %v6753_v34 = vld [vmem:[#allocation55 + $0x50] sm:$0xff] }
0x2ae7   :  { %8659 = vmatprep.subr.mxu0 %v10446_v44 }
0x2ae9   :  { %8657 = vmatmul.mubr.msk.f32.vlgmr.msra.gmra.mrb[64].mxu0 %vm3694_vm0, %v6478_v8  ;;  %v9341_v8 = vpack.c.bf16 %v6754_v40, %v6753_v34 }
0x2aea   :  { %8661 = vmatprep.mubr.msk.f32.mxu0 %vm10445_vm5, %v10446_v44 }
0x2bb8   :  { %v6466_v50 = vpop.f32.mrb[62].mxu0 }
0x2bb9   :  { %v8653_v10 = vpop.f32.mrb[63].mxu0 }
0x2bba   :  { %v6756_v10 = vld [vmem:[#allocation55 + $0x68] sm:$0xff] }
0x2bbc   :  { %v6551_v12 = vpop.f32.mrb[64].mxu0 }
0x2bbd   :  { %v6552_v13 = vadd.f32 %v6551_v12, %v6476_v25  ;;  %v8658_v14 = vpop.f32.mrb[65].mxu0 }
0x2bbe   :  { %v6757_v14 = vld [vmem:[#allocation55 + $0x70] sm:$0xff] }
0x2bbf   :  { %v6555_v15 = vsel %vm6040_vm2, %v6552_v13, -inf }
0x2bc0   :  { %6556 = vmax.xlane.f32.xlu0 %v6555_v15  ;;  %v6758_v15 = vld [vmem:[#allocation55 + $0x78] sm:$0xff] }
0x2bd6   :  { %6566 = vrot.lane.b32.xlu0 %v11656_v21, %s10450_s19 }
0x2bda   :  { %6471 = vrot.lane.b32.xlu0 %v6466_v50, %s10449_s26  ;;  %v6755_v50 = vld [vmem:[#allocation55 + $0x60] sm:$0xff] }
0x2bdb   :  { %v9344_v25 = vpack.c.bf16 %v6756_v10, %v6755_v50 }
0x2c4d   :  { %v6557_v18 = vpop.xlane.xlu0 %6556 }
0x2c4e   :  { %v6558_v20 = vsub.f32 %v6552_v13, %v6557_v18  ;;  %v9347_v18 = vpack.c.bf16 %v6758_v15, %v6757_v14 }
0x2c50   :  { %v6559_v29 = vmul.f32 1.442695, %v6558_v20  ;;  %v6837_v20 = vld [vmem:[%s10700_s4] sm:$0xff] }
0x2c51   :  { %v6567_v61 = vpop.permute.xlu0 %6566 }
0x2c52   :  { %9522 = vpow2.f32 %v6559_v29  ;;  %8660 = vmatpush3.msk.msra.mxu0 %vm1037_vm7, %v6567_v61  ;;  %v6838_v29 = vld [vmem:[%s10700_s4 + $0x8] sm:$0xff]  ;;  %v6839_v61 = vld [vmem:[%s10700_s4 + $0x10] sm:$0xff] }
0x2c53   :  { %9325 = vmatprep.subr.bf16.mxu0 %v10444_v43 }
0x2c55   :  { %v6472_v24 = vpop.permute.xlu0 %6471 }
0x2c5c   :  { %v9523_v22 = vpop.eup %9522 }
0x2c5d   :  { %v6561_v23 = vsel %vm6040_vm2, %v9523_v22, 0.0 }
0x2c5e   :  { %6562 = vadd.xlane.f32.xlu1 %v6561_v23  ;;  %v6840_v23 = vld [vmem:[%s10700_s4 + $0x18] sm:$0xff] }
0x2c6f   :  { %6298 = vrot.lane.b32.xlu1 %v6293_v63, %s10450_s19  ;;  %v6745_v63 = vld [vmem:[#allocation55 + $0x10] sm:$0xff] }
0x2c70   :  { %v9329_v2 = vpack.c.bf16 %v6746_v17, %v6745_v63 }
0x2ceb   :  { %v6563_v55 = vpop.xlane.xlu1 %6562 }
0x2cec   :  { %9524 = vrcp.f32 %v6563_v55  ;;  %v9353_v55 = vpack.c.bf16 %v6840_v23, %v6839_v61 }
0x2cef   :  { %v6299_v21 = vpop.permute.xlu1 %6298 }
0x2cf0   :  { %6302 = vst.msk [vmem:[#allocation4] sm:$0xf] %vm6301_vm4, %v6299_v21  ;;  %v6841_v21 = vld [vmem:[%s10700_s4 + $0x20] sm:$0xff] }
0x2cf1   :  { %6475 = vst.msk [vmem:[#allocation4] sm:$0xf] %vm6474_vm8, %v6472_v24 }
0x2cf6   :  { %v9525_v26 = vpop.eup %9524 }
0x2cf7   :  { %v6565_v27 = vmul.f32 %v9525_v26, %v9523_v22  ;;  %v9350_v22 = vpack.c.bf16 %v6838_v29, %v6837_v20  ;;  %v6843_v26 = vld [vmem:[%s10700_s4 + $0x30] sm:$0xff] }
0x2cf9   :  { %8662 = vmatmul.mubr.msk.f32.vlgmr.msra.gmra.mrb[66].mxu0 %vm1012_vm6, %v6565_v27  ;;  %vm6647_vm6 = vcmask 1044224   ;;  %v6844_v27 = vld [vmem:[%s10700_s4 + $0x38] sm:$0xff] }
0x2cfa   :  { %8731 = vmatprep.mubr.msk.f32.mxu0 %vm10445_vm5, %v10446_v44  ;;  %9327 = vmatpush3.bf16.msra.mxu0 %v9326_v1  ;;  %v9359_v28 = vpack.c.bf16 %v6844_v27, %v6843_v26 }
0x2cfb   :  { %9328 = vmatprep.subr.bf16.mxu0 %v10444_v43 }
0x2cfe   :  { %9330 = vmatpush3.bf16.msra.mxu0 %v9329_v2 }
0x2cff   :  { %9331 = vmatprep.subr.bf16.mxu0 %v10444_v43 }
0x2d02   :  { %9333 = vmatpush3.bf16.msra.mxu0 %v9332_v19 }
0x2d03   :  { %9334 = vmatprep.subr.bf16.mxu0 %v10444_v43 }
0x2d06   :  { %9336 = vmatpush3.bf16.msra.mxu0 %v9335_v16 }
0x2d07   :  { %9337 = vmatprep.subr.bf16.mxu0 %v10444_v43 }
0x2d0a   :  { %9339 = vmatpush3.bf16.msra.mxu0 %v9338_v7 }
0x2d0b   :  { %9340 = vmatprep.subr.bf16.mxu0 %v10444_v43 }
0x2d0e   :  { %9342 = vmatpush3.bf16.msra.mxu0 %v9341_v8 }
0x2d0f   :  { %9343 = vmatprep.subr.bf16.mxu0 %v10444_v43 }
0x2d12   :  { %9345 = vmatpush3.bf16.msra.mxu0 %v9344_v25 }
0x2d13   :  { %9346 = vmatprep.subr.bf16.mxu0 %v10444_v43 }
0x2d16   :  { %9348 = vmatpush3.bf16.msra.mxu0 %v9347_v18 }
0x2dcc   :  { %v6639_v3 = vpop.f32.mrb[66].mxu0 }
0x2dcd   :  { %6644 = vrot.lane.b32.xlu1 %v6639_v3, %s10448_s21  ;;  %v8663_v58 = vpop.f32.mrb[67].mxu0 }
0x2e3f   :  { %v6645_v12 = vpop.permute.xlu1 %6644 }
0x2e40   :  { %6648 = vst.msk [vmem:[#allocation4] sm:$0xf] %vm6647_vm6, %v6645_v12 }
0x2e47   :  { %v6649_v13 = vld [vmem:[#allocation4] sm:$0xf] }
0x2e48   :  { %8697 = vmatmul.mubr.f32.vlgmr.msra.gmra.mrb[72].mxu1 %v6649_v13 }
0x2e49   :  { %8766 = vmatprep.mubr.msk.f32.mxu1 %vm10445_vm5, %v10446_v44  ;;  %9351 = vmatpush3.bf16.msra.mxu1 %v9350_v22  ;;  %v6842_v44 = vld [vmem:[%s10700_s4 + $0x28] sm:$0xff] }
0x2e4a   :  { %9352 = vmatprep.subr.bf16.mxu1 %v10444_v43  ;;  %v9356_v24 = vpack.c.bf16 %v6842_v44, %v6841_v21 }
0x2e4d   :  { %9354 = vmatpush3.bf16.msra.mxu1 %v9353_v55 }
0x2e4e   :  { %9355 = vmatprep.subr.bf16.mxu1 %v10444_v43 }
0x2e51   :  { %9357 = vmatpush3.bf16.msra.mxu1 %v9356_v24 }
0x2e52   :  { %9358 = vmatprep.subr.bf16.mxu1 %v10444_v43 }
0x2e55   :  { %9360 = vmatpush3.bf16.msra.mxu1 %v9359_v28 }
0x2e56   :  { %9361 = vmatprep.subr.bf16.mxu1 %v10444_v43 }
0x2e59   :  { %9363 = vmatpush3.bf16.msra.mxu1 %v9362_v33 }
0x2e5a   :  { %9364 = vmatprep.subr.bf16.mxu1 %v10444_v43 }
0x2e5d   :  { %9366 = vmatpush3.bf16.msra.mxu1 %v9365_v39 }
0x2e5e   :  { %9367 = vmatprep.subr.bf16.mxu1 %v10444_v43 }
0x2e61   :  { %9369 = vmatpush3.bf16.msra.mxu1 %v9368_v9 }
0x2e62   :  { %9370 = vmatprep.subr.bf16.mxu1 %v10444_v43 }
0x2e65   :  { %9372 = vmatpush3.bf16.msra.mxu1 %v9371_v49 }
0x2f1b   :  { %v6739_v45 = vpop.f32.mrb[72].mxu1 }
0x2f1c   :  { %v6740_v41 = vadd.f32 %v7291_v42, %v6739_v45  ;;  %v8698_v47 = vpop.f32.mrb[73].mxu1 }
0x2f1e   :  { %8732 = vmatmul.mubr.f32.vlgmr.msra.gmra.mrb[68].mxu0 %v6740_v41 }
0x2ff1   :  { %v6832_v53 = vpop.f32.mrb[68].mxu0 }
0x2ff2   :  { %v6833_v51 = vadd.f32 %v7292_v52, %v6832_v53  ;;  %v8733_v46 = vpop.f32.mrb[69].mxu0 }
0x2ff4   :  { %v6836_v0 = vmax.f32 %v6833_v51, 0.0 }
0x2ff6   :  { %8767 = vmatmul.mubr.f32.vlgmr.msra.gmra.mrb[74].mxu1 %v6836_v0 }
0x30c9   :  { %v6926_v59 = vpop.f32.mrb[74].mxu1 }
0x30ca   :  { %v6927_v43 = vadd.f32 %v7293_v56, %v6926_v59  ;;  %v8768_v60 = vpop.f32.mrb[75].mxu1 }
0x30cc   :  { %6930 = vst [vmem:[#allocation59] sm:$0xf] %v6927_v43 }
0x30cd   :  { %10307 = shalt.err (!%p10304_p4)
}
0x30ce   :  { %s10308_s4 = scalar_lea.hbm %s10710_s12, 64 }
0x30cf   :  { %p10309_p5 = scmp.ne.s32.totalorder %s10710_s12, %s10308_s4  ;;  %p10312_p6 = scmp.lt.u32.totalorder %s10308_s4, %s10710_s12 }
0x30d1   :  { %p10314_p7 = pnand %p10312_p6, %p10309_p5 }
0x30d3   :  { %10317 = shalt.err (!%p10314_p7)
}
0x30d4   :  { %6940 = dma.vmem_to_hbm [thread:$0]  %s6938_s28, 64, %s10710_s12, [#allocation7]  }
0x30d5   :  { %10354 = dma.done.wait [#allocation7], 64  }
0x30d6   :  { %10355 = vsyncadd [#allocation7], 4294967232 }
0x30d7   :  { %6944 = vsyncpa [#allocation6], 1 }
0x30d8   :  { %6945 = vsyncpa [#allocation9], 1 }
0x30d9   :  { %6946 = vsyncpa [#allocation12], 1 }
0x30da   :  { %6947 = vsyncpa [#allocation15], 1 }
0x30db   :  { %6948 = vsyncpa [#allocation18], 1 }
0x30dc   :  { %6949 = vsyncpa [#allocation21], 1 }
0x30dd   :  { %6950 = vsyncpa [#allocation24], 1 }
0x30de   :  { %6951 = vsyncpa [#allocation27], 1 }
0x30df   :  { %6952 = vsyncpa [#allocation30], 1 }
0x30e0   :  { %6953 = vsyncpa [#allocation33], 1 }
0x30e1   :  { %6954 = vsyncpa [#allocation36], 1 }
0x30e2   :  { %6955 = vsyncpa [#allocation39], 1 }
0x30e3   :  { %6956 = vsyncpa [#allocation42], 1 }
0x30e4   :  { %6957 = vsyncpa [#allocation45], 1 }
0x30e5   :  { %6958 = vsyncpa [#allocation48], 1 }
0x30e6   :  { %6959 = vsyncpa [#allocation51], 1 }
0x30e7   :  { %6960 = vsyncpa [#allocation54], 1 }
0x30e8   :  { %6961 = vsyncpa [#allocation57], 1 }
0x30e9   :  { %6962 = vsyncpa [#allocation7], 1 }

</bundles_post_ra>
